<compile_context>
chip_gen: v7x
topology: tpu7x:2x2x1
jax: 0.10.0
libtpu: 0.0.40
codegen_flags: <defaults>
</compile_context>

<pallas_src>
import functools
import math

import jax
import jax.numpy as jnp
from jax.experimental import pallas as pl
from jax.experimental.pallas import tpu as pltpu


def _triple(v):
    if isinstance(v, (tuple, list)):
        assert len(v) == 3
        return tuple(int(t) for t in v)
    return (int(v),) * 3


def _round_up(x, m):
    return (x + m - 1) // m * m


# -----------------------------------------------------------------------------
# Pallas kernel: one grid step = one (batch, out-depth, depth-tap) triple.
# -----------------------------------------------------------------------------
def _conv3d_tap_kernel(x_ref, w_ref, wd_ref, b_ref, o_ref, *,
                       kh, kw, dh, dw, Wp, M, cin, cout,
                       use_mxu, fuse_diff, ca, c_off):
    """Refs:
      x_ref : (1, 1, L, Cin)          bf16  padded depth slice, (H,W) flattened
      w_ref : (kd, kh, kw, Cin, Cout) f32   full weight, resident in VMEM
      wd_ref: (Cin, Cout)             f32   -theta * sum(W)   (zeros if unused)
      b_ref : (1, Cout)               f32   bias (pre-scaled if diff is fused)
      o_ref : (1, 1, M, Cout)         f32   accumulated across the kd grid axis
    """
    a = pl.program_id(2)

    @pl.when(a == 0)
    def _init():
        o_ref[0, 0] = jnp.zeros((M, cout), jnp.float32) + b_ref[...]

    def tap_matmul(t_bf16, w2d_f32):
        # (M, Cin) x (Cin, Cout) -> (M, Cout) f32.
        if use_mxu:
            return jnp.dot(t_bf16, w2d_f32.astype(jnp.bfloat16),
                           preferred_element_type=jnp.float32)
        # Tiny K: rank-1 VPU updates (full f32) beat a nearly-empty MXU launch.
        t32 = t_bf16.astype(jnp.float32)
        acc = jnp.zeros((M, cout), jnp.float32)
        for ci in range(cin):
            acc = acc + t32[:, ci:ci + 1] * w2d_f32[ci:ci + 1, :]
        return acc

    acc = jnp.zeros((M, cout), jnp.float32)
    t_centre = None
    for b in range(kh):
        for c in range(kw):
            off = b * dh * Wp + c * dw                 # static flat (H,W) offset
            t = x_ref[0, 0, pl.ds(off, M), :]          # (M, Cin) bf16
            acc = acc + tap_matmul(t, w_ref[a, b, c])
            if fuse_diff and off == c_off:
                t_centre = t
    o_ref[0, 0] = o_ref[0, 0] + acc

    if fuse_diff:
        # Fused -theta*sum(W) 1x1x1 term: fires only on the centre depth tap.
        @pl.when(a == ca)
        def _diff():
            o_ref[0, 0] = o_ref[0, 0] + tap_matmul(t_centre, wd_ref[...])


# -----------------------------------------------------------------------------
# One dense 3-D conv (optionally with the fused centre-tap difference term).
# -----------------------------------------------------------------------------
def _conv3d_core(x, w, bias, w_diff, stride, padding, dilation):
    """x: (N, Cin, D, H, W); w: (Cout, Cin, kd, kh, kw) f32.
    Returns (N, Cout, Dn, Hn, Wn) f32 = conv3d(x, w) [+ bias] [+ fused diff]."""
    N, Cin, D, H, W = x.shape
    Cout, Cin_w, kd, kh, kw = w.shape
    assert Cin_w == Cin
    sd, sh, sw = stride
    pd, ph, pw = padding
    dd, dh, dw = dilation

    Dp, Hp, Wp = D + 2 * pd, H + 2 * ph, W + 2 * pw
    Dn = (Dp - dd * (kd - 1) - 1) // sd + 1
    Hn1 = Hp - dh * (kh - 1)          # stride-1 output height
    Wn1 = Wp - dw * (kw - 1)          # stride-1 output width
    Hn = (Hn1 - 1) // sh + 1
    Wn = (Wn1 - 1) // sw + 1
    assert Dn >= 1 and Hn1 >= 1 and Wn1 >= 1

    # Channels-last, spatially padded, (H, W) flattened, bf16 activations.
    # One extra padded H row keeps the flattened tap windows in bounds.
    eh = 1 if kw > 1 else 0
    x_cl = jnp.transpose(x, (0, 2, 3, 4, 1)).astype(jnp.bfloat16)
    x_p = jnp.pad(x_cl, ((0, 0), (pd, pd), (ph, ph + eh), (pw, pw), (0, 0)))
    L = (Hp + eh) * Wp
    x_flat = x_p.reshape(N, Dp, L, Cin)

    # Weight as (kd, kh, kw, Cin, Cout) f32 (small; stays resident in VMEM).
    w_r = jnp.transpose(w, (2, 3, 4, 1, 0)).astype(jnp.float32)

    fuse_diff = w_diff is not None
    wd = (w_diff if fuse_diff else jnp.zeros((Cin, Cout))).astype(jnp.float32)
    b = (bias if bias is not None else jnp.zeros((Cout,)))
    b = b.astype(jnp.float32).reshape(1, Cout)

    M = Hn1 * Wp                      # stride-1 output rows incl. junk columns
    ca = pd // dd if fuse_diff else 0
    c_off = ph * Wp + pw if fuse_diff else -1
    use_mxu = Cin >= 32               # tiny K wastes the MXU; use VPU updates

    kernel = functools.partial(
        _conv3d_tap_kernel, kh=kh, kw=kw, dh=dh, dw=dw, Wp=Wp, M=M,
        cin=Cin, cout=Cout, use_mxu=use_mxu, fuse_diff=fuse_diff,
        ca=ca, c_off=c_off)

    # VMEM budget (double-buffered input block + resident weight + output).
    x_blk = 2 * _round_up(L, 16) * _round_up(Cin, 128) * 2
    w_blk = kd * kh * kw * _round_up(Cin, 8) * _round_up(Cout, 128) * 4
    o_blk = 2 * _round_up(M, 8) * _round_up(Cout, 128) * 4
    vmem_limit = int(min(max(2 * (x_blk + w_blk + o_blk) + (4 << 20), 32 << 20),
                         60 << 20))   # stay under v7x's 64 MiB physical VMEM

    out = pl.pallas_call(
        kernel,
        out_shape=jax.ShapeDtypeStruct((N, Dn, M, Cout), jnp.float32),
        grid=(N, Dn, kd),
        in_specs=[
            pl.BlockSpec((1, 1, L, Cin),
                         lambda n, d, a: (n, d * sd + a * dd, 0, 0)),
            pl.BlockSpec((kd, kh, kw, Cin, Cout),
                         lambda n, d, a: (0, 0, 0, 0, 0)),
            pl.BlockSpec((Cin, Cout), lambda n, d, a: (0, 0)),
            pl.BlockSpec((1, Cout), lambda n, d, a: (0, 0)),
        ],
        out_specs=pl.BlockSpec((1, 1, M, Cout), lambda n, d, a: (n, d, 0, 0)),
        compiler_params=pltpu.CompilerParams(
            dimension_semantics=("parallel", "parallel", "arbitrary"),
            vmem_limit_bytes=vmem_limit),
    )(x_flat, w_r, wd, b)

    # Un-flatten, drop junk columns, apply the H/W stride, back to NCDHW.
    out = out.reshape(N, Dn, Hn1, Wp, Cout)
    out = out[:, :, ::sh, :(Wn - 1) * sw + 1:sw, :]
    return jnp.transpose(out, (0, 4, 1, 2, 3))


# -----------------------------------------------------------------------------
# Conv3d_cd forward
# -----------------------------------------------------------------------------
def conv3d_cd_forward(x, w, bias=None, *, stride=1, padding=1, dilation=1,
                      groups=1, theta=0.7):
    """x: (N, Cin, D, H, W)   w: (Cout, Cin, kd, kh, kw)   -> (N, Cout, ...)."""
    if groups != 1:
        raise NotImplementedError("groups != 1 not supported")  # TODO(synk)
    s, p, d = _triple(stride), _triple(padding), _triple(dilation)
    kd, kh, kw = (int(k) for k in w.shape[2:])
    w32 = w.astype(jnp.float32)

    if math.fabs(theta) < 1e-8:
        return _conv3d_core(x, w32, bias, None, s, p, d)

    w_sum = jnp.sum(w32, axis=(2, 3, 4)).T            # (Cin, Cout)

    aligned = all(di * (k - 1) == 2 * pi and pi % di == 0
                  for k, pi, di in zip((kd, kh, kw), p, d))
    if aligned:
        # Same output grid for both terms and the centre tap reads exactly the
        # 1x1x1-conv input => single fused pallas_call.
        b_eff = None if bias is None else (1.0 - theta) * bias
        return _conv3d_core(x, w32, b_eff, -theta * w_sum, s, p, d)

    # General path (e.g. the module defaults kernel_size=[7,7,3], padding=1):
    # two kernel launches + a PyTorch-style broadcasting subtract.
    out_n = _conv3d_core(x, w32, bias, None, s, p, d)
    w_diff5 = (theta * w_sum).T[:, :, None, None, None]   # (Cout, Cin, 1,1,1)
    b_d = None if bias is None else theta * bias
    out_d = _conv3d_core(x, w_diff5, b_d, None, s, (0, 0, 0), (1, 1, 1))
    return out_n - out_d                                   # numpy/torch broadcast


# -----------------------------------------------------------------------------
# Pure-JAX reference (for correctness checking only)
# -----------------------------------------------------------------------------
def _reference(x, w, bias, stride, padding, dilation, theta):
    xb = x.astype(jnp.bfloat16).astype(jnp.float32)
    wb = w.astype(jnp.float32)
    s, p, d = _triple(stride), _triple(padding), _triple(dilation)
    dn = ('NCDHW', 'OIDHW', 'NCDHW')
    out_n = jax.lax.conv_general_dilated(
        xb, wb, window_strides=s,
        padding=[(p[0], p[0]), (p[1], p[1]), (p[2], p[2])],
        rhs_dilation=d, dimension_numbers=dn,
        precision=jax.lax.Precision.HIGHEST)
    if bias is not None:
        out_n = out_n + bias[None, :, None, None, None]
    if math.fabs(theta) < 1e-8:
        return out_n
    w_diff = jnp.sum(wb, axis=(2, 3, 4))[:, :, None, None, None]
    out_d = jax.lax.conv_general_dilated(
        xb, w_diff, window_strides=s, padding=[(0, 0)] * 3,
        dimension_numbers=dn, precision=jax.lax.Precision.HIGHEST)
    if bias is not None:
        out_d = out_d + bias[None, :, None, None, None]
    return out_n - theta * out_d


# -----------------------------------------------------------------------------
# Driver
# -----------------------------------------------------------------------------
if __name__ == "__main__":
    def run_case(key, N, Cin, Cout, D, H, W, ksize, padding, theta):
        kd, kh, kw = ksize
        kx, kwt = jax.random.split(key)
        x = jax.random.normal(kx, (N, Cin, D, H, W), jnp.float32)
        bound = 1.0 / math.sqrt(Cin * kd * kh * kw)
        wgt = jax.random.uniform(kwt, (Cout, Cin, kd, kh, kw), jnp.float32,
                                 -bound, bound)
        fwd = jax.jit(functools.partial(conv3d_cd_forward, stride=1,
                                        padding=padding, dilation=1,
                                        groups=1, theta=theta))
        out = fwd(x, wgt)
        jax.block_until_ready(out)
        ref = _reference(x, wgt, None, 1, padding, 1, theta)
        assert out.shape == ref.shape, (out.shape, ref.shape)
        assert bool(jnp.all(jnp.isfinite(out)))
        err = float(jnp.max(jnp.abs(out - ref)))
        tol = 3e-2 * (1.0 + float(jnp.max(jnp.abs(ref))))
        assert err <= tol, (err, tol)
        return out

    root = jax.random.PRNGKey(0)
    k1, k2 = jax.random.split(root)

    # Case 1: the module's default construction — kernel_size=[7,7,3],
    # padding=1, stride=1, bias=False, theta=0.7.  These defaults imply
    # D = H = 5 so the final out_normal - theta*out_diff broadcast is valid
    # (exactly as the PyTorch forward behaves).
    run_case(k1, N=2, Cin=4, Cout=8, D=5, H=5, W=16,
             ksize=(7, 7, 3), padding=1, theta=0.7)

    # Case 2: the usual CDC configuration (kernel 3, padding 1) — exercises
    # the fully-fused single-launch fast path (difference term fused as an
    # extra centre-tap dot inside the same kernel).
    run_case(k2, N=2, Cin=4, Cout=8, D=8, H=8, W=8,
             ksize=(3, 3, 3), padding=1, theta=0.7)

    print("KERNEL_OK")
</pallas_src>

<mosaic_0001>
module attributes {stable_mosaic.version = 11 : i64} {
  func.func @_conv3d_tap_kernel(%arg0: i32, %arg1: i32, %arg2: i32, %arg3: memref<1x1x80x4xbf16, #tpu.memory_space<vmem>>, %arg4: memref<1x1x1x4x8xf32, #tpu.memory_space<vmem>>, %arg5: memref<4x8xf32, #tpu.memory_space<vmem>>, %arg6: memref<1x8xf32, #tpu.memory_space<vmem>>, %arg7: memref<1x1x80x8xf32, #tpu.memory_space<vmem>>) attributes {dimension_semantics = [#tpu.dimension_semantics<parallel>, #tpu.dimension_semantics<parallel>, #tpu.dimension_semantics<arbitrary>], iteration_bounds = array<i64: 2, 5, 1>, scalar_prefetch = 0 : i64, scratch_operands = 0 : i64, tpu.core_type = #tpu.core_type<tc>, window_params = [{transform_indices = @transform_0, window_bounds = array<i64: 1, 1, 80, 4>}, {pipeline_mode = #tpu.pipeline_mode<synchronous>, transform_indices = @transform_1, window_bounds = array<i64: 1, 1, 1, 4, 8>}, {pipeline_mode = #tpu.pipeline_mode<synchronous>, transform_indices = @transform_2, window_bounds = array<i64: 4, 8>}, {pipeline_mode = #tpu.pipeline_mode<synchronous>, transform_indices = @transform_3, window_bounds = array<i64: 1, 8>}, {transform_indices = @transform_4, window_bounds = array<i64: 1, 1, 80, 8>}]} {
    %c0_i32 = arith.constant 0 : i32
    %0 = arith.cmpi eq, %arg2, %c0_i32 : i32
    %1 = arith.extui %0 : i1 to i32
    %c0_i32_0 = arith.constant 0 : i32
    %2 = arith.cmpi ne, %1, %c0_i32_0 : i32
    scf.if %2 {
      %cst_17 = arith.constant 0.000000e+00 : f32
      %42 = vector.broadcast %cst_17 : f32 to vector<80x8xf32>
      %c0_18 = arith.constant 0 : index
      %c0_19 = arith.constant 0 : index
      %43 = vector.load %arg6[%c0_18, %c0_19] : memref<1x8xf32, #tpu.memory_space<vmem>>, vector<1x8xf32>
      %44 = vector.broadcast %43 : vector<1x8xf32> to vector<80x8xf32>
      %45 = arith.addf %42, %44 : vector<80x8xf32>
      %c0_20 = arith.constant 0 : index
      %c0_21 = arith.constant 0 : index
      %c0_22 = arith.constant 0 : index
      %c0_23 = arith.constant 0 : index
      %46 = vector.load %arg7[%c0_20, %c0_21, %c0_22, %c0_23] : memref<1x1x80x8xf32, #tpu.memory_space<vmem>>, vector<1x1x80x8xf32>
      %47 = vector.shape_cast %46 : vector<1x1x80x8xf32> to vector<80x8xf32>
      %48 = vector.shape_cast %45 : vector<80x8xf32> to vector<1x1x80x8xf32>
      tpu.vector_store %arg7[%c0_20, %c0_21, %c0_22, %c0_23], %48 {strides = array<i32>} : memref<1x1x80x8xf32, #tpu.memory_space<vmem>>, vector<1x1x80x8xf32>,
    } else {
    }
    %cst = arith.constant 0.000000e+00 : f32
    %3 = vector.broadcast %cst : f32 to vector<80x8xf32>
    %c0 = arith.constant 0 : index
    %c0_1 = arith.constant 0 : index
    %c0_2 = arith.constant 0 : index
    %c0_3 = arith.constant 0 : index
    %4 = vector.load %arg3[%c0, %c0_1, %c0_2, %c0_3] : memref<1x1x80x4xbf16, #tpu.memory_space<vmem>>, vector<1x1x80x4xbf16>
    %5 = vector.shape_cast %4 : vector<1x1x80x4xbf16> to vector<80x4xbf16>
    %6 = arith.index_cast %arg2 : i32 to index
    %c0_4 = arith.constant 0 : index
    %c0_5 = arith.constant 0 : index
    %c0_6 = arith.constant 0 : index
    %c0_7 = arith.constant 0 : index
    %7 = vector.load %arg4[%6, %c0_4, %c0_5, %c0_6, %c0_7] : memref<1x1x1x4x8xf32, #tpu.memory_space<vmem>>, vector<1x1x1x4x8xf32>
    %8 = vector.shape_cast %7 : vector<1x1x1x4x8xf32> to vector<4x8xf32>
    %9 = arith.extf %5 : vector<80x4xbf16> to vector<80x4xf32>
    %cst_8 = arith.constant 0.000000e+00 : f32
    %10 = vector.broadcast %cst_8 : f32 to vector<80x8xf32>
    %11 = vector.extract_strided_slice %9 {offsets = [0, 0], sizes = [80, 1], strides = [1, 1]} : vector<80x4xf32> to vector<80x1xf32>
    %12 = vector.extract_strided_slice %8 {offsets = [0, 0], sizes = [1, 8], strides = [1, 1]} : vector<4x8xf32> to vector<1x8xf32>
    %13 = vector.broadcast %11 : vector<80x1xf32> to vector<80x8xf32>
    %14 = vector.broadcast %12 : vector<1x8xf32> to vector<80x8xf32>
    %15 = arith.mulf %13, %14 : vector<80x8xf32>
    %16 = arith.addf %10, %15 : vector<80x8xf32>
    %17 = vector.extract_strided_slice %9 {offsets = [0, 1], sizes = [80, 1], strides = [1, 1]} : vector<80x4xf32> to vector<80x1xf32>
    %18 = vector.extract_strided_slice %8 {offsets = [1, 0], sizes = [1, 8], strides = [1, 1]} : vector<4x8xf32> to vector<1x8xf32>
    %19 = vector.broadcast %17 : vector<80x1xf32> to vector<80x8xf32>
    %20 = vector.broadcast %18 : vector<1x8xf32> to vector<80x8xf32>
    %21 = arith.mulf %19, %20 : vector<80x8xf32>
    %22 = arith.addf %16, %21 : vector<80x8xf32>
    %23 = vector.extract_strided_slice %9 {offsets = [0, 2], sizes = [80, 1], strides = [1, 1]} : vector<80x4xf32> to vector<80x1xf32>
    %24 = vector.extract_strided_slice %8 {offsets = [2, 0], sizes = [1, 8], strides = [1, 1]} : vector<4x8xf32> to vector<1x8xf32>
    %25 = vector.broadcast %23 : vector<80x1xf32> to vector<80x8xf32>
    %26 = vector.broadcast %24 : vector<1x8xf32> to vector<80x8xf32>
    %27 = arith.mulf %25, %26 : vector<80x8xf32>
    %28 = arith.addf %22, %27 : vector<80x8xf32>
    %29 = vector.extract_strided_slice %9 {offsets = [0, 3], sizes = [80, 1], strides = [1, 1]} : vector<80x4xf32> to vector<80x1xf32>
    %30 = vector.extract_strided_slice %8 {offsets = [3, 0], sizes = [1, 8], strides = [1, 1]} : vector<4x8xf32> to vector<1x8xf32>
    %31 = vector.broadcast %29 : vector<80x1xf32> to vector<80x8xf32>
    %32 = vector.broadcast %30 : vector<1x8xf32> to vector<80x8xf32>
    %33 = arith.mulf %31, %32 : vector<80x8xf32>
    %34 = arith.addf %28, %33 : vector<80x8xf32>
    %35 = arith.addf %3, %34 : vector<80x8xf32>
    %c0_9 = arith.constant 0 : index
    %c0_10 = arith.constant 0 : index
    %c0_11 = arith.constant 0 : index
    %c0_12 = arith.constant 0 : index
    %36 = vector.load %arg7[%c0_9, %c0_10, %c0_11, %c0_12] : memref<1x1x80x8xf32, #tpu.memory_space<vmem>>, vector<1x1x80x8xf32>
    %37 = vector.shape_cast %36 : vector<1x1x80x8xf32> to vector<80x8xf32>
    %38 = arith.addf %37, %35 : vector<80x8xf32>
    %c0_13 = arith.constant 0 : index
    %c0_14 = arith.constant 0 : index
    %c0_15 = arith.constant 0 : index
    %c0_16 = arith.constant 0 : index
    %39 = vector.load %arg7[%c0_13, %c0_14, %c0_15, %c0_16] : memref<1x1x80x8xf32, #tpu.memory_space<vmem>>, vector<1x1x80x8xf32>
    %40 = vector.shape_cast %39 : vector<1x1x80x8xf32> to vector<80x8xf32>
    %41 = vector.shape_cast %38 : vector<80x8xf32> to vector<1x1x80x8xf32>
    tpu.vector_store %arg7[%c0_13, %c0_14, %c0_15, %c0_16], %41 {strides = array<i32>} : memref<1x1x80x8xf32, #tpu.memory_space<vmem>>, vector<1x1x80x8xf32>,
    return
  }
  func.func @transform_0(%arg0: i32, %arg1: i32, %arg2: i32) -> (i32, i32, i32, i32) {
    %c1_i32 = arith.constant 1 : i32
    %0 = arith.muli %arg1, %c1_i32 : i32
    %c1_i32_0 = arith.constant 1 : i32
    %1 = arith.muli %arg2, %c1_i32_0 : i32
    %2 = arith.addi %0, %1 : i32
    %c0_i32 = arith.constant 0 : i32
    %c0_i32_1 = arith.constant 0 : i32
    %c0_i32_2 = arith.constant 0 : i32
    return %arg0, %2, %c0_i32, %c0_i32_1 : i32, i32, i32, i32
  }
  func.func @transform_1(%arg0: i32, %arg1: i32, %arg2: i32) -> (i32, i32, i32, i32, i32) {
    %c0_i32 = arith.constant 0 : i32
    %c0_i32_0 = arith.constant 0 : i32
    %c0_i32_1 = arith.constant 0 : i32
    %c0_i32_2 = arith.constant 0 : i32
    %c0_i32_3 = arith.constant 0 : i32
    %c0_i32_4 = arith.constant 0 : i32
    return %c0_i32, %c0_i32_0, %c0_i32_1, %c0_i32_2, %c0_i32_3 : i32, i32, i32, i32, i32
  }
  func.func @transform_2(%arg0: i32, %arg1: i32, %arg2: i32) -> (i32, i32) {
    %c0_i32 = arith.constant 0 : i32
    %c0_i32_0 = arith.constant 0 : i32
    %c0_i32_1 = arith.constant 0 : i32
    return %c0_i32, %c0_i32_0 : i32, i32
  }
  func.func @transform_3(%arg0: i32, %arg1: i32, %arg2: i32) -> (i32, i32) {
    %c0_i32 = arith.constant 0 : i32
    %c0_i32_0 = arith.constant 0 : i32
    %c0_i32_1 = arith.constant 0 : i32
    return %c0_i32, %c0_i32_0 : i32, i32
  }
  func.func @transform_4(%arg0: i32, %arg1: i32, %arg2: i32) -> (i32, i32, i32, i32) {
    %c0_i32 = arith.constant 0 : i32
    %c0_i32_0 = arith.constant 0 : i32
    %c0_i32_1 = arith.constant 0 : i32
    return %arg0, %arg1, %c0_i32, %c0_i32_0 : i32, i32, i32, i32
  }
}

module attributes {stable_mosaic.version = 11 : i64} {
  func.func @_conv3d_tap_kernel(%arg0: i32, %arg1: i32, %arg2: i32, %arg3: memref<1x1x144x4xbf16, #tpu.memory_space<vmem>>, %arg4: memref<7x7x3x4x8xf32, #tpu.memory_space<vmem>>, %arg5: memref<4x8xf32, #tpu.memory_space<vmem>>, %arg6: memref<1x8xf32, #tpu.memory_space<vmem>>, %arg7: memref<1x1x18x8xf32, #tpu.memory_space<vmem>>) attributes {dimension_semantics = [#tpu.dimension_semantics<parallel>, #tpu.dimension_semantics<parallel>, #tpu.dimension_semantics<arbitrary>], iteration_bounds = array<i64: 2, 1, 7>, scalar_prefetch = 0 : i64, scratch_operands = 0 : i64, tpu.core_type = #tpu.core_type<tc>, window_params = [{transform_indices = @transform_0, window_bounds = array<i64: 1, 1, 144, 4>}, {pipeline_mode = #tpu.pipeline_mode<synchronous>, transform_indices = @transform_1, window_bounds = array<i64: 7, 7, 3, 4, 8>}, {pipeline_mode = #tpu.pipeline_mode<synchronous>, transform_indices = @transform_2, window_bounds = array<i64: 4, 8>}, {pipeline_mode = #tpu.pipeline_mode<synchronous>, transform_indices = @transform_3, window_bounds = array<i64: 1, 8>}, {transform_indices = @transform_4, window_bounds = array<i64: 1, 1, 18, 8>}]} {
    %c0_i32 = arith.constant 0 : i32
    %0 = arith.cmpi eq, %arg2, %c0_i32 : i32
    %1 = arith.extui %0 : i1 to i32
    %c0_i32_0 = arith.constant 0 : i32
    %2 = arith.cmpi ne, %1, %c0_i32_0 : i32
    scf.if %2 {
      %cst_173 = arith.constant 0.000000e+00 : f32
      %682 = vector.broadcast %cst_173 : f32 to vector<18x8xf32>
      %c0_174 = arith.constant 0 : index
      %c0_175 = arith.constant 0 : index
      %683 = vector.load %arg6[%c0_174, %c0_175] : memref<1x8xf32, #tpu.memory_space<vmem>>, vector<1x8xf32>
      %684 = vector.broadcast %683 : vector<1x8xf32> to vector<18x8xf32>
      %685 = arith.addf %682, %684 : vector<18x8xf32>
      %c0_176 = arith.constant 0 : index
      %c0_177 = arith.constant 0 : index
      %c0_178 = arith.constant 0 : index
      %c0_179 = arith.constant 0 : index
      %686 = vector.load %arg7[%c0_176, %c0_177, %c0_178, %c0_179] : memref<1x1x18x8xf32, #tpu.memory_space<vmem>>, vector<1x1x18x8xf32>
      %687 = vector.shape_cast %686 : vector<1x1x18x8xf32> to vector<18x8xf32>
      %688 = vector.shape_cast %685 : vector<18x8xf32> to vector<1x1x18x8xf32>
      tpu.vector_store %arg7[%c0_176, %c0_177, %c0_178, %c0_179], %688 {strides = array<i32>} : memref<1x1x18x8xf32, #tpu.memory_space<vmem>>, vector<1x1x18x8xf32>,
    } else {
    }
    %cst = arith.constant 0.000000e+00 : f32
    %3 = vector.broadcast %cst : f32 to vector<18x8xf32>
    %c0 = arith.constant 0 : index
    %c0_1 = arith.constant 0 : index
    %c0_2 = arith.constant 0 : index
    %c0_3 = arith.constant 0 : index
    %4 = vector.load %arg3[%c0, %c0_1, %c0_2, %c0_3] : memref<1x1x144x4xbf16, #tpu.memory_space<vmem>>, vector<1x1x18x4xbf16>
    %5 = vector.shape_cast %4 : vector<1x1x18x4xbf16> to vector<18x4xbf16>
    %6 = arith.index_cast %arg2 : i32 to index
    %c0_4 = arith.constant 0 : index
    %c0_5 = arith.constant 0 : index
    %c0_6 = arith.constant 0 : index
    %c0_7 = arith.constant 0 : index
    %7 = vector.load %arg4[%6, %c0_4, %c0_5, %c0_6, %c0_7] : memref<7x7x3x4x8xf32, #tpu.memory_space<vmem>>, vector<1x1x1x4x8xf32>
    %8 = vector.shape_cast %7 : vector<1x1x1x4x8xf32> to vector<4x8xf32>
    %9 = arith.extf %5 : vector<18x4xbf16> to vector<18x4xf32>
    %cst_8 = arith.constant 0.000000e+00 : f32
    %10 = vector.broadcast %cst_8 : f32 to vector<18x8xf32>
    %11 = vector.extract_strided_slice %9 {offsets = [0, 0], sizes = [18, 1], strides = [1, 1]} : vector<18x4xf32> to vector<18x1xf32>
    %12 = vector.extract_strided_slice %8 {offsets = [0, 0], sizes = [1, 8], strides = [1, 1]} : vector<4x8xf32> to vector<1x8xf32>
    %13 = vector.broadcast %11 : vector<18x1xf32> to vector<18x8xf32>
    %14 = vector.broadcast %12 : vector<1x8xf32> to vector<18x8xf32>
    %15 = arith.mulf %13, %14 : vector<18x8xf32>
    %16 = arith.addf %10, %15 : vector<18x8xf32>
    %17 = vector.extract_strided_slice %9 {offsets = [0, 1], sizes = [18, 1], strides = [1, 1]} : vector<18x4xf32> to vector<18x1xf32>
    %18 = vector.extract_strided_slice %8 {offsets = [1, 0], sizes = [1, 8], strides = [1, 1]} : vector<4x8xf32> to vector<1x8xf32>
    %19 = vector.broadcast %17 : vector<18x1xf32> to vector<18x8xf32>
    %20 = vector.broadcast %18 : vector<1x8xf32> to vector<18x8xf32>
    %21 = arith.mulf %19, %20 : vector<18x8xf32>
    %22 = arith.addf %16, %21 : vector<18x8xf32>
    %23 = vector.extract_strided_slice %9 {offsets = [0, 2], sizes = [18, 1], strides = [1, 1]} : vector<18x4xf32> to vector<18x1xf32>
    %24 = vector.extract_strided_slice %8 {offsets = [2, 0], sizes = [1, 8], strides = [1, 1]} : vector<4x8xf32> to vector<1x8xf32>
    %25 = vector.broadcast %23 : vector<18x1xf32> to vector<18x8xf32>
    %26 = vector.broadcast %24 : vector<1x8xf32> to vector<18x8xf32>
    %27 = arith.mulf %25, %26 : vector<18x8xf32>
    %28 = arith.addf %22, %27 : vector<18x8xf32>
    %29 = vector.extract_strided_slice %9 {offsets = [0, 3], sizes = [18, 1], strides = [1, 1]} : vector<18x4xf32> to vector<18x1xf32>
    %30 = vector.extract_strided_slice %8 {offsets = [3, 0], sizes = [1, 8], strides = [1, 1]} : vector<4x8xf32> to vector<1x8xf32>
    %31 = vector.broadcast %29 : vector<18x1xf32> to vector<18x8xf32>
    %32 = vector.broadcast %30 : vector<1x8xf32> to vector<18x8xf32>
    %33 = arith.mulf %31, %32 : vector<18x8xf32>
    %34 = arith.addf %28, %33 : vector<18x8xf32>
    %35 = arith.addf %3, %34 : vector<18x8xf32>
    %c0_9 = arith.constant 0 : index
    %c0_10 = arith.constant 0 : index
    %c1 = arith.constant 1 : index
    %c0_11 = arith.constant 0 : index
    %36 = vector.load %arg3[%c0_9, %c0_10, %c1, %c0_11] : memref<1x1x144x4xbf16, #tpu.memory_space<vmem>>, vector<1x1x18x4xbf16>
    %37 = vector.shape_cast %36 : vector<1x1x18x4xbf16> to vector<18x4xbf16>
    %38 = arith.index_cast %arg2 : i32 to index
    %c0_12 = arith.constant 0 : index
    %c1_13 = arith.constant 1 : index
    %c0_14 = arith.constant 0 : index
    %c0_15 = arith.constant 0 : index
    %39 = vector.load %arg4[%38, %c0_12, %c1_13, %c0_14, %c0_15] : memref<7x7x3x4x8xf32, #tpu.memory_space<vmem>>, vector<1x1x1x4x8xf32>
    %40 = vector.shape_cast %39 : vector<1x1x1x4x8xf32> to vector<4x8xf32>
    %41 = arith.extf %37 : vector<18x4xbf16> to vector<18x4xf32>
    %cst_16 = arith.constant 0.000000e+00 : f32
    %42 = vector.broadcast %cst_16 : f32 to vector<18x8xf32>
    %43 = vector.extract_strided_slice %41 {offsets = [0, 0], sizes = [18, 1], strides = [1, 1]} : vector<18x4xf32> to vector<18x1xf32>
    %44 = vector.extract_strided_slice %40 {offsets = [0, 0], sizes = [1, 8], strides = [1, 1]} : vector<4x8xf32> to vector<1x8xf32>
    %45 = vector.broadcast %43 : vector<18x1xf32> to vector<18x8xf32>
    %46 = vector.broadcast %44 : vector<1x8xf32> to vector<18x8xf32>
    %47 = arith.mulf %45, %46 : vector<18x8xf32>
    %48 = arith.addf %42, %47 : vector<18x8xf32>
    %49 = vector.extract_strided_slice %41 {offsets = [0, 1], sizes = [18, 1], strides = [1, 1]} : vector<18x4xf32> to vector<18x1xf32>
    %50 = vector.extract_strided_slice %40 {offsets = [1, 0], sizes = [1, 8], strides = [1, 1]} : vector<4x8xf32> to vector<1x8xf32>
    %51 = vector.broadcast %49 : vector<18x1xf32> to vector<18x8xf32>
    %52 = vector.broadcast %50 : vector<1x8xf32> to vector<18x8xf32>
    %53 = arith.mulf %51, %52 : vector<18x8xf32>
    %54 = arith.addf %48, %53 : vector<18x8xf32>
    %55 = vector.extract_strided_slice %41 {offsets = [0, 2], sizes = [18, 1], strides = [1, 1]} : vector<18x4xf32> to vector<18x1xf32>
    %56 = vector.extract_strided_slice %40 {offsets = [2, 0], sizes = [1, 8], strides = [1, 1]} : vector<4x8xf32> to vector<1x8xf32>
    %57 = vector.broadcast %55 : vector<18x1xf32> to vector<18x8xf32>
    %58 = vector.broadcast %56 : vector<1x8xf32> to vector<18x8xf32>
    %59 = arith.mulf %57, %58 : vector<18x8xf32>
    %60 = arith.addf %54, %59 : vector<18x8xf32>
    %61 = vector.extract_strided_slice %41 {offsets = [0, 3], sizes = [18, 1], strides = [1, 1]} : vector<18x4xf32> to vector<18x1xf32>
    %62 = vector.extract_strided_slice %40 {offsets = [3, 0], sizes = [1, 8], strides = [1, 1]} : vector<4x8xf32> to vector<1x8xf32>
    %63 = vector.broadcast %61 : vector<18x1xf32> to vector<18x8xf32>
    %64 = vector.broadcast %62 : vector<1x8xf32> to vector<18x8xf32>
    %65 = arith.mulf %63, %64 : vector<18x8xf32>
    %66 = arith.addf %60, %65 : vector<18x8xf32>
    %67 = arith.addf %35, %66 : vector<18x8xf32>
    %c0_17 = arith.constant 0 : index
    %c0_18 = arith.constant 0 : index
    %c2 = arith.constant 2 : index
    %c0_19 = arith.constant 0 : index
    %68 = vector.load %arg3[%c0_17, %c0_18, %c2, %c0_19] : memref<1x1x144x4xbf16, #tpu.memory_space<vmem>>, vector<1x1x18x4xbf16>
    %69 = vector.shape_cast %68 : vector<1x1x18x4xbf16> to vector<18x4xbf16>
    %70 = arith.index_cast %arg2 : i32 to index
    %c0_20 = arith.constant 0 : index
    %c2_21 = arith.constant 2 : index
    %c0_22 = arith.constant 0 : index
    %c0_23 = arith.constant 0 : index
    %71 = vector.load %arg4[%70, %c0_20, %c2_21, %c0_22, %c0_23] : memref<7x7x3x4x8xf32, #tpu.memory_space<vmem>>, vector<1x1x1x4x8xf32>
    %72 = vector.shape_cast %71 : vector<1x1x1x4x8xf32> to vector<4x8xf32>
    %73 = arith.extf %69 : vector<18x4xbf16> to vector<18x4xf32>
    %cst_24 = arith.constant 0.000000e+00 : f32
    %74 = vector.broadcast %cst_24 : f32 to vector<18x8xf32>
    %75 = vector.extract_strided_slice %73 {offsets = [0, 0], sizes = [18, 1], strides = [1, 1]} : vector<18x4xf32> to vector<18x1xf32>
    %76 = vector.extract_strided_slice %72 {offsets = [0, 0], sizes = [1, 8], strides = [1, 1]} : vector<4x8xf32> to vector<1x8xf32>
    %77 = vector.broadcast %75 : vector<18x1xf32> to vector<18x8xf32>
    %78 = vector.broadcast %76 : vector<1x8xf32> to vector<18x8xf32>
    %79 = arith.mulf %77, %78 : vector<18x8xf32>
    %80 = arith.addf %74, %79 : vector<18x8xf32>
    %81 = vector.extract_strided_slice %73 {offsets = [0, 1], sizes = [18, 1], strides = [1, 1]} : vector<18x4xf32> to vector<18x1xf32>
    %82 = vector.extract_strided_slice %72 {offsets = [1, 0], sizes = [1, 8], strides = [1, 1]} : vector<4x8xf32> to vector<1x8xf32>
    %83 = vector.broadcast %81 : vector<18x1xf32> to vector<18x8xf32>
    %84 = vector.broadcast %82 : vector<1x8xf32> to vector<18x8xf32>
    %85 = arith.mulf %83, %84 : vector<18x8xf32>
    %86 = arith.addf %80, %85 : vector<18x8xf32>
    %87 = vector.extract_strided_slice %73 {offsets = [0, 2], sizes = [18, 1], strides = [1, 1]} : vector<18x4xf32> to vector<18x1xf32>
    %88 = vector.extract_strided_slice %72 {offsets = [2, 0], sizes = [1, 8], strides = [1, 1]} : vector<4x8xf32> to vector<1x8xf32>
    %89 = vector.broadcast %87 : vector<18x1xf32> to vector<18x8xf32>
    %90 = vector.broadcast %88 : vector<1x8xf32> to vector<18x8xf32>
    %91 = arith.mulf %89, %90 : vector<18x8xf32>
    %92 = arith.addf %86, %91 : vector<18x8xf32>
    %93 = vector.extract_strided_slice %73 {offsets = [0, 3], sizes = [18, 1], strides = [1, 1]} : vector<18x4xf32> to vector<18x1xf32>
    %94 = vector.extract_strided_slice %72 {offsets = [3, 0], sizes = [1, 8], strides = [1, 1]} : vector<4x8xf32> to vector<1x8xf32>
    %95 = vector.broadcast %93 : vector<18x1xf32> to vector<18x8xf32>
    %96 = vector.broadcast %94 : vector<1x8xf32> to vector<18x8xf32>
    %97 = arith.mulf %95, %96 : vector<18x8xf32>
    %98 = arith.addf %92, %97 : vector<18x8xf32>
    %99 = arith.addf %67, %98 : vector<18x8xf32>
    %c0_25 = arith.constant 0 : index
    %c0_26 = arith.constant 0 : index
    %c18 = arith.constant 18 : index
    %c0_27 = arith.constant 0 : index
    %100 = vector.load %arg3[%c0_25, %c0_26, %c18, %c0_27] : memref<1x1x144x4xbf16, #tpu.memory_space<vmem>>, vector<1x1x18x4xbf16>
    %101 = vector.shape_cast %100 : vector<1x1x18x4xbf16> to vector<18x4xbf16>
    %102 = arith.index_cast %arg2 : i32 to index
    %c1_28 = arith.constant 1 : index
    %c0_29 = arith.constant 0 : index
    %c0_30 = arith.constant 0 : index
    %c0_31 = arith.constant 0 : index
    %103 = vector.load %arg4[%102, %c1_28, %c0_29, %c0_30, %c0_31] : memref<7x7x3x4x8xf32, #tpu.memory_space<vmem>>, vector<1x1x1x4x8xf32>
    %104 = vector.shape_cast %103 : vector<1x1x1x4x8xf32> to vector<4x8xf32>
    %105 = arith.extf %101 : vector<18x4xbf16> to vector<18x4xf32>
    %cst_32 = arith.constant 0.000000e+00 : f32
    %106 = vector.broadcast %cst_32 : f32 to vector<18x8xf32>
    %107 = vector.extract_strided_slice %105 {offsets = [0, 0], sizes = [18, 1], strides = [1, 1]} : vector<18x4xf32> to vector<18x1xf32>
    %108 = vector.extract_strided_slice %104 {offsets = [0, 0], sizes = [1, 8], strides = [1, 1]} : vector<4x8xf32> to vector<1x8xf32>
    %109 = vector.broadcast %107 : vector<18x1xf32> to vector<18x8xf32>
    %110 = vector.broadcast %108 : vector<1x8xf32> to vector<18x8xf32>
    %111 = arith.mulf %109, %110 : vector<18x8xf32>
    %112 = arith.addf %106, %111 : vector<18x8xf32>
    %113 = vector.extract_strided_slice %105 {offsets = [0, 1], sizes = [18, 1], strides = [1, 1]} : vector<18x4xf32> to vector<18x1xf32>
    %114 = vector.extract_strided_slice %104 {offsets = [1, 0], sizes = [1, 8], strides = [1, 1]} : vector<4x8xf32> to vector<1x8xf32>
    %115 = vector.broadcast %113 : vector<18x1xf32> to vector<18x8xf32>
    %116 = vector.broadcast %114 : vector<1x8xf32> to vector<18x8xf32>
    %117 = arith.mulf %115, %116 : vector<18x8xf32>
    %118 = arith.addf %112, %117 : vector<18x8xf32>
    %119 = vector.extract_strided_slice %105 {offsets = [0, 2], sizes = [18, 1], strides = [1, 1]} : vector<18x4xf32> to vector<18x1xf32>
    %120 = vector.extract_strided_slice %104 {offsets = [2, 0], sizes = [1, 8], strides = [1, 1]} : vector<4x8xf32> to vector<1x8xf32>
    %121 = vector.broadcast %119 : vector<18x1xf32> to vector<18x8xf32>
    %122 = vector.broadcast %120 : vector<1x8xf32> to vector<18x8xf32>
    %123 = arith.mulf %121, %122 : vector<18x8xf32>
    %124 = arith.addf %118, %123 : vector<18x8xf32>
    %125 = vector.extract_strided_slice %105 {offsets = [0, 3], sizes = [18, 1], strides = [1, 1]} : vector<18x4xf32> to vector<18x1xf32>
    %126 = vector.extract_strided_slice %104 {offsets = [3, 0], sizes = [1, 8], strides = [1, 1]} : vector<4x8xf32> to vector<1x8xf32>
    %127 = vector.broadcast %125 : vector<18x1xf32> to vector<18x8xf32>
    %128 = vector.broadcast %126 : vector<1x8xf32> to vector<18x8xf32>
    %129 = arith.mulf %127, %128 : vector<18x8xf32>
    %130 = arith.addf %124, %129 : vector<18x8xf32>
    %131 = arith.addf %99, %130 : vector<18x8xf32>
    %c0_33 = arith.constant 0 : index
    %c0_34 = arith.constant 0 : index
    %c19 = arith.constant 19 : index
    %c0_35 = arith.constant 0 : index
    %132 = vector.load %arg3[%c0_33, %c0_34, %c19, %c0_35] : memref<1x1x144x4xbf16, #tpu.memory_space<vmem>>, vector<1x1x18x4xbf16>
    %133 = vector.shape_cast %132 : vector<1x1x18x4xbf16> to vector<18x4xbf16>
    %134 = arith.index_cast %arg2 : i32 to index
    %c1_36 = arith.constant 1 : index
    %c1_37 = arith.constant 1 : index
    %c0_38 = arith.constant 0 : index
    %c0_39 = arith.constant 0 : index
    %135 = vector.load %arg4[%134, %c1_36, %c1_37, %c0_38, %c0_39] : memref<7x7x3x4x8xf32, #tpu.memory_space<vmem>>, vector<1x1x1x4x8xf32>
    %136 = vector.shape_cast %135 : vector<1x1x1x4x8xf32> to vector<4x8xf32>
    %137 = arith.extf %133 : vector<18x4xbf16> to vector<18x4xf32>
    %cst_40 = arith.constant 0.000000e+00 : f32
    %138 = vector.broadcast %cst_40 : f32 to vector<18x8xf32>
    %139 = vector.extract_strided_slice %137 {offsets = [0, 0], sizes = [18, 1], strides = [1, 1]} : vector<18x4xf32> to vector<18x1xf32>
    %140 = vector.extract_strided_slice %136 {offsets = [0, 0], sizes = [1, 8], strides = [1, 1]} : vector<4x8xf32> to vector<1x8xf32>
    %141 = vector.broadcast %139 : vector<18x1xf32> to vector<18x8xf32>
    %142 = vector.broadcast %140 : vector<1x8xf32> to vector<18x8xf32>
    %143 = arith.mulf %141, %142 : vector<18x8xf32>
    %144 = arith.addf %138, %143 : vector<18x8xf32>
    %145 = vector.extract_strided_slice %137 {offsets = [0, 1], sizes = [18, 1], strides = [1, 1]} : vector<18x4xf32> to vector<18x1xf32>
    %146 = vector.extract_strided_slice %136 {offsets = [1, 0], sizes = [1, 8], strides = [1, 1]} : vector<4x8xf32> to vector<1x8xf32>
    %147 = vector.broadcast %145 : vector<18x1xf32> to vector<18x8xf32>
    %148 = vector.broadcast %146 : vector<1x8xf32> to vector<18x8xf32>
    %149 = arith.mulf %147, %148 : vector<18x8xf32>
    %150 = arith.addf %144, %149 : vector<18x8xf32>
    %151 = vector.extract_strided_slice %137 {offsets = [0, 2], sizes = [18, 1], strides = [1, 1]} : vector<18x4xf32> to vector<18x1xf32>
    %152 = vector.extract_strided_slice %136 {offsets = [2, 0], sizes = [1, 8], strides = [1, 1]} : vector<4x8xf32> to vector<1x8xf32>
    %153 = vector.broadcast %151 : vector<18x1xf32> to vector<18x8xf32>
    %154 = vector.broadcast %152 : vector<1x8xf32> to vector<18x8xf32>
    %155 = arith.mulf %153, %154 : vector<18x8xf32>
    %156 = arith.addf %150, %155 : vector<18x8xf32>
    %157 = vector.extract_strided_slice %137 {offsets = [0, 3], sizes = [18, 1], strides = [1, 1]} : vector<18x4xf32> to vector<18x1xf32>
    %158 = vector.extract_strided_slice %136 {offsets = [3, 0], sizes = [1, 8], strides = [1, 1]} : vector<4x8xf32> to vector<1x8xf32>
    %159 = vector.broadcast %157 : vector<18x1xf32> to vector<18x8xf32>
    %160 = vector.broadcast %158 : vector<1x8xf32> to vector<18x8xf32>
    %161 = arith.mulf %159, %160 : vector<18x8xf32>
    %162 = arith.addf %156, %161 : vector<18x8xf32>
    %163 = arith.addf %131, %162 : vector<18x8xf32>
    %c0_41 = arith.constant 0 : index
    %c0_42 = arith.constant 0 : index
    %c20 = arith.constant 20 : index
    %c0_43 = arith.constant 0 : index
    %164 = vector.load %arg3[%c0_41, %c0_42, %c20, %c0_43] : memref<1x1x144x4xbf16, #tpu.memory_space<vmem>>, vector<1x1x18x4xbf16>
    %165 = vector.shape_cast %164 : vector<1x1x18x4xbf16> to vector<18x4xbf16>
    %166 = arith.index_cast %arg2 : i32 to index
    %c1_44 = arith.constant 1 : index
    %c2_45 = arith.constant 2 : index
    %c0_46 = arith.constant 0 : index
    %c0_47 = arith.constant 0 : index
    %167 = vector.load %arg4[%166, %c1_44, %c2_45, %c0_46, %c0_47] : memref<7x7x3x4x8xf32, #tpu.memory_space<vmem>>, vector<1x1x1x4x8xf32>
    %168 = vector.shape_cast %167 : vector<1x1x1x4x8xf32> to vector<4x8xf32>
    %169 = arith.extf %165 : vector<18x4xbf16> to vector<18x4xf32>
    %cst_48 = arith.constant 0.000000e+00 : f32
    %170 = vector.broadcast %cst_48 : f32 to vector<18x8xf32>
    %171 = vector.extract_strided_slice %169 {offsets = [0, 0], sizes = [18, 1], strides = [1, 1]} : vector<18x4xf32> to vector<18x1xf32>
    %172 = vector.extract_strided_slice %168 {offsets = [0, 0], sizes = [1, 8], strides = [1, 1]} : vector<4x8xf32> to vector<1x8xf32>
    %173 = vector.broadcast %171 : vector<18x1xf32> to vector<18x8xf32>
    %174 = vector.broadcast %172 : vector<1x8xf32> to vector<18x8xf32>
    %175 = arith.mulf %173, %174 : vector<18x8xf32>
    %176 = arith.addf %170, %175 : vector<18x8xf32>
    %177 = vector.extract_strided_slice %169 {offsets = [0, 1], sizes = [18, 1], strides = [1, 1]} : vector<18x4xf32> to vector<18x1xf32>
    %178 = vector.extract_strided_slice %168 {offsets = [1, 0], sizes = [1, 8], strides = [1, 1]} : vector<4x8xf32> to vector<1x8xf32>
    %179 = vector.broadcast %177 : vector<18x1xf32> to vector<18x8xf32>
    %180 = vector.broadcast %178 : vector<1x8xf32> to vector<18x8xf32>
    %181 = arith.mulf %179, %180 : vector<18x8xf32>
    %182 = arith.addf %176, %181 : vector<18x8xf32>
    %183 = vector.extract_strided_slice %169 {offsets = [0, 2], sizes = [18, 1], strides = [1, 1]} : vector<18x4xf32> to vector<18x1xf32>
    %184 = vector.extract_strided_slice %168 {offsets = [2, 0], sizes = [1, 8], strides = [1, 1]} : vector<4x8xf32> to vector<1x8xf32>
    %185 = vector.broadcast %183 : vector<18x1xf32> to vector<18x8xf32>
    %186 = vector.broadcast %184 : vector<1x8xf32> to vector<18x8xf32>
    %187 = arith.mulf %185, %186 : vector<18x8xf32>
    %188 = arith.addf %182, %187 : vector<18x8xf32>
    %189 = vector.extract_strided_slice %169 {offsets = [0, 3], sizes = [18, 1], strides = [1, 1]} : vector<18x4xf32> to vector<18x1xf32>
    %190 = vector.extract_strided_slice %168 {offsets = [3, 0], sizes = [1, 8], strides = [1, 1]} : vector<4x8xf32> to vector<1x8xf32>
    %191 = vector.broadcast %189 : vector<18x1xf32> to vector<18x8xf32>
    %192 = vector.broadcast %190 : vector<1x8xf32> to vector<18x8xf32>
    %193 = arith.mulf %191, %192 : vector<18x8xf32>
    %194 = arith.addf %188, %193 : vector<18x8xf32>
    %195 = arith.addf %163, %194 : vector<18x8xf32>
    %c0_49 = arith.constant 0 : index
    %c0_50 = arith.constant 0 : index
    %c36 = arith.constant 36 : index
    %c0_51 = arith.constant 0 : index
    %196 = vector.load %arg3[%c0_49, %c0_50, %c36, %c0_51] : memref<1x1x144x4xbf16, #tpu.memory_space<vmem>>, vector<1x1x18x4xbf16>
    %197 = vector.shape_cast %196 : vector<1x1x18x4xbf16> to vector<18x4xbf16>
    %198 = arith.index_cast %arg2 : i32 to index
    %c2_52 = arith.constant 2 : index
    %c0_53 = arith.constant 0 : index
    %c0_54 = arith.constant 0 : index
    %c0_55 = arith.constant 0 : index
    %199 = vector.load %arg4[%198, %c2_52, %c0_53, %c0_54, %c0_55] : memref<7x7x3x4x8xf32, #tpu.memory_space<vmem>>, vector<1x1x1x4x8xf32>
    %200 = vector.shape_cast %199 : vector<1x1x1x4x8xf32> to vector<4x8xf32>
    %201 = arith.extf %197 : vector<18x4xbf16> to vector<18x4xf32>
    %cst_56 = arith.constant 0.000000e+00 : f32
    %202 = vector.broadcast %cst_56 : f32 to vector<18x8xf32>
    %203 = vector.extract_strided_slice %201 {offsets = [0, 0], sizes = [18, 1], strides = [1, 1]} : vector<18x4xf32> to vector<18x1xf32>
    %204 = vector.extract_strided_slice %200 {offsets = [0, 0], sizes = [1, 8], strides = [1, 1]} : vector<4x8xf32> to vector<1x8xf32>
    %205 = vector.broadcast %203 : vector<18x1xf32> to vector<18x8xf32>
    %206 = vector.broadcast %204 : vector<1x8xf32> to vector<18x8xf32>
    %207 = arith.mulf %205, %206 : vector<18x8xf32>
    %208 = arith.addf %202, %207 : vector<18x8xf32>
    %209 = vector.extract_strided_slice %201 {offsets = [0, 1], sizes = [18, 1], strides = [1, 1]} : vector<18x4xf32> to vector<18x1xf32>
    %210 = vector.extract_strided_slice %200 {offsets = [1, 0], sizes = [1, 8], strides = [1, 1]} : vector<4x8xf32> to vector<1x8xf32>
    %211 = vector.broadcast %209 : vector<18x1xf32> to vector<18x8xf32>
    %212 = vector.broadcast %210 : vector<1x8xf32> to vector<18x8xf32>
    %213 = arith.mulf %211, %212 : vector<18x8xf32>
    %214 = arith.addf %208, %213 : vector<18x8xf32>
    %215 = vector.extract_strided_slice %201 {offsets = [0, 2], sizes = [18, 1], strides = [1, 1]} : vector<18x4xf32> to vector<18x1xf32>
    %216 = vector.extract_strided_slice %200 {offsets = [2, 0], sizes = [1, 8], strides = [1, 1]} : vector<4x8xf32> to vector<1x8xf32>
    %217 = vector.broadcast %215 : vector<18x1xf32> to vector<18x8xf32>
    %218 = vector.broadcast %216 : vector<1x8xf32> to vector<18x8xf32>
    %219 = arith.mulf %217, %218 : vector<18x8xf32>
    %220 = arith.addf %214, %219 : vector<18x8xf32>
    %221 = vector.extract_strided_slice %201 {offsets = [0, 3], sizes = [18, 1], strides = [1, 1]} : vector<18x4xf32> to vector<18x1xf32>
    %222 = vector.extract_strided_slice %200 {offsets = [3, 0], sizes = [1, 8], strides = [1, 1]} : vector<4x8xf32> to vector<1x8xf32>
    %223 = vector.broadcast %221 : vector<18x1xf32> to vector<18x8xf32>
    %224 = vector.broadcast %222 : vector<1x8xf32> to vector<18x8xf32>
    %225 = arith.mulf %223, %224 : vector<18x8xf32>
    %226 = arith.addf %220, %225 : vector<18x8xf32>
    %227 = arith.addf %195, %226 : vector<18x8xf32>
    %c0_57 = arith.constant 0 : index
    %c0_58 = arith.constant 0 : index
    %c37 = arith.constant 37 : index
    %c0_59 = arith.constant 0 : index
    %228 = vector.load %arg3[%c0_57, %c0_58, %c37, %c0_59] : memref<1x1x144x4xbf16, #tpu.memory_space<vmem>>, vector<1x1x18x4xbf16>
    %229 = vector.shape_cast %228 : vector<1x1x18x4xbf16> to vector<18x4xbf16>
    %230 = arith.index_cast %arg2 : i32 to index
    %c2_60 = arith.constant 2 : index
    %c1_61 = arith.constant 1 : index
    %c0_62 = arith.constant 0 : index
    %c0_63 = arith.constant 0 : index
    %231 = vector.load %arg4[%230, %c2_60, %c1_61, %c0_62, %c0_63] : memref<7x7x3x4x8xf32, #tpu.memory_space<vmem>>, vector<1x1x1x4x8xf32>
    %232 = vector.shape_cast %231 : vector<1x1x1x4x8xf32> to vector<4x8xf32>
    %233 = arith.extf %229 : vector<18x4xbf16> to vector<18x4xf32>
    %cst_64 = arith.constant 0.000000e+00 : f32
    %234 = vector.broadcast %cst_64 : f32 to vector<18x8xf32>
    %235 = vector.extract_strided_slice %233 {offsets = [0, 0], sizes = [18, 1], strides = [1, 1]} : vector<18x4xf32> to vector<18x1xf32>
    %236 = vector.extract_strided_slice %232 {offsets = [0, 0], sizes = [1, 8], strides = [1, 1]} : vector<4x8xf32> to vector<1x8xf32>
    %237 = vector.broadcast %235 : vector<18x1xf32> to vector<18x8xf32>
    %238 = vector.broadcast %236 : vector<1x8xf32> to vector<18x8xf32>
    %239 = arith.mulf %237, %238 : vector<18x8xf32>
    %240 = arith.addf %234, %239 : vector<18x8xf32>
    %241 = vector.extract_strided_slice %233 {offsets = [0, 1], sizes = [18, 1], strides = [1, 1]} : vector<18x4xf32> to vector<18x1xf32>
    %242 = vector.extract_strided_slice %232 {offsets = [1, 0], sizes = [1, 8], strides = [1, 1]} : vector<4x8xf32> to vector<1x8xf32>
    %243 = vector.broadcast %241 : vector<18x1xf32> to vector<18x8xf32>
    %244 = vector.broadcast %242 : vector<1x8xf32> to vector<18x8xf32>
    %245 = arith.mulf %243, %244 : vector<18x8xf32>
    %246 = arith.addf %240, %245 : vector<18x8xf32>
    %247 = vector.extract_strided_slice %233 {offsets = [0, 2], sizes = [18, 1], strides = [1, 1]} : vector<18x4xf32> to vector<18x1xf32>
    %248 = vector.extract_strided_slice %232 {offsets = [2, 0], sizes = [1, 8], strides = [1, 1]} : vector<4x8xf32> to vector<1x8xf32>
    %249 = vector.broadcast %247 : vector<18x1xf32> to vector<18x8xf32>
    %250 = vector.broadcast %248 : vector<1x8xf32> to vector<18x8xf32>
    %251 = arith.mulf %249, %250 : vector<18x8xf32>
    %252 = arith.addf %246, %251 : vector<18x8xf32>
    %253 = vector.extract_strided_slice %233 {offsets = [0, 3], sizes = [18, 1], strides = [1, 1]} : vector<18x4xf32> to vector<18x1xf32>
    %254 = vector.extract_strided_slice %232 {offsets = [3, 0], sizes = [1, 8], strides = [1, 1]} : vector<4x8xf32> to vector<1x8xf32>
    %255 = vector.broadcast %253 : vector<18x1xf32> to vector<18x8xf32>
    %256 = vector.broadcast %254 : vector<1x8xf32> to vector<18x8xf32>
    %257 = arith.mulf %255, %256 : vector<18x8xf32>
    %258 = arith.addf %252, %257 : vector<18x8xf32>
    %259 = arith.addf %227, %258 : vector<18x8xf32>
    %c0_65 = arith.constant 0 : index
    %c0_66 = arith.constant 0 : index
    %c38 = arith.constant 38 : index
    %c0_67 = arith.constant 0 : index
    %260 = vector.load %arg3[%c0_65, %c0_66, %c38, %c0_67] : memref<1x1x144x4xbf16, #tpu.memory_space<vmem>>, vector<1x1x18x4xbf16>
    %261 = vector.shape_cast %260 : vector<1x1x18x4xbf16> to vector<18x4xbf16>
    %262 = arith.index_cast %arg2 : i32 to index
    %c2_68 = arith.constant 2 : index
    %c2_69 = arith.constant 2 : index
    %c0_70 = arith.constant 0 : index
    %c0_71 = arith.constant 0 : index
    %263 = vector.load %arg4[%262, %c2_68, %c2_69, %c0_70, %c0_71] : memref<7x7x3x4x8xf32, #tpu.memory_space<vmem>>, vector<1x1x1x4x8xf32>
    %264 = vector.shape_cast %263 : vector<1x1x1x4x8xf32> to vector<4x8xf32>
    %265 = arith.extf %261 : vector<18x4xbf16> to vector<18x4xf32>
    %cst_72 = arith.constant 0.000000e+00 : f32
    %266 = vector.broadcast %cst_72 : f32 to vector<18x8xf32>
    %267 = vector.extract_strided_slice %265 {offsets = [0, 0], sizes = [18, 1], strides = [1, 1]} : vector<18x4xf32> to vector<18x1xf32>
    %268 = vector.extract_strided_slice %264 {offsets = [0, 0], sizes = [1, 8], strides = [1, 1]} : vector<4x8xf32> to vector<1x8xf32>
    %269 = vector.broadcast %267 : vector<18x1xf32> to vector<18x8xf32>
    %270 = vector.broadcast %268 : vector<1x8xf32> to vector<18x8xf32>
    %271 = arith.mulf %269, %270 : vector<18x8xf32>
    %272 = arith.addf %266, %271 : vector<18x8xf32>
    %273 = vector.extract_strided_slice %265 {offsets = [0, 1], sizes = [18, 1], strides = [1, 1]} : vector<18x4xf32> to vector<18x1xf32>
    %274 = vector.extract_strided_slice %264 {offsets = [1, 0], sizes = [1, 8], strides = [1, 1]} : vector<4x8xf32> to vector<1x8xf32>
    %275 = vector.broadcast %273 : vector<18x1xf32> to vector<18x8xf32>
    %276 = vector.broadcast %274 : vector<1x8xf32> to vector<18x8xf32>
    %277 = arith.mulf %275, %276 : vector<18x8xf32>
    %278 = arith.addf %272, %277 : vector<18x8xf32>
    %279 = vector.extract_strided_slice %265 {offsets = [0, 2], sizes = [18, 1], strides = [1, 1]} : vector<18x4xf32> to vector<18x1xf32>
    %280 = vector.extract_strided_slice %264 {offsets = [2, 0], sizes = [1, 8], strides = [1, 1]} : vector<4x8xf32> to vector<1x8xf32>
    %281 = vector.broadcast %279 : vector<18x1xf32> to vector<18x8xf32>
    %282 = vector.broadcast %280 : vector<1x8xf32> to vector<18x8xf32>
    %283 = arith.mulf %281, %282 : vector<18x8xf32>
    %284 = arith.addf %278, %283 : vector<18x8xf32>
    %285 = vector.extract_strided_slice %265 {offsets = [0, 3], sizes = [18, 1], strides = [1, 1]} : vector<18x4xf32> to vector<18x1xf32>
    %286 = vector.extract_strided_slice %264 {offsets = [3, 0], sizes = [1, 8], strides = [1, 1]} : vector<4x8xf32> to vector<1x8xf32>
    %287 = vector.broadcast %285 : vector<18x1xf32> to vector<18x8xf32>
    %288 = vector.broadcast %286 : vector<1x8xf32> to vector<18x8xf32>
    %289 = arith.mulf %287, %288 : vector<18x8xf32>
    %290 = arith.addf %284, %289 : vector<18x8xf32>
    %291 = arith.addf %259, %290 : vector<18x8xf32>
    %c0_73 = arith.constant 0 : index
    %c0_74 = arith.constant 0 : index
    %c54 = arith.constant 54 : index
    %c0_75 = arith.constant 0 : index
    %292 = vector.load %arg3[%c0_73, %c0_74, %c54, %c0_75] : memref<1x1x144x4xbf16, #tpu.memory_space<vmem>>, vector<1x1x18x4xbf16>
    %293 = vector.shape_cast %292 : vector<1x1x18x4xbf16> to vector<18x4xbf16>
    %294 = arith.index_cast %arg2 : i32 to index
    %c3 = arith.constant 3 : index
    %c0_76 = arith.constant 0 : index
    %c0_77 = arith.constant 0 : index
    %c0_78 = arith.constant 0 : index
    %295 = vector.load %arg4[%294, %c3, %c0_76, %c0_77, %c0_78] : memref<7x7x3x4x8xf32, #tpu.memory_space<vmem>>, vector<1x1x1x4x8xf32>
    %296 = vector.shape_cast %295 : vector<1x1x1x4x8xf32> to vector<4x8xf32>
    %297 = arith.extf %293 : vector<18x4xbf16> to vector<18x4xf32>
    %cst_79 = arith.constant 0.000000e+00 : f32
    %298 = vector.broadcast %cst_79 : f32 to vector<18x8xf32>
    %299 = vector.extract_strided_slice %297 {offsets = [0, 0], sizes = [18, 1], strides = [1, 1]} : vector<18x4xf32> to vector<18x1xf32>
    %300 = vector.extract_strided_slice %296 {offsets = [0, 0], sizes = [1, 8], strides = [1, 1]} : vector<4x8xf32> to vector<1x8xf32>
    %301 = vector.broadcast %299 : vector<18x1xf32> to vector<18x8xf32>
    %302 = vector.broadcast %300 : vector<1x8xf32> to vector<18x8xf32>
    %303 = arith.mulf %301, %302 : vector<18x8xf32>
    %304 = arith.addf %298, %303 : vector<18x8xf32>
    %305 = vector.extract_strided_slice %297 {offsets = [0, 1], sizes = [18, 1], strides = [1, 1]} : vector<18x4xf32> to vector<18x1xf32>
    %306 = vector.extract_strided_slice %296 {offsets = [1, 0], sizes = [1, 8], strides = [1, 1]} : vector<4x8xf32> to vector<1x8xf32>
    %307 = vector.broadcast %305 : vector<18x1xf32> to vector<18x8xf32>
    %308 = vector.broadcast %306 : vector<1x8xf32> to vector<18x8xf32>
    %309 = arith.mulf %307, %308 : vector<18x8xf32>
    %310 = arith.addf %304, %309 : vector<18x8xf32>
    %311 = vector.extract_strided_slice %297 {offsets = [0, 2], sizes = [18, 1], strides = [1, 1]} : vector<18x4xf32> to vector<18x1xf32>
    %312 = vector.extract_strided_slice %296 {offsets = [2, 0], sizes = [1, 8], strides = [1, 1]} : vector<4x8xf32> to vector<1x8xf32>
    %313 = vector.broadcast %311 : vector<18x1xf32> to vector<18x8xf32>
    %314 = vector.broadcast %312 : vector<1x8xf32> to vector<18x8xf32>
    %315 = arith.mulf %313, %314 : vector<18x8xf32>
    %316 = arith.addf %310, %315 : vector<18x8xf32>
    %317 = vector.extract_strided_slice %297 {offsets = [0, 3], sizes = [18, 1], strides = [1, 1]} : vector<18x4xf32> to vector<18x1xf32>
    %318 = vector.extract_strided_slice %296 {offsets = [3, 0], sizes = [1, 8], strides = [1, 1]} : vector<4x8xf32> to vector<1x8xf32>
    %319 = vector.broadcast %317 : vector<18x1xf32> to vector<18x8xf32>
    %320 = vector.broadcast %318 : vector<1x8xf32> to vector<18x8xf32>
    %321 = arith.mulf %319, %320 : vector<18x8xf32>
    %322 = arith.addf %316, %321 : vector<18x8xf32>
    %323 = arith.addf %291, %322 : vector<18x8xf32>
    %c0_80 = arith.constant 0 : index
    %c0_81 = arith.constant 0 : index
    %c55 = arith.constant 55 : index
    %c0_82 = arith.constant 0 : index
    %324 = vector.load %arg3[%c0_80, %c0_81, %c55, %c0_82] : memref<1x1x144x4xbf16, #tpu.memory_space<vmem>>, vector<1x1x18x4xbf16>
    %325 = vector.shape_cast %324 : vector<1x1x18x4xbf16> to vector<18x4xbf16>
    %326 = arith.index_cast %arg2 : i32 to index
    %c3_83 = arith.constant 3 : index
    %c1_84 = arith.constant 1 : index
    %c0_85 = arith.constant 0 : index
    %c0_86 = arith.constant 0 : index
    %327 = vector.load %arg4[%326, %c3_83, %c1_84, %c0_85, %c0_86] : memref<7x7x3x4x8xf32, #tpu.memory_space<vmem>>, vector<1x1x1x4x8xf32>
    %328 = vector.shape_cast %327 : vector<1x1x1x4x8xf32> to vector<4x8xf32>
    %329 = arith.extf %325 : vector<18x4xbf16> to vector<18x4xf32>
    %cst_87 = arith.constant 0.000000e+00 : f32
    %330 = vector.broadcast %cst_87 : f32 to vector<18x8xf32>
    %331 = vector.extract_strided_slice %329 {offsets = [0, 0], sizes = [18, 1], strides = [1, 1]} : vector<18x4xf32> to vector<18x1xf32>
    %332 = vector.extract_strided_slice %328 {offsets = [0, 0], sizes = [1, 8], strides = [1, 1]} : vector<4x8xf32> to vector<1x8xf32>
    %333 = vector.broadcast %331 : vector<18x1xf32> to vector<18x8xf32>
    %334 = vector.broadcast %332 : vector<1x8xf32> to vector<18x8xf32>
    %335 = arith.mulf %333, %334 : vector<18x8xf32>
    %336 = arith.addf %330, %335 : vector<18x8xf32>
    %337 = vector.extract_strided_slice %329 {offsets = [0, 1], sizes = [18, 1], strides = [1, 1]} : vector<18x4xf32> to vector<18x1xf32>
    %338 = vector.extract_strided_slice %328 {offsets = [1, 0], sizes = [1, 8], strides = [1, 1]} : vector<4x8xf32> to vector<1x8xf32>
    %339 = vector.broadcast %337 : vector<18x1xf32> to vector<18x8xf32>
    %340 = vector.broadcast %338 : vector<1x8xf32> to vector<18x8xf32>
    %341 = arith.mulf %339, %340 : vector<18x8xf32>
    %342 = arith.addf %336, %341 : vector<18x8xf32>
    %343 = vector.extract_strided_slice %329 {offsets = [0, 2], sizes = [18, 1], strides = [1, 1]} : vector<18x4xf32> to vector<18x1xf32>
    %344 = vector.extract_strided_slice %328 {offsets = [2, 0], sizes = [1, 8], strides = [1, 1]} : vector<4x8xf32> to vector<1x8xf32>
    %345 = vector.broadcast %343 : vector<18x1xf32> to vector<18x8xf32>
    %346 = vector.broadcast %344 : vector<1x8xf32> to vector<18x8xf32>
    %347 = arith.mulf %345, %346 : vector<18x8xf32>
    %348 = arith.addf %342, %347 : vector<18x8xf32>
    %349 = vector.extract_strided_slice %329 {offsets = [0, 3], sizes = [18, 1], strides = [1, 1]} : vector<18x4xf32> to vector<18x1xf32>
    %350 = vector.extract_strided_slice %328 {offsets = [3, 0], sizes = [1, 8], strides = [1, 1]} : vector<4x8xf32> to vector<1x8xf32>
    %351 = vector.broadcast %349 : vector<18x1xf32> to vector<18x8xf32>
    %352 = vector.broadcast %350 : vector<1x8xf32> to vector<18x8xf32>
    %353 = arith.mulf %351, %352 : vector<18x8xf32>
    %354 = arith.addf %348, %353 : vector<18x8xf32>
    %355 = arith.addf %323, %354 : vector<18x8xf32>
    %c0_88 = arith.constant 0 : index
    %c0_89 = arith.constant 0 : index
    %c56 = arith.constant 56 : index
    %c0_90 = arith.constant 0 : index
    %356 = vector.load %arg3[%c0_88, %c0_89, %c56, %c0_90] : memref<1x1x144x4xbf16, #tpu.memory_space<vmem>>, vector<1x1x18x4xbf16>
    %357 = vector.shape_cast %356 : vector<1x1x18x4xbf16> to vector<18x4xbf16>
    %358 = arith.index_cast %arg2 : i32 to index
    %c3_91 = arith.constant 3 : index
    %c2_92 = arith.constant 2 : index
    %c0_93 = arith.constant 0 : index
    %c0_94 = arith.constant 0 : index
    %359 = vector.load %arg4[%358, %c3_91, %c2_92, %c0_93, %c0_94] : memref<7x7x3x4x8xf32, #tpu.memory_space<vmem>>, vector<1x1x1x4x8xf32>
    %360 = vector.shape_cast %359 : vector<1x1x1x4x8xf32> to vector<4x8xf32>
    %361 = arith.extf %357 : vector<18x4xbf16> to vector<18x4xf32>
    %cst_95 = arith.constant 0.000000e+00 : f32
    %362 = vector.broadcast %cst_95 : f32 to vector<18x8xf32>
    %363 = vector.extract_strided_slice %361 {offsets = [0, 0], sizes = [18, 1], strides = [1, 1]} : vector<18x4xf32> to vector<18x1xf32>
    %364 = vector.extract_strided_slice %360 {offsets = [0, 0], sizes = [1, 8], strides = [1, 1]} : vector<4x8xf32> to vector<1x8xf32>
    %365 = vector.broadcast %363 : vector<18x1xf32> to vector<18x8xf32>
    %366 = vector.broadcast %364 : vector<1x8xf32> to vector<18x8xf32>
    %367 = arith.mulf %365, %366 : vector<18x8xf32>
    %368 = arith.addf %362, %367 : vector<18x8xf32>
    %369 = vector.extract_strided_slice %361 {offsets = [0, 1], sizes = [18, 1], strides = [1, 1]} : vector<18x4xf32> to vector<18x1xf32>
    %370 = vector.extract_strided_slice %360 {offsets = [1, 0], sizes = [1, 8], strides = [1, 1]} : vector<4x8xf32> to vector<1x8xf32>
    %371 = vector.broadcast %369 : vector<18x1xf32> to vector<18x8xf32>
    %372 = vector.broadcast %370 : vector<1x8xf32> to vector<18x8xf32>
    %373 = arith.mulf %371, %372 : vector<18x8xf32>
    %374 = arith.addf %368, %373 : vector<18x8xf32>
    %375 = vector.extract_strided_slice %361 {offsets = [0, 2], sizes = [18, 1], strides = [1, 1]} : vector<18x4xf32> to vector<18x1xf32>
    %376 = vector.extract_strided_slice %360 {offsets = [2, 0], sizes = [1, 8], strides = [1, 1]} : vector<4x8xf32> to vector<1x8xf32>
    %377 = vector.broadcast %375 : vector<18x1xf32> to vector<18x8xf32>
    %378 = vector.broadcast %376 : vector<1x8xf32> to vector<18x8xf32>
    %379 = arith.mulf %377, %378 : vector<18x8xf32>
    %380 = arith.addf %374, %379 : vector<18x8xf32>
    %381 = vector.extract_strided_slice %361 {offsets = [0, 3], sizes = [18, 1], strides = [1, 1]} : vector<18x4xf32> to vector<18x1xf32>
    %382 = vector.extract_strided_slice %360 {offsets = [3, 0], sizes = [1, 8], strides = [1, 1]} : vector<4x8xf32> to vector<1x8xf32>
    %383 = vector.broadcast %381 : vector<18x1xf32> to vector<18x8xf32>
    %384 = vector.broadcast %382 : vector<1x8xf32> to vector<18x8xf32>
    %385 = arith.mulf %383, %384 : vector<18x8xf32>
    %386 = arith.addf %380, %385 : vector<18x8xf32>
    %387 = arith.addf %355, %386 : vector<18x8xf32>
    %c0_96 = arith.constant 0 : index
    %c0_97 = arith.constant 0 : index
    %c72 = arith.constant 72 : index
    %c0_98 = arith.constant 0 : index
    %388 = vector.load %arg3[%c0_96, %c0_97, %c72, %c0_98] : memref<1x1x144x4xbf16, #tpu.memory_space<vmem>>, vector<1x1x18x4xbf16>
    %389 = vector.shape_cast %388 : vector<1x1x18x4xbf16> to vector<18x4xbf16>
    %390 = arith.index_cast %arg2 : i32 to index
    %c4 = arith.constant 4 : index
    %c0_99 = arith.constant 0 : index
    %c0_100 = arith.constant 0 : index
    %c0_101 = arith.constant 0 : index
    %391 = vector.load %arg4[%390, %c4, %c0_99, %c0_100, %c0_101] : memref<7x7x3x4x8xf32, #tpu.memory_space<vmem>>, vector<1x1x1x4x8xf32>
    %392 = vector.shape_cast %391 : vector<1x1x1x4x8xf32> to vector<4x8xf32>
    %393 = arith.extf %389 : vector<18x4xbf16> to vector<18x4xf32>
    %cst_102 = arith.constant 0.000000e+00 : f32
    %394 = vector.broadcast %cst_102 : f32 to vector<18x8xf32>
    %395 = vector.extract_strided_slice %393 {offsets = [0, 0], sizes = [18, 1], strides = [1, 1]} : vector<18x4xf32> to vector<18x1xf32>
    %396 = vector.extract_strided_slice %392 {offsets = [0, 0], sizes = [1, 8], strides = [1, 1]} : vector<4x8xf32> to vector<1x8xf32>
    %397 = vector.broadcast %395 : vector<18x1xf32> to vector<18x8xf32>
    %398 = vector.broadcast %396 : vector<1x8xf32> to vector<18x8xf32>
    %399 = arith.mulf %397, %398 : vector<18x8xf32>
    %400 = arith.addf %394, %399 : vector<18x8xf32>
    %401 = vector.extract_strided_slice %393 {offsets = [0, 1], sizes = [18, 1], strides = [1, 1]} : vector<18x4xf32> to vector<18x1xf32>
    %402 = vector.extract_strided_slice %392 {offsets = [1, 0], sizes = [1, 8], strides = [1, 1]} : vector<4x8xf32> to vector<1x8xf32>
    %403 = vector.broadcast %401 : vector<18x1xf32> to vector<18x8xf32>
    %404 = vector.broadcast %402 : vector<1x8xf32> to vector<18x8xf32>
    %405 = arith.mulf %403, %404 : vector<18x8xf32>
    %406 = arith.addf %400, %405 : vector<18x8xf32>
    %407 = vector.extract_strided_slice %393 {offsets = [0, 2], sizes = [18, 1], strides = [1, 1]} : vector<18x4xf32> to vector<18x1xf32>
    %408 = vector.extract_strided_slice %392 {offsets = [2, 0], sizes = [1, 8], strides = [1, 1]} : vector<4x8xf32> to vector<1x8xf32>
    %409 = vector.broadcast %407 : vector<18x1xf32> to vector<18x8xf32>
    %410 = vector.broadcast %408 : vector<1x8xf32> to vector<18x8xf32>
    %411 = arith.mulf %409, %410 : vector<18x8xf32>
    %412 = arith.addf %406, %411 : vector<18x8xf32>
    %413 = vector.extract_strided_slice %393 {offsets = [0, 3], sizes = [18, 1], strides = [1, 1]} : vector<18x4xf32> to vector<18x1xf32>
    %414 = vector.extract_strided_slice %392 {offsets = [3, 0], sizes = [1, 8], strides = [1, 1]} : vector<4x8xf32> to vector<1x8xf32>
    %415 = vector.broadcast %413 : vector<18x1xf32> to vector<18x8xf32>
    %416 = vector.broadcast %414 : vector<1x8xf32> to vector<18x8xf32>
    %417 = arith.mulf %415, %416 : vector<18x8xf32>
    %418 = arith.addf %412, %417 : vector<18x8xf32>
    %419 = arith.addf %387, %418 : vector<18x8xf32>
    %c0_103 = arith.constant 0 : index
    %c0_104 = arith.constant 0 : index
    %c73 = arith.constant 73 : index
    %c0_105 = arith.constant 0 : index
    %420 = vector.load %arg3[%c0_103, %c0_104, %c73, %c0_105] : memref<1x1x144x4xbf16, #tpu.memory_space<vmem>>, vector<1x1x18x4xbf16>
    %421 = vector.shape_cast %420 : vector<1x1x18x4xbf16> to vector<18x4xbf16>
    %422 = arith.index_cast %arg2 : i32 to index
    %c4_106 = arith.constant 4 : index
    %c1_107 = arith.constant 1 : index
    %c0_108 = arith.constant 0 : index
    %c0_109 = arith.constant 0 : index
    %423 = vector.load %arg4[%422, %c4_106, %c1_107, %c0_108, %c0_109] : memref<7x7x3x4x8xf32, #tpu.memory_space<vmem>>, vector<1x1x1x4x8xf32>
    %424 = vector.shape_cast %423 : vector<1x1x1x4x8xf32> to vector<4x8xf32>
    %425 = arith.extf %421 : vector<18x4xbf16> to vector<18x4xf32>
    %cst_110 = arith.constant 0.000000e+00 : f32
    %426 = vector.broadcast %cst_110 : f32 to vector<18x8xf32>
    %427 = vector.extract_strided_slice %425 {offsets = [0, 0], sizes = [18, 1], strides = [1, 1]} : vector<18x4xf32> to vector<18x1xf32>
    %428 = vector.extract_strided_slice %424 {offsets = [0, 0], sizes = [1, 8], strides = [1, 1]} : vector<4x8xf32> to vector<1x8xf32>
    %429 = vector.broadcast %427 : vector<18x1xf32> to vector<18x8xf32>
    %430 = vector.broadcast %428 : vector<1x8xf32> to vector<18x8xf32>
    %431 = arith.mulf %429, %430 : vector<18x8xf32>
    %432 = arith.addf %426, %431 : vector<18x8xf32>
    %433 = vector.extract_strided_slice %425 {offsets = [0, 1], sizes = [18, 1], strides = [1, 1]} : vector<18x4xf32> to vector<18x1xf32>
    %434 = vector.extract_strided_slice %424 {offsets = [1, 0], sizes = [1, 8], strides = [1, 1]} : vector<4x8xf32> to vector<1x8xf32>
    %435 = vector.broadcast %433 : vector<18x1xf32> to vector<18x8xf32>
    %436 = vector.broadcast %434 : vector<1x8xf32> to vector<18x8xf32>
    %437 = arith.mulf %435, %436 : vector<18x8xf32>
    %438 = arith.addf %432, %437 : vector<18x8xf32>
    %439 = vector.extract_strided_slice %425 {offsets = [0, 2], sizes = [18, 1], strides = [1, 1]} : vector<18x4xf32> to vector<18x1xf32>
    %440 = vector.extract_strided_slice %424 {offsets = [2, 0], sizes = [1, 8], strides = [1, 1]} : vector<4x8xf32> to vector<1x8xf32>
    %441 = vector.broadcast %439 : vector<18x1xf32> to vector<18x8xf32>
    %442 = vector.broadcast %440 : vector<1x8xf32> to vector<18x8xf32>
    %443 = arith.mulf %441, %442 : vector<18x8xf32>
    %444 = arith.addf %438, %443 : vector<18x8xf32>
    %445 = vector.extract_strided_slice %425 {offsets = [0, 3], sizes = [18, 1], strides = [1, 1]} : vector<18x4xf32> to vector<18x1xf32>
    %446 = vector.extract_strided_slice %424 {offsets = [3, 0], sizes = [1, 8], strides = [1, 1]} : vector<4x8xf32> to vector<1x8xf32>
    %447 = vector.broadcast %445 : vector<18x1xf32> to vector<18x8xf32>
    %448 = vector.broadcast %446 : vector<1x8xf32> to vector<18x8xf32>
    %449 = arith.mulf %447, %448 : vector<18x8xf32>
    %450 = arith.addf %444, %449 : vector<18x8xf32>
    %451 = arith.addf %419, %450 : vector<18x8xf32>
    %c0_111 = arith.constant 0 : index
    %c0_112 = arith.constant 0 : index
    %c74 = arith.constant 74 : index
    %c0_113 = arith.constant 0 : index
    %452 = vector.load %arg3[%c0_111, %c0_112, %c74, %c0_113] : memref<1x1x144x4xbf16, #tpu.memory_space<vmem>>, vector<1x1x18x4xbf16>
    %453 = vector.shape_cast %452 : vector<1x1x18x4xbf16> to vector<18x4xbf16>
    %454 = arith.index_cast %arg2 : i32 to index
    %c4_114 = arith.constant 4 : index
    %c2_115 = arith.constant 2 : index
    %c0_116 = arith.constant 0 : index
    %c0_117 = arith.constant 0 : index
    %455 = vector.load %arg4[%454, %c4_114, %c2_115, %c0_116, %c0_117] : memref<7x7x3x4x8xf32, #tpu.memory_space<vmem>>, vector<1x1x1x4x8xf32>
    %456 = vector.shape_cast %455 : vector<1x1x1x4x8xf32> to vector<4x8xf32>
    %457 = arith.extf %453 : vector<18x4xbf16> to vector<18x4xf32>
    %cst_118 = arith.constant 0.000000e+00 : f32
    %458 = vector.broadcast %cst_118 : f32 to vector<18x8xf32>
    %459 = vector.extract_strided_slice %457 {offsets = [0, 0], sizes = [18, 1], strides = [1, 1]} : vector<18x4xf32> to vector<18x1xf32>
    %460 = vector.extract_strided_slice %456 {offsets = [0, 0], sizes = [1, 8], strides = [1, 1]} : vector<4x8xf32> to vector<1x8xf32>
    %461 = vector.broadcast %459 : vector<18x1xf32> to vector<18x8xf32>
    %462 = vector.broadcast %460 : vector<1x8xf32> to vector<18x8xf32>
    %463 = arith.mulf %461, %462 : vector<18x8xf32>
    %464 = arith.addf %458, %463 : vector<18x8xf32>
    %465 = vector.extract_strided_slice %457 {offsets = [0, 1], sizes = [18, 1], strides = [1, 1]} : vector<18x4xf32> to vector<18x1xf32>
    %466 = vector.extract_strided_slice %456 {offsets = [1, 0], sizes = [1, 8], strides = [1, 1]} : vector<4x8xf32> to vector<1x8xf32>
    %467 = vector.broadcast %465 : vector<18x1xf32> to vector<18x8xf32>
    %468 = vector.broadcast %466 : vector<1x8xf32> to vector<18x8xf32>
    %469 = arith.mulf %467, %468 : vector<18x8xf32>
    %470 = arith.addf %464, %469 : vector<18x8xf32>
    %471 = vector.extract_strided_slice %457 {offsets = [0, 2], sizes = [18, 1], strides = [1, 1]} : vector<18x4xf32> to vector<18x1xf32>
    %472 = vector.extract_strided_slice %456 {offsets = [2, 0], sizes = [1, 8], strides = [1, 1]} : vector<4x8xf32> to vector<1x8xf32>
    %473 = vector.broadcast %471 : vector<18x1xf32> to vector<18x8xf32>
    %474 = vector.broadcast %472 : vector<1x8xf32> to vector<18x8xf32>
    %475 = arith.mulf %473, %474 : vector<18x8xf32>
    %476 = arith.addf %470, %475 : vector<18x8xf32>
    %477 = vector.extract_strided_slice %457 {offsets = [0, 3], sizes = [18, 1], strides = [1, 1]} : vector<18x4xf32> to vector<18x1xf32>
    %478 = vector.extract_strided_slice %456 {offsets = [3, 0], sizes = [1, 8], strides = [1, 1]} : vector<4x8xf32> to vector<1x8xf32>
    %479 = vector.broadcast %477 : vector<18x1xf32> to vector<18x8xf32>
    %480 = vector.broadcast %478 : vector<1x8xf32> to vector<18x8xf32>
    %481 = arith.mulf %479, %480 : vector<18x8xf32>
    %482 = arith.addf %476, %481 : vector<18x8xf32>
    %483 = arith.addf %451, %482 : vector<18x8xf32>
    %c0_119 = arith.constant 0 : index
    %c0_120 = arith.constant 0 : index
    %c90 = arith.constant 90 : index
    %c0_121 = arith.constant 0 : index
    %484 = vector.load %arg3[%c0_119, %c0_120, %c90, %c0_121] : memref<1x1x144x4xbf16, #tpu.memory_space<vmem>>, vector<1x1x18x4xbf16>
    %485 = vector.shape_cast %484 : vector<1x1x18x4xbf16> to vector<18x4xbf16>
    %486 = arith.index_cast %arg2 : i32 to index
    %c5 = arith.constant 5 : index
    %c0_122 = arith.constant 0 : index
    %c0_123 = arith.constant 0 : index
    %c0_124 = arith.constant 0 : index
    %487 = vector.load %arg4[%486, %c5, %c0_122, %c0_123, %c0_124] : memref<7x7x3x4x8xf32, #tpu.memory_space<vmem>>, vector<1x1x1x4x8xf32>
    %488 = vector.shape_cast %487 : vector<1x1x1x4x8xf32> to vector<4x8xf32>
    %489 = arith.extf %485 : vector<18x4xbf16> to vector<18x4xf32>
    %cst_125 = arith.constant 0.000000e+00 : f32
    %490 = vector.broadcast %cst_125 : f32 to vector<18x8xf32>
    %491 = vector.extract_strided_slice %489 {offsets = [0, 0], sizes = [18, 1], strides = [1, 1]} : vector<18x4xf32> to vector<18x1xf32>
    %492 = vector.extract_strided_slice %488 {offsets = [0, 0], sizes = [1, 8], strides = [1, 1]} : vector<4x8xf32> to vector<1x8xf32>
    %493 = vector.broadcast %491 : vector<18x1xf32> to vector<18x8xf32>
    %494 = vector.broadcast %492 : vector<1x8xf32> to vector<18x8xf32>
    %495 = arith.mulf %493, %494 : vector<18x8xf32>
    %496 = arith.addf %490, %495 : vector<18x8xf32>
    %497 = vector.extract_strided_slice %489 {offsets = [0, 1], sizes = [18, 1], strides = [1, 1]} : vector<18x4xf32> to vector<18x1xf32>
    %498 = vector.extract_strided_slice %488 {offsets = [1, 0], sizes = [1, 8], strides = [1, 1]} : vector<4x8xf32> to vector<1x8xf32>
    %499 = vector.broadcast %497 : vector<18x1xf32> to vector<18x8xf32>
    %500 = vector.broadcast %498 : vector<1x8xf32> to vector<18x8xf32>
    %501 = arith.mulf %499, %500 : vector<18x8xf32>
    %502 = arith.addf %496, %501 : vector<18x8xf32>
    %503 = vector.extract_strided_slice %489 {offsets = [0, 2], sizes = [18, 1], strides = [1, 1]} : vector<18x4xf32> to vector<18x1xf32>
    %504 = vector.extract_strided_slice %488 {offsets = [2, 0], sizes = [1, 8], strides = [1, 1]} : vector<4x8xf32> to vector<1x8xf32>
    %505 = vector.broadcast %503 : vector<18x1xf32> to vector<18x8xf32>
    %506 = vector.broadcast %504 : vector<1x8xf32> to vector<18x8xf32>
    %507 = arith.mulf %505, %506 : vector<18x8xf32>
    %508 = arith.addf %502, %507 : vector<18x8xf32>
    %509 = vector.extract_strided_slice %489 {offsets = [0, 3], sizes = [18, 1], strides = [1, 1]} : vector<18x4xf32> to vector<18x1xf32>
    %510 = vector.extract_strided_slice %488 {offsets = [3, 0], sizes = [1, 8], strides = [1, 1]} : vector<4x8xf32> to vector<1x8xf32>
    %511 = vector.broadcast %509 : vector<18x1xf32> to vector<18x8xf32>
    %512 = vector.broadcast %510 : vector<1x8xf32> to vector<18x8xf32>
    %513 = arith.mulf %511, %512 : vector<18x8xf32>
    %514 = arith.addf %508, %513 : vector<18x8xf32>
    %515 = arith.addf %483, %514 : vector<18x8xf32>
    %c0_126 = arith.constant 0 : index
    %c0_127 = arith.constant 0 : index
    %c91 = arith.constant 91 : index
    %c0_128 = arith.constant 0 : index
    %516 = vector.load %arg3[%c0_126, %c0_127, %c91, %c0_128] : memref<1x1x144x4xbf16, #tpu.memory_space<vmem>>, vector<1x1x18x4xbf16>
    %517 = vector.shape_cast %516 : vector<1x1x18x4xbf16> to vector<18x4xbf16>
    %518 = arith.index_cast %arg2 : i32 to index
    %c5_129 = arith.constant 5 : index
    %c1_130 = arith.constant 1 : index
    %c0_131 = arith.constant 0 : index
    %c0_132 = arith.constant 0 : index
    %519 = vector.load %arg4[%518, %c5_129, %c1_130, %c0_131, %c0_132] : memref<7x7x3x4x8xf32, #tpu.memory_space<vmem>>, vector<1x1x1x4x8xf32>
    %520 = vector.shape_cast %519 : vector<1x1x1x4x8xf32> to vector<4x8xf32>
    %521 = arith.extf %517 : vector<18x4xbf16> to vector<18x4xf32>
    %cst_133 = arith.constant 0.000000e+00 : f32
    %522 = vector.broadcast %cst_133 : f32 to vector<18x8xf32>
    %523 = vector.extract_strided_slice %521 {offsets = [0, 0], sizes = [18, 1], strides = [1, 1]} : vector<18x4xf32> to vector<18x1xf32>
    %524 = vector.extract_strided_slice %520 {offsets = [0, 0], sizes = [1, 8], strides = [1, 1]} : vector<4x8xf32> to vector<1x8xf32>
    %525 = vector.broadcast %523 : vector<18x1xf32> to vector<18x8xf32>
    %526 = vector.broadcast %524 : vector<1x8xf32> to vector<18x8xf32>
    %527 = arith.mulf %525, %526 : vector<18x8xf32>
    %528 = arith.addf %522, %527 : vector<18x8xf32>
    %529 = vector.extract_strided_slice %521 {offsets = [0, 1], sizes = [18, 1], strides = [1, 1]} : vector<18x4xf32> to vector<18x1xf32>
    %530 = vector.extract_strided_slice %520 {offsets = [1, 0], sizes = [1, 8], strides = [1, 1]} : vector<4x8xf32> to vector<1x8xf32>
    %531 = vector.broadcast %529 : vector<18x1xf32> to vector<18x8xf32>
    %532 = vector.broadcast %530 : vector<1x8xf32> to vector<18x8xf32>
    %533 = arith.mulf %531, %532 : vector<18x8xf32>
    %534 = arith.addf %528, %533 : vector<18x8xf32>
    %535 = vector.extract_strided_slice %521 {offsets = [0, 2], sizes = [18, 1], strides = [1, 1]} : vector<18x4xf32> to vector<18x1xf32>
    %536 = vector.extract_strided_slice %520 {offsets = [2, 0], sizes = [1, 8], strides = [1, 1]} : vector<4x8xf32> to vector<1x8xf32>
    %537 = vector.broadcast %535 : vector<18x1xf32> to vector<18x8xf32>
    %538 = vector.broadcast %536 : vector<1x8xf32> to vector<18x8xf32>
    %539 = arith.mulf %537, %538 : vector<18x8xf32>
    %540 = arith.addf %534, %539 : vector<18x8xf32>
    %541 = vector.extract_strided_slice %521 {offsets = [0, 3], sizes = [18, 1], strides = [1, 1]} : vector<18x4xf32> to vector<18x1xf32>
    %542 = vector.extract_strided_slice %520 {offsets = [3, 0], sizes = [1, 8], strides = [1, 1]} : vector<4x8xf32> to vector<1x8xf32>
    %543 = vector.broadcast %541 : vector<18x1xf32> to vector<18x8xf32>
    %544 = vector.broadcast %542 : vector<1x8xf32> to vector<18x8xf32>
    %545 = arith.mulf %543, %544 : vector<18x8xf32>
    %546 = arith.addf %540, %545 : vector<18x8xf32>
    %547 = arith.addf %515, %546 : vector<18x8xf32>
    %c0_134 = arith.constant 0 : index
    %c0_135 = arith.constant 0 : index
    %c92 = arith.constant 92 : index
    %c0_136 = arith.constant 0 : index
    %548 = vector.load %arg3[%c0_134, %c0_135, %c92, %c0_136] : memref<1x1x144x4xbf16, #tpu.memory_space<vmem>>, vector<1x1x18x4xbf16>
    %549 = vector.shape_cast %548 : vector<1x1x18x4xbf16> to vector<18x4xbf16>
    %550 = arith.index_cast %arg2 : i32 to index
    %c5_137 = arith.constant 5 : index
    %c2_138 = arith.constant 2 : index
    %c0_139 = arith.constant 0 : index
    %c0_140 = arith.constant 0 : index
    %551 = vector.load %arg4[%550, %c5_137, %c2_138, %c0_139, %c0_140] : memref<7x7x3x4x8xf32, #tpu.memory_space<vmem>>, vector<1x1x1x4x8xf32>
    %552 = vector.shape_cast %551 : vector<1x1x1x4x8xf32> to vector<4x8xf32>
    %553 = arith.extf %549 : vector<18x4xbf16> to vector<18x4xf32>
    %cst_141 = arith.constant 0.000000e+00 : f32
    %554 = vector.broadcast %cst_141 : f32 to vector<18x8xf32>
    %555 = vector.extract_strided_slice %553 {offsets = [0, 0], sizes = [18, 1], strides = [1, 1]} : vector<18x4xf32> to vector<18x1xf32>
    %556 = vector.extract_strided_slice %552 {offsets = [0, 0], sizes = [1, 8], strides = [1, 1]} : vector<4x8xf32> to vector<1x8xf32>
    %557 = vector.broadcast %555 : vector<18x1xf32> to vector<18x8xf32>
    %558 = vector.broadcast %556 : vector<1x8xf32> to vector<18x8xf32>
    %559 = arith.mulf %557, %558 : vector<18x8xf32>
    %560 = arith.addf %554, %559 : vector<18x8xf32>
    %561 = vector.extract_strided_slice %553 {offsets = [0, 1], sizes = [18, 1], strides = [1, 1]} : vector<18x4xf32> to vector<18x1xf32>
    %562 = vector.extract_strided_slice %552 {offsets = [1, 0], sizes = [1, 8], strides = [1, 1]} : vector<4x8xf32> to vector<1x8xf32>
    %563 = vector.broadcast %561 : vector<18x1xf32> to vector<18x8xf32>
    %564 = vector.broadcast %562 : vector<1x8xf32> to vector<18x8xf32>
    %565 = arith.mulf %563, %564 : vector<18x8xf32>
    %566 = arith.addf %560, %565 : vector<18x8xf32>
    %567 = vector.extract_strided_slice %553 {offsets = [0, 2], sizes = [18, 1], strides = [1, 1]} : vector<18x4xf32> to vector<18x1xf32>
    %568 = vector.extract_strided_slice %552 {offsets = [2, 0], sizes = [1, 8], strides = [1, 1]} : vector<4x8xf32> to vector<1x8xf32>
    %569 = vector.broadcast %567 : vector<18x1xf32> to vector<18x8xf32>
    %570 = vector.broadcast %568 : vector<1x8xf32> to vector<18x8xf32>
    %571 = arith.mulf %569, %570 : vector<18x8xf32>
    %572 = arith.addf %566, %571 : vector<18x8xf32>
    %573 = vector.extract_strided_slice %553 {offsets = [0, 3], sizes = [18, 1], strides = [1, 1]} : vector<18x4xf32> to vector<18x1xf32>
    %574 = vector.extract_strided_slice %552 {offsets = [3, 0], sizes = [1, 8], strides = [1, 1]} : vector<4x8xf32> to vector<1x8xf32>
    %575 = vector.broadcast %573 : vector<18x1xf32> to vector<18x8xf32>
    %576 = vector.broadcast %574 : vector<1x8xf32> to vector<18x8xf32>
    %577 = arith.mulf %575, %576 : vector<18x8xf32>
    %578 = arith.addf %572, %577 : vector<18x8xf32>
    %579 = arith.addf %547, %578 : vector<18x8xf32>
    %c0_142 = arith.constant 0 : index
    %c0_143 = arith.constant 0 : index
    %c108 = arith.constant 108 : index
    %c0_144 = arith.constant 0 : index
    %580 = vector.load %arg3[%c0_142, %c0_143, %c108, %c0_144] : memref<1x1x144x4xbf16, #tpu.memory_space<vmem>>, vector<1x1x18x4xbf16>
    %581 = vector.shape_cast %580 : vector<1x1x18x4xbf16> to vector<18x4xbf16>
    %582 = arith.index_cast %arg2 : i32 to index
    %c6 = arith.constant 6 : index
    %c0_145 = arith.constant 0 : index
    %c0_146 = arith.constant 0 : index
    %c0_147 = arith.constant 0 : index
    %583 = vector.load %arg4[%582, %c6, %c0_145, %c0_146, %c0_147] : memref<7x7x3x4x8xf32, #tpu.memory_space<vmem>>, vector<1x1x1x4x8xf32>
    %584 = vector.shape_cast %583 : vector<1x1x1x4x8xf32> to vector<4x8xf32>
    %585 = arith.extf %581 : vector<18x4xbf16> to vector<18x4xf32>
    %cst_148 = arith.constant 0.000000e+00 : f32
    %586 = vector.broadcast %cst_148 : f32 to vector<18x8xf32>
    %587 = vector.extract_strided_slice %585 {offsets = [0, 0], sizes = [18, 1], strides = [1, 1]} : vector<18x4xf32> to vector<18x1xf32>
    %588 = vector.extract_strided_slice %584 {offsets = [0, 0], sizes = [1, 8], strides = [1, 1]} : vector<4x8xf32> to vector<1x8xf32>
    %589 = vector.broadcast %587 : vector<18x1xf32> to vector<18x8xf32>
    %590 = vector.broadcast %588 : vector<1x8xf32> to vector<18x8xf32>
    %591 = arith.mulf %589, %590 : vector<18x8xf32>
    %592 = arith.addf %586, %591 : vector<18x8xf32>
    %593 = vector.extract_strided_slice %585 {offsets = [0, 1], sizes = [18, 1], strides = [1, 1]} : vector<18x4xf32> to vector<18x1xf32>
    %594 = vector.extract_strided_slice %584 {offsets = [1, 0], sizes = [1, 8], strides = [1, 1]} : vector<4x8xf32> to vector<1x8xf32>
    %595 = vector.broadcast %593 : vector<18x1xf32> to vector<18x8xf32>
    %596 = vector.broadcast %594 : vector<1x8xf32> to vector<18x8xf32>
    %597 = arith.mulf %595, %596 : vector<18x8xf32>
    %598 = arith.addf %592, %597 : vector<18x8xf32>
    %599 = vector.extract_strided_slice %585 {offsets = [0, 2], sizes = [18, 1], strides = [1, 1]} : vector<18x4xf32> to vector<18x1xf32>
    %600 = vector.extract_strided_slice %584 {offsets = [2, 0], sizes = [1, 8], strides = [1, 1]} : vector<4x8xf32> to vector<1x8xf32>
    %601 = vector.broadcast %599 : vector<18x1xf32> to vector<18x8xf32>
    %602 = vector.broadcast %600 : vector<1x8xf32> to vector<18x8xf32>
    %603 = arith.mulf %601, %602 : vector<18x8xf32>
    %604 = arith.addf %598, %603 : vector<18x8xf32>
    %605 = vector.extract_strided_slice %585 {offsets = [0, 3], sizes = [18, 1], strides = [1, 1]} : vector<18x4xf32> to vector<18x1xf32>
    %606 = vector.extract_strided_slice %584 {offsets = [3, 0], sizes = [1, 8], strides = [1, 1]} : vector<4x8xf32> to vector<1x8xf32>
    %607 = vector.broadcast %605 : vector<18x1xf32> to vector<18x8xf32>
    %608 = vector.broadcast %606 : vector<1x8xf32> to vector<18x8xf32>
    %609 = arith.mulf %607, %608 : vector<18x8xf32>
    %610 = arith.addf %604, %609 : vector<18x8xf32>
    %611 = arith.addf %579, %610 : vector<18x8xf32>
    %c0_149 = arith.constant 0 : index
    %c0_150 = arith.constant 0 : index
    %c109 = arith.constant 109 : index
    %c0_151 = arith.constant 0 : index
    %612 = vector.load %arg3[%c0_149, %c0_150, %c109, %c0_151] : memref<1x1x144x4xbf16, #tpu.memory_space<vmem>>, vector<1x1x18x4xbf16>
    %613 = vector.shape_cast %612 : vector<1x1x18x4xbf16> to vector<18x4xbf16>
    %614 = arith.index_cast %arg2 : i32 to index
    %c6_152 = arith.constant 6 : index
    %c1_153 = arith.constant 1 : index
    %c0_154 = arith.constant 0 : index
    %c0_155 = arith.constant 0 : index
    %615 = vector.load %arg4[%614, %c6_152, %c1_153, %c0_154, %c0_155] : memref<7x7x3x4x8xf32, #tpu.memory_space<vmem>>, vector<1x1x1x4x8xf32>
    %616 = vector.shape_cast %615 : vector<1x1x1x4x8xf32> to vector<4x8xf32>
    %617 = arith.extf %613 : vector<18x4xbf16> to vector<18x4xf32>
    %cst_156 = arith.constant 0.000000e+00 : f32
    %618 = vector.broadcast %cst_156 : f32 to vector<18x8xf32>
    %619 = vector.extract_strided_slice %617 {offsets = [0, 0], sizes = [18, 1], strides = [1, 1]} : vector<18x4xf32> to vector<18x1xf32>
    %620 = vector.extract_strided_slice %616 {offsets = [0, 0], sizes = [1, 8], strides = [1, 1]} : vector<4x8xf32> to vector<1x8xf32>
    %621 = vector.broadcast %619 : vector<18x1xf32> to vector<18x8xf32>
    %622 = vector.broadcast %620 : vector<1x8xf32> to vector<18x8xf32>
    %623 = arith.mulf %621, %622 : vector<18x8xf32>
    %624 = arith.addf %618, %623 : vector<18x8xf32>
    %625 = vector.extract_strided_slice %617 {offsets = [0, 1], sizes = [18, 1], strides = [1, 1]} : vector<18x4xf32> to vector<18x1xf32>
    %626 = vector.extract_strided_slice %616 {offsets = [1, 0], sizes = [1, 8], strides = [1, 1]} : vector<4x8xf32> to vector<1x8xf32>
    %627 = vector.broadcast %625 : vector<18x1xf32> to vector<18x8xf32>
    %628 = vector.broadcast %626 : vector<1x8xf32> to vector<18x8xf32>
    %629 = arith.mulf %627, %628 : vector<18x8xf32>
    %630 = arith.addf %624, %629 : vector<18x8xf32>
    %631 = vector.extract_strided_slice %617 {offsets = [0, 2], sizes = [18, 1], strides = [1, 1]} : vector<18x4xf32> to vector<18x1xf32>
    %632 = vector.extract_strided_slice %616 {offsets = [2, 0], sizes = [1, 8], strides = [1, 1]} : vector<4x8xf32> to vector<1x8xf32>
    %633 = vector.broadcast %631 : vector<18x1xf32> to vector<18x8xf32>
    %634 = vector.broadcast %632 : vector<1x8xf32> to vector<18x8xf32>
    %635 = arith.mulf %633, %634 : vector<18x8xf32>
    %636 = arith.addf %630, %635 : vector<18x8xf32>
    %637 = vector.extract_strided_slice %617 {offsets = [0, 3], sizes = [18, 1], strides = [1, 1]} : vector<18x4xf32> to vector<18x1xf32>
    %638 = vector.extract_strided_slice %616 {offsets = [3, 0], sizes = [1, 8], strides = [1, 1]} : vector<4x8xf32> to vector<1x8xf32>
    %639 = vector.broadcast %637 : vector<18x1xf32> to vector<18x8xf32>
    %640 = vector.broadcast %638 : vector<1x8xf32> to vector<18x8xf32>
    %641 = arith.mulf %639, %640 : vector<18x8xf32>
    %642 = arith.addf %636, %641 : vector<18x8xf32>
    %643 = arith.addf %611, %642 : vector<18x8xf32>
    %c0_157 = arith.constant 0 : index
    %c0_158 = arith.constant 0 : index
    %c110 = arith.constant 110 : index
    %c0_159 = arith.constant 0 : index
    %644 = vector.load %arg3[%c0_157, %c0_158, %c110, %c0_159] : memref<1x1x144x4xbf16, #tpu.memory_space<vmem>>, vector<1x1x18x4xbf16>
    %645 = vector.shape_cast %644 : vector<1x1x18x4xbf16> to vector<18x4xbf16>
    %646 = arith.index_cast %arg2 : i32 to index
    %c6_160 = arith.constant 6 : index
    %c2_161 = arith.constant 2 : index
    %c0_162 = arith.constant 0 : index
    %c0_163 = arith.constant 0 : index
    %647 = vector.load %arg4[%646, %c6_160, %c2_161, %c0_162, %c0_163] : memref<7x7x3x4x8xf32, #tpu.memory_space<vmem>>, vector<1x1x1x4x8xf32>
    %648 = vector.shape_cast %647 : vector<1x1x1x4x8xf32> to vector<4x8xf32>
    %649 = arith.extf %645 : vector<18x4xbf16> to vector<18x4xf32>
    %cst_164 = arith.constant 0.000000e+00 : f32
    %650 = vector.broadcast %cst_164 : f32 to vector<18x8xf32>
    %651 = vector.extract_strided_slice %649 {offsets = [0, 0], sizes = [18, 1], strides = [1, 1]} : vector<18x4xf32> to vector<18x1xf32>
    %652 = vector.extract_strided_slice %648 {offsets = [0, 0], sizes = [1, 8], strides = [1, 1]} : vector<4x8xf32> to vector<1x8xf32>
    %653 = vector.broadcast %651 : vector<18x1xf32> to vector<18x8xf32>
    %654 = vector.broadcast %652 : vector<1x8xf32> to vector<18x8xf32>
    %655 = arith.mulf %653, %654 : vector<18x8xf32>
    %656 = arith.addf %650, %655 : vector<18x8xf32>
    %657 = vector.extract_strided_slice %649 {offsets = [0, 1], sizes = [18, 1], strides = [1, 1]} : vector<18x4xf32> to vector<18x1xf32>
    %658 = vector.extract_strided_slice %648 {offsets = [1, 0], sizes = [1, 8], strides = [1, 1]} : vector<4x8xf32> to vector<1x8xf32>
    %659 = vector.broadcast %657 : vector<18x1xf32> to vector<18x8xf32>
    %660 = vector.broadcast %658 : vector<1x8xf32> to vector<18x8xf32>
    %661 = arith.mulf %659, %660 : vector<18x8xf32>
    %662 = arith.addf %656, %661 : vector<18x8xf32>
    %663 = vector.extract_strided_slice %649 {offsets = [0, 2], sizes = [18, 1], strides = [1, 1]} : vector<18x4xf32> to vector<18x1xf32>
    %664 = vector.extract_strided_slice %648 {offsets = [2, 0], sizes = [1, 8], strides = [1, 1]} : vector<4x8xf32> to vector<1x8xf32>
    %665 = vector.broadcast %663 : vector<18x1xf32> to vector<18x8xf32>
    %666 = vector.broadcast %664 : vector<1x8xf32> to vector<18x8xf32>
    %667 = arith.mulf %665, %666 : vector<18x8xf32>
    %668 = arith.addf %662, %667 : vector<18x8xf32>
    %669 = vector.extract_strided_slice %649 {offsets = [0, 3], sizes = [18, 1], strides = [1, 1]} : vector<18x4xf32> to vector<18x1xf32>
    %670 = vector.extract_strided_slice %648 {offsets = [3, 0], sizes = [1, 8], strides = [1, 1]} : vector<4x8xf32> to vector<1x8xf32>
    %671 = vector.broadcast %669 : vector<18x1xf32> to vector<18x8xf32>
    %672 = vector.broadcast %670 : vector<1x8xf32> to vector<18x8xf32>
    %673 = arith.mulf %671, %672 : vector<18x8xf32>
    %674 = arith.addf %668, %673 : vector<18x8xf32>
    %675 = arith.addf %643, %674 : vector<18x8xf32>
    %c0_165 = arith.constant 0 : index
    %c0_166 = arith.constant 0 : index
    %c0_167 = arith.constant 0 : index
    %c0_168 = arith.constant 0 : index
    %676 = vector.load %arg7[%c0_165, %c0_166, %c0_167, %c0_168] : memref<1x1x18x8xf32, #tpu.memory_space<vmem>>, vector<1x1x18x8xf32>
    %677 = vector.shape_cast %676 : vector<1x1x18x8xf32> to vector<18x8xf32>
    %678 = arith.addf %677, %675 : vector<18x8xf32>
    %c0_169 = arith.constant 0 : index
    %c0_170 = arith.constant 0 : index
    %c0_171 = arith.constant 0 : index
    %c0_172 = arith.constant 0 : index
    %679 = vector.load %arg7[%c0_169, %c0_170, %c0_171, %c0_172] : memref<1x1x18x8xf32, #tpu.memory_space<vmem>>, vector<1x1x18x8xf32>
    %680 = vector.shape_cast %679 : vector<1x1x18x8xf32> to vector<18x8xf32>
    %681 = vector.shape_cast %678 : vector<18x8xf32> to vector<1x1x18x8xf32>
    tpu.vector_store %arg7[%c0_169, %c0_170, %c0_171, %c0_172], %681 {strides = array<i32>} : memref<1x1x18x8xf32, #tpu.memory_space<vmem>>, vector<1x1x18x8xf32>,
    return
  }
  func.func @transform_0(%arg0: i32, %arg1: i32, %arg2: i32) -> (i32, i32, i32, i32) {
    %c1_i32 = arith.constant 1 : i32
    %0 = arith.muli %arg1, %c1_i32 : i32
    %c1_i32_0 = arith.constant 1 : i32
    %1 = arith.muli %arg2, %c1_i32_0 : i32
    %2 = arith.addi %0, %1 : i32
    %c0_i32 = arith.constant 0 : i32
    %c0_i32_1 = arith.constant 0 : i32
    %c0_i32_2 = arith.constant 0 : i32
    return %arg0, %2, %c0_i32, %c0_i32_1 : i32, i32, i32, i32
  }
  func.func @transform_1(%arg0: i32, %arg1: i32, %arg2: i32) -> (i32, i32, i32, i32, i32) {
    %c0_i32 = arith.constant 0 : i32
    %c0_i32_0 = arith.constant 0 : i32
    %c0_i32_1 = arith.constant 0 : i32
    %c0_i32_2 = arith.constant 0 : i32
    %c0_i32_3 = arith.constant 0 : i32
    %c0_i32_4 = arith.constant 0 : i32
    return %c0_i32, %c0_i32_0, %c0_i32_1, %c0_i32_2, %c0_i32_3 : i32, i32, i32, i32, i32
  }
  func.func @transform_2(%arg0: i32, %arg1: i32, %arg2: i32) -> (i32, i32) {
    %c0_i32 = arith.constant 0 : i32
    %c0_i32_0 = arith.constant 0 : i32
    %c0_i32_1 = arith.constant 0 : i32
    return %c0_i32, %c0_i32_0 : i32, i32
  }
  func.func @transform_3(%arg0: i32, %arg1: i32, %arg2: i32) -> (i32, i32) {
    %c0_i32 = arith.constant 0 : i32
    %c0_i32_0 = arith.constant 0 : i32
    %c0_i32_1 = arith.constant 0 : i32
    return %c0_i32, %c0_i32_0 : i32, i32
  }
  func.func @transform_4(%arg0: i32, %arg1: i32, %arg2: i32) -> (i32, i32, i32, i32) {
    %c0_i32 = arith.constant 0 : i32
    %c0_i32_0 = arith.constant 0 : i32
    %c0_i32_1 = arith.constant 0 : i32
    return %arg0, %arg1, %c0_i32, %c0_i32_0 : i32, i32, i32, i32
  }
}

</mosaic_0001>

<bundles_post_ra>
// kernel: conv3d_cd_forward.3
= control target key start
LH: loop header
LB: loop body
LE: loop exit
PB: predicated region body
PF: predicated region fallthrough
CT: control target
= control target key end

     0   :  { %s958_s15 = smov 0   ;;  %s960_s16 = smov 0   ;;  %s1117_s0 = inlined_call_operand.vmem [shape: bf16[2,5,80,4], index: 0, kind: input, shape index: {}]   ;;  %s1118_s1 = inlined_call_operand.vmem [shape: f32[1,1,1,4,8], index: 1, kind: input, shape index: {}]   ;;  %s1119_s2 = inlined_call_operand.vmem [shape: f32[4,8], index: 2, kind: input, shape index: {}]   ;;  %s1120_s3 = inlined_call_operand.vmem [shape: f32[1,8], index: 3, kind: input, shape index: {}]   ;;  %s1121_s4 = inlined_call_operand.vmem [shape: f32[2,5,80,8], index: 4, kind: output, shape index: {}]  }
   0x1   :  { %s962_s17 = smov 0   ;;  %s964_s18 = smov 0  }
   0x2   :  { %s966_s19 = smov 0  }
   0x3 LB: > { %s29_s2 = sadd.s32 1, %s919_s17  ;;  %s33_s20 = sadd.s32 1, %s923_s18  ;;  %s927_s19 = sphi %s966_s19, %s14_s19   ;;  %s923_s18 = sphi %s964_s18, %s1125_s18   ;;  %s919_s17 = sphi %s962_s17, %s1124_s17   ;;  %s915_s16 = sphi %s960_s16, %s1123_s16   ;;  %s911_s15 = sphi %s958_s15, %s1122_s15  }
   0x4   : > { %p31_p0 = scmp.ge.s32.totalorder %s29_s2, 5  ;;  %p705_p1 = scmp.ge.s32.totalorder %s927_s19, 1 }
   0x5   : > { %p193_p2 = scmp.lt.s32.totalorder %s927_s19, 11 }
   0x6   : > { %s1127_s2 = smov (%p31_p0, %s29_s2), 0  ;;  %s1129_s20 = smov (!%p31_p0, %s33_s20), %s923_s18 }
   0x7   : > { %p194_p3 = pnand %p705_p1, %p193_p2  ;;  %p35_p4 = scmp.ge.s32.totalorder %s1129_s20, 2 }
   0x8   : > { %p229_p5 = scmp.lt.s32.totalorder (!%p194_p3), %s915_s16, 1  ;;  %p231_p6 = scmp.lt.s32.totalorder (!%p194_p3), %s911_s15, 4  ;;  %v929_v0 = vmov (!%p194_p3), 0   ;;  %v930_v21 = vmov (!%p194_p3), 1   ;;  %v931_v22 = vmov (!%p194_p3), 2   ;;  %vm260_vm0 = vcmask (!%p194_p3), 64512  }
   0x9   : > { %s1131_s20 = smov (%p35_p4, %s1129_s20), 0  ;;  %197 = sbr.rel (%p194_p3) target bundleno = 208 (0xd0), region = 36 }
   0xa   : > { %792 = vset.pattern.permute.xlu1 (!%p194_p3), %v929_v0  ;;  %781 = vset.pattern.permute.xlu0 (!%p194_p3), %v929_v0  ;;  %v708_v23 = vld [vmem:[%s1120_s3] ss:$0 sm:$0xff] (!%p194_p3)  ;;  %v932_v24 = vmov (!%p194_p3), 3   ;;  %v344_v27 = vlaneseq (!%p194_p3) }
   0xb   : > { %v283_v35 = vld [vmem:[%s1118_s1] sm:$0xf] (!%p194_p3) }
   0xc   : > { %v345_v30 = vshrl.u32 (!%p194_p3), %v344_v27, 7 }
   0xe   : > { %v346_v33 = vsub.s32 (!%p194_p3), 0, %v345_v30  ;;  %v410_v34 = vsub.s32 (!%p194_p3), 1, %v345_v30  ;;  %v474_v38 = vsub.s32 (!%p194_p3), 2, %v345_v30  ;;  %v538_v39 = vsub.s32 (!%p194_p3), 3, %v345_v30 }
  0x10   : > { %s1133_s16 = smov (!%p229_p5, %s915_s16), 1  ;;  %s1135_s15 = smov (!%p231_p6, %s911_s15), 4  ;;  %v347_v40 = vrot.slane %v283_v35, %v346_v33  ;;  %v1026_v41 = vrot.slane %v283_v35, %v410_v34  ;;  %v1030_v50 = vrot.slane %v283_v35, %v474_v38  ;;  %v1032_v51 = vrot.slane %v283_v35, %v538_v39 }
  0x11   : > { %s736_s21 = smul.u32 50, %s1133_s16 }
  0x12   : > { %s735_s22 = smul.u32 10, %s1135_s15 }
  0x14   : > { %s988_s23 = sadd.s32 %s736_s21, %s735_s22 }
  0x15   : > { %s706_s24 = sshll.u32 %s988_s23, 2  ;;  %s707_s28 = sshll.u32 %s988_s23, 3 }
  0x16   : > { %s237_s27 = scalar_lea.vmem %s1117_s0, %s706_s24  ;;  %s998_s5 = scalar_lea.vmem %s1121_s4, %s707_s28 }
  0x17   : > { %v732_v1 = vld [vmem:[%s237_s27 + $0x10] sm:$0xff]   ;;  %v712_v2 = vld [vmem:[%s237_s27] sm:$0xff]   ;;  %v733_v3 = vld [vmem:[%s237_s27 + $0x18] sm:$0xff]   ;;  %263 = vst.msk [vmem:[%s998_s5 + $0x10] sm:$0xff] %vm260_vm0, %v708_v23 }
  0x18   : > { %v721_v4 = vunpack.c.l.bf16 %v732_v1  ;;  %v722_v5 = vunpack.c.h.bf16 %v732_v1  ;;  %v713_v6 = vunpack.c.l.bf16 %v712_v2  ;;  %v714_v7 = vunpack.c.h.bf16 %v712_v2  ;;  %v731_v8 = vld [vmem:[%s237_s27 + $0x8] sm:$0xff]   ;;  %v734_v13 = vld [vmem:[%s237_s27 + $0x20] sm:$0xff]   ;;  %264 = vst.msk [vmem:[%s998_s5 + $0x18] sm:$0xff] %vm260_vm0, %v708_v23  ;;  %261 = vst.msk [vmem:[%s998_s5] sm:$0xff] %vm260_vm0, %v708_v23 }
  0x19   : > { %v725_v9 = vunpack.c.l.bf16 %v733_v3  ;;  %v726_v10 = vunpack.c.h.bf16 %v733_v3  ;;  %v717_v11 = vunpack.c.l.bf16 %v731_v8  ;;  %v718_v12 = vunpack.c.h.bf16 %v731_v8  ;;  %262 = vst.msk [vmem:[%s998_s5 + $0x8] sm:$0xff] %vm260_vm0, %v708_v23  ;;  %265 = vst.msk [vmem:[%s998_s5 + $0x20] sm:$0xff] %vm260_vm0, %v708_v23 }
  0x1a   : > { %v793_v14 = vpack.i.bf16 %v722_v5, %v721_v4  ;;  %v782_v15 = vpack.i.bf16 %v714_v7, %v713_v6  ;;  %v729_v18 = vunpack.c.l.bf16 %v734_v13  ;;  %v730_v19 = vunpack.c.h.bf16 %v734_v13  ;;  %266 = vst.msk [vmem:[%s998_s5 + $0x28] sm:$0xff] %vm260_vm0, %v708_v23  ;;  %267 = vst.msk [vmem:[%s998_s5 + $0x30] sm:$0xff] %vm260_vm0, %v708_v23 }
  0x1b   : > { %v798_v16 = vpack.i.bf16 %v726_v10, %v725_v9  ;;  %v787_v17 = vpack.i.bf16 %v718_v12, %v717_v11  ;;  %268 = vst.msk [vmem:[%s998_s5 + $0x38] sm:$0xff] %vm260_vm0, %v708_v23  ;;  %269 = vst.msk [vmem:[%s998_s5 + $0x40] sm:$0xff] %vm260_vm0, %v708_v23 }
  0x1c   : > { %794 = vperm.xlu1 %792, %v793_v14   ;;  %783 = vperm.xlu0 %781, %v782_v15   ;;  %v803_v20 = vpack.i.bf16 %v730_v19, %v729_v18  ;;  %270 = vst.msk [vmem:[%s998_s5 + $0x48] sm:$0xff] %vm260_vm0, %v708_v23 }
  0x20   : > { %799 = vperm.xlu1 %792, %v798_v16   ;;  %788 = vperm.xlu0 %781, %v787_v17  }
  0x24   : > { %808 = vset.pattern.permute.xlu1 %v930_v21  ;;  %804 = vperm.xlu0 %781, %v803_v20  }
  0x25   : > { %810 = vperm.xlu1 %808, %v782_v15  }
  0x28   : > { %814 = vset.pattern.permute.xlu0 %v930_v21 }
  0x29   : > { %821 = vperm.xlu1 %808, %v793_v14   ;;  %816 = vperm.xlu0 %814, %v787_v17  }
  0x2d   : > { %826 = vperm.xlu1 %808, %v798_v16   ;;  %831 = vperm.xlu0 %814, %v803_v20  }
  0x31   : > { %835 = vset.pattern.permute.xlu1 %v931_v22  ;;  %841 = vset.pattern.permute.xlu0 %v931_v22 }
  0x32   : > { %837 = vperm.xlu1 %835, %v782_v15   ;;  %843 = vperm.xlu0 %841, %v787_v17  }
  0x36   : > { %848 = vperm.xlu1 %835, %v793_v14   ;;  %858 = vperm.xlu0 %841, %v803_v20  }
  0x3a   : > { %853 = vperm.xlu1 %835, %v798_v16   ;;  %868 = vset.pattern.permute.xlu0 %v932_v24 }
  0x3b   : > { %870 = vperm.xlu0 %868, %v787_v17  }
  0x3e   : > { %862 = vset.pattern.permute.xlu1 %v932_v24 }
  0x3f   : > { %864 = vperm.xlu1 %862, %v782_v15   ;;  %885 = vperm.xlu0 %868, %v803_v20  }
  0x43   : > { %875 = vperm.xlu1 %862, %v793_v14  }
  0x47   : > { %880 = vperm.xlu1 %862, %v798_v16  }
  0x9b   : > { %v795_v25 = vpop.permute.xlu1 %794  ;;  %v784_v26 = vpop.permute.xlu0 %783 }
  0x9c   : > { %v797_v42 = vunpack.i.h.bf16 %v795_v25  ;;  %v796_v43 = vunpack.i.l.bf16 %v795_v25  ;;  %v786_v44 = vunpack.i.h.bf16 %v784_v26  ;;  %v785_v45 = vunpack.i.l.bf16 %v784_v26 }
  0x9e   : > { %v353_v60 = vmul.f32 %v797_v42, %v347_v40  ;;  %v352_v61 = vmul.f32 %v796_v43, %v347_v40  ;;  %v349_v62 = vmul.f32 %v786_v44, %v347_v40  ;;  %v348_v63 = vmul.f32 %v785_v45, %v347_v40 }
  0x9f   : > { %v800_v28 = vpop.permute.xlu1 %799  ;;  %v789_v29 = vpop.permute.xlu0 %788 }
  0xa0   : > { %v802_v48 = vunpack.i.h.bf16 %v800_v28  ;;  %v801_v49 = vunpack.i.l.bf16 %v800_v28  ;;  %v791_v52 = vunpack.i.h.bf16 %v789_v29  ;;  %v790_v53 = vunpack.i.l.bf16 %v789_v29 }
  0xa2   : > { %v1034_v0 = vmul.f32 %v802_v48, %v347_v40  ;;  %v1036_v1 = vmul.f32 %v801_v49, %v347_v40  ;;  %v351_v6 = vmul.f32 %v791_v52, %v347_v40  ;;  %v350_v7 = vmul.f32 %v790_v53, %v347_v40 }
  0xa3   : > { %v805_v31 = vpop.permute.xlu0 %804 }
  0xa4   : > { %v811_v32 = vpop.permute.xlu1 %810  ;;  %v807_v56 = vunpack.i.h.bf16 %v805_v31  ;;  %v806_v57 = vunpack.i.l.bf16 %v805_v31 }
  0xa5   : > { %v813_v54 = vunpack.i.h.bf16 %v811_v32  ;;  %v812_v55 = vunpack.i.l.bf16 %v811_v32 }
  0xa6   : > { %v357_v10 = vmul.f32 %v807_v56, %v347_v40  ;;  %v356_v11 = vmul.f32 %v806_v57, %v347_v40 }
  0xa7   : > { %v413_v8 = vmul.f32 %v813_v54, %v1026_v41  ;;  %v412_v9 = vmul.f32 %v812_v55, %v1026_v41 }
  0xa8   : > { %v822_v36 = vpop.permute.xlu1 %821  ;;  %v817_v37 = vpop.permute.xlu0 %816 }
  0xa9   : > { %v824_v58 = vunpack.i.h.bf16 %v822_v36  ;;  %v823_v59 = vunpack.i.l.bf16 %v822_v36  ;;  %v819_v2 = vunpack.i.h.bf16 %v817_v37  ;;  %v818_v3 = vunpack.i.l.bf16 %v817_v37 }
  0xaa   : > { %v422_v24 = vadd.f32 %v412_v9, %v348_v63  ;;  %v423_v25 = vadd.f32 %v413_v8, %v349_v62 }
  0xab   : > { %v417_v12 = vmul.f32 %v824_v58, %v1026_v41  ;;  %v416_v13 = vmul.f32 %v823_v59, %v1026_v41  ;;  %v415_v18 = vmul.f32 %v819_v2, %v1026_v41  ;;  %v414_v19 = vmul.f32 %v818_v3, %v1026_v41  ;;  %v573_v3 = vld [vmem:[%s998_s5 + $0x18] sm:$0xff] }
  0xac   : > { %v1028_v46 = vpop.permute.xlu1 %826  ;;  %v832_v47 = vpop.permute.xlu0 %831 }
  0xad   : > { %v834_v14 = vunpack.i.h.bf16 %v832_v47  ;;  %v833_v15 = vunpack.i.l.bf16 %v832_v47  ;;  %v427_v28 = vadd.f32 %v417_v12, %v353_v60  ;;  %v426_v29 = vadd.f32 %v416_v13, %v352_v61 }
  0xae   : > { %v829_v30 = vunpack.i.h.bf16 %v1028_v46  ;;  %v828_v31 = vunpack.i.l.bf16 %v1028_v46  ;;  %v424_v36 = vadd.f32 %v414_v19, %v350_v7  ;;  %v425_v37 = vadd.f32 %v415_v18, %v351_v6 }
  0xaf   : > { %v421_v32 = vmul.f32 %v834_v14, %v1026_v41  ;;  %v420_v33 = vmul.f32 %v833_v15, %v1026_v41 }
  0xb0   : > { %v419_v47 = vmul.f32 %v829_v30, %v1026_v41  ;;  %v418_v48 = vmul.f32 %v828_v31, %v1026_v41  ;;  %v572_v41 = vld [vmem:[%s998_s5 + $0x10] sm:$0xff] }
  0xb1   : > { %v838_v4 = vpop.permute.xlu1 %837  ;;  %v844_v5 = vpop.permute.xlu0 %843  ;;  %v430_v53 = vadd.f32 %v420_v33, %v356_v11  ;;  %v431_v54 = vadd.f32 %v421_v32, %v357_v10 }
  0xb2   : > { %v840_v16 = vunpack.i.h.bf16 %v838_v4  ;;  %v839_v17 = vunpack.i.l.bf16 %v838_v4  ;;  %v846_v20 = vunpack.i.h.bf16 %v844_v5  ;;  %v845_v21 = vunpack.i.l.bf16 %v844_v5 }
  0xb4   : > { %v477_v34 = vmul.f32 %v840_v16, %v1030_v50  ;;  %v476_v35 = vmul.f32 %v839_v17, %v1030_v50  ;;  %v479_v38 = vmul.f32 %v846_v20, %v1030_v50  ;;  %v478_v39 = vmul.f32 %v845_v21, %v1030_v50  ;;  %v570_v20 = vld [vmem:[%s998_s5] sm:$0xff]  ;;  %v571_v21 = vld [vmem:[%s998_s5 + $0x8] sm:$0xff] }
  0xb5   : > { %v849_v22 = vpop.permute.xlu1 %848  ;;  %v859_v23 = vpop.permute.xlu0 %858 }
  0xb6   : > { %v851_v26 = vunpack.i.h.bf16 %v849_v22  ;;  %v850_v27 = vunpack.i.l.bf16 %v849_v22  ;;  %v861_v44 = vunpack.i.h.bf16 %v859_v23  ;;  %v860_v45 = vunpack.i.l.bf16 %v859_v23 }
  0xb7   : > { %v486_v55 = vadd.f32 %v476_v35, %v422_v24  ;;  %v487_v56 = vadd.f32 %v477_v34, %v423_v25  ;;  %v488_v57 = vadd.f32 %v478_v39, %v424_v36  ;;  %v489_v58 = vadd.f32 %v479_v38, %v425_v37 }
  0xb8   : > { %v481_v42 = vmul.f32 %v851_v26, %v1030_v50  ;;  %v480_v43 = vmul.f32 %v850_v27, %v1030_v50  ;;  %v485_v63 = vmul.f32 %v861_v44, %v1030_v50  ;;  %v484_v2 = vmul.f32 %v860_v45, %v1030_v50  ;;  %v578_v27 = vld [vmem:[%s998_s5 + $0x40] sm:$0xff]  ;;  %v575_v45 = vld [vmem:[%s998_s5 + $0x28] sm:$0xff] }
  0xb9   : > { %v854_v40 = vpop.permute.xlu1 %853  ;;  %v429_v39 = vadd.f32 %v419_v47, %v1034_v0  ;;  %v574_v44 = vld [vmem:[%s998_s5 + $0x20] sm:$0xff] }
  0xba   : > { %v871_v46 = vpop.permute.xlu0 %870  ;;  %v490_v61 = vadd.f32 %v480_v43, %v426_v29  ;;  %v491_v62 = vadd.f32 %v481_v42, %v427_v28  ;;  %v856_v10 = vunpack.i.h.bf16 %v854_v40  ;;  %v855_v11 = vunpack.i.l.bf16 %v854_v40  ;;  %v579_v28 = vld [vmem:[%s998_s5 + $0x48] sm:$0xff] }
  0xbb   : > { %v873_v49 = vunpack.i.h.bf16 %v871_v46  ;;  %v872_v52 = vunpack.i.l.bf16 %v871_v46  ;;  %v494_v18 = vadd.f32 %v484_v2, %v430_v53  ;;  %v495_v19 = vadd.f32 %v485_v63, %v431_v54 }
  0xbc   : > { %v483_v31 = vmul.f32 %v856_v10, %v1030_v50  ;;  %v482_v32 = vmul.f32 %v855_v11, %v1030_v50  ;;  %v428_v40 = vadd.f32 %v418_v48, %v1036_v1 }
  0xbd   : > { %v543_v59 = vmul.f32 %v873_v49, %v1032_v51  ;;  %v542_v60 = vmul.f32 %v872_v52, %v1032_v51 }
  0xbe   : > { %v865_v4 = vpop.permute.xlu1 %864  ;;  %v886_v5 = vpop.permute.xlu0 %885  ;;  %v492_v47 = vadd.f32 %v482_v32, %v428_v40  ;;  %v493_v1 = vadd.f32 %v483_v31, %v429_v39 }
  0xbf   : > { %v552_v6 = vadd.f32 %v542_v60, %v488_v57  ;;  %v553_v7 = vadd.f32 %v543_v59, %v489_v58  ;;  %v867_v8 = vunpack.i.h.bf16 %v865_v4  ;;  %v866_v9 = vunpack.i.l.bf16 %v865_v4  ;;  %v577_v57 = vld [vmem:[%s998_s5 + $0x38] sm:$0xff] }
  0xc0   : > { %v888_v12 = vunpack.i.h.bf16 %v886_v5  ;;  %v887_v13 = vunpack.i.l.bf16 %v886_v5 }
  0xc1   : > { %v582_v14 = vadd.f32 %v572_v41, %v552_v6  ;;  %v583_v15 = vadd.f32 %v573_v3, %v553_v7  ;;  %v541_v16 = vmul.f32 %v867_v8, %v1032_v51  ;;  %v540_v17 = vmul.f32 %v866_v9, %v1032_v51 }
  0xc2   : > { %v549_v22 = vmul.f32 %v888_v12, %v1032_v51  ;;  %v548_v23 = vmul.f32 %v887_v13, %v1032_v51  ;;  %v876_v24 = vpop.permute.xlu1 %875 }
  0xc3   : > { %593 = vst.msk [vmem:[%s998_s5 + $0x10] sm:$0xff] %vm260_vm0, %v582_v14  ;;  %594 = vst.msk [vmem:[%s998_s5 + $0x18] sm:$0xff] %vm260_vm0, %v583_v15  ;;  %v550_v25 = vadd.f32 %v540_v17, %v486_v55  ;;  %v551_v26 = vadd.f32 %v541_v16, %v487_v56  ;;  %v878_v29 = vunpack.i.h.bf16 %v876_v24  ;;  %v877_v30 = vunpack.i.l.bf16 %v876_v24  ;;  %v576_v56 = vld [vmem:[%s998_s5 + $0x30] sm:$0xff] }
  0xc4   : > { %v558_v33 = vadd.f32 %v548_v23, %v494_v18  ;;  %v559_v34 = vadd.f32 %v549_v22, %v495_v19 }
  0xc5   : > { %v580_v35 = vadd.f32 %v570_v20, %v550_v25  ;;  %v581_v36 = vadd.f32 %v571_v21, %v551_v26  ;;  %v545_v37 = vmul.f32 %v878_v29, %v1032_v51  ;;  %v544_v38 = vmul.f32 %v877_v30, %v1032_v51 }
  0xc6   : > { %v588_v42 = vadd.f32 %v578_v27, %v558_v33  ;;  %v589_v43 = vadd.f32 %v579_v28, %v559_v34  ;;  %v881_v50 = vpop.permute.xlu1 %880 }
  0xc7   : > { %591 = vst.msk [vmem:[%s998_s5] sm:$0xff] %vm260_vm0, %v580_v35  ;;  %592 = vst.msk [vmem:[%s998_s5 + $0x8] sm:$0xff] %vm260_vm0, %v581_v36  ;;  %v554_v46 = vadd.f32 %v544_v38, %v490_v61  ;;  %v555_v49 = vadd.f32 %v545_v37, %v491_v62  ;;  %v883_v52 = vunpack.i.h.bf16 %v881_v50  ;;  %v882_v0 = vunpack.i.l.bf16 %v881_v50 }
  0xc8   : > { %599 = vst.msk [vmem:[%s998_s5 + $0x40] sm:$0xff] %vm260_vm0, %v588_v42  ;;  %600 = vst.msk [vmem:[%s998_s5 + $0x48] sm:$0xff] %vm260_vm0, %v589_v43 }
  0xc9   : > { %v584_v48 = vadd.f32 %v574_v44, %v554_v46  ;;  %v585_v53 = vadd.f32 %v575_v45, %v555_v49  ;;  %v547_v54 = vmul.f32 %v883_v52, %v1032_v51  ;;  %v546_v55 = vmul.f32 %v882_v0, %v1032_v51 }
  0xcb   : > { %595 = vst.msk [vmem:[%s998_s5 + $0x20] sm:$0xff] %vm260_vm0, %v584_v48  ;;  %596 = vst.msk [vmem:[%s998_s5 + $0x28] sm:$0xff] %vm260_vm0, %v585_v53  ;;  %v556_v58 = vadd.f32 %v546_v55, %v492_v47  ;;  %v557_v59 = vadd.f32 %v547_v54, %v493_v1 }
  0xcd   : > { %v586_v60 = vadd.f32 %v576_v56, %v556_v58  ;;  %v587_v61 = vadd.f32 %v577_v57, %v557_v59 }
  0xcf   : > { %597 = vst.msk [vmem:[%s998_s5 + $0x30] sm:$0xff] %vm260_vm0, %v586_v60  ;;  %598 = vst.msk [vmem:[%s998_s5 + $0x38] sm:$0xff] %vm260_vm0, %v587_v61 }
  0xd0 PF: > { %s14_s19 = sadd.s32 1, %s927_s19   ;;  %s1122_s15 = smov %s919_s17 }
  0xd1   : > { %p11_p7 = scmp.ge.s32.totalorder %s14_s19, 12   ;;  %s1123_s16 = smov %s923_s18 }
  0xd2   : > { %s1124_s17 = smov %s1127_s2  ;;  %s1125_s18 = smov %s1131_s20 }
  0xd3   :  { %13 = sbr.rel (!%p11_p7) target bundleno = 3 (0x3), region = 71 }

// kernel: conv3d_cd_forward.2
= control target key start
LH: loop header
LB: loop body
LE: loop exit
PB: predicated region body
PF: predicated region fallthrough
CT: control target
= control target key end

     0   :  { %s2881_s15 = smov 0   ;;  %s2883_s16 = smov 0   ;;  %s4208_s0 = inlined_call_operand.vmem [shape: bf16[2,7,144,4], index: 0, kind: input, shape index: {}]   ;;  %s4209_s1 = inlined_call_operand.vmem [shape: f32[7,7,3,4,8], index: 1, kind: input, shape index: {}]   ;;  %s4210_s2 = inlined_call_operand.vmem [shape: f32[4,8], index: 2, kind: input, shape index: {}]   ;;  %s4211_s3 = inlined_call_operand.vmem [shape: f32[1,8], index: 3, kind: input, shape index: {}]   ;;  %s4212_s4 = inlined_call_operand.vmem [shape: f32[2,1,18,8], index: 4, kind: output, shape index: {}]  }
   0x1   :  { %s2885_s17 = smov 0   ;;  %s2887_s18 = smov 0  }
   0x2   :  { %s2889_s19 = smov 0  }
   0x3 LB: > { %s26_s2 = sadd.s32 1, %s2842_s17  ;;  %s33_s20 = sadd.s32 1, %s2846_s18  ;;  %s2850_s19 = sphi %s2889_s19, %s14_s19   ;;  %s2846_s18 = sphi %s2887_s18, %s4436_s18   ;;  %s2842_s17 = sphi %s2885_s17, %s4435_s17   ;;  %s2838_s16 = sphi %s2883_s16, %s4434_s16   ;;  %s2834_s15 = sphi %s2881_s15, %s4433_s15  }
   0x4   : > { %p27_p0 = scmp.ge.s32.totalorder %s26_s2, 7  ;;  %p2325_p1 = scmp.ge.s32.totalorder %s2850_s19, 1 }
   0x5   : > { %p193_p2 = scmp.lt.s32.totalorder %s2850_s19, 15 }
   0x6   : > { %s4438_s2 = smov (%p27_p0, %s26_s2), 0  ;;  %s4440_s20 = smov (!%p27_p0, %s33_s20), %s2846_s18 }
   0x7   : > { %p194_p3 = pnand %p2325_p1, %p193_p2  ;;  %p35_p4 = scmp.ge.s32.totalorder %s4440_s20, 2 }
   0x9   : > { %s4442_s20 = smov (%p35_p4, %s4440_s20), 0  ;;  %197 = sbr.rel (%p194_p3) target bundleno = 413 (0x19d), region = 36 }
  0x10   : > { %p229_p5 = scmp.lt.s32.totalorder %s2838_s16, 1  ;;  %p231_p6 = scmp.lt.s32.totalorder %s2834_s15, 6 }
  0x11   : > { %p2328_p7 = scmp.ne.s32.totalorder %s2834_s15, 0 }
  0x12   : > { %s4444_s16 = smov (!%p229_p5, %s2838_s16), 1  ;;  %v2329_v0 = vld [vmem:[%s4211_s3] ss:$0 sm:$0xff] (!%p2328_p7)  ;;  %vm260_vm0 = vcmask (!%p2328_p7), 64512   ;;  %vm263_vm1 = vcmask (!%p2328_p7), 58368  }
  0x13   : > { %s232_s21 = scalar_select %p231_p6, %s2834_s15, 6 }
  0x14   : > { %s2357_s22 = smul.u32 126, %s4444_s16 }
  0x15   : > { %s2356_s23 = smul.u32 18, %s232_s21 }
  0x16   : > { %s2358_s24 = smul.u32 24, %s4444_s16 }
  0x17   : > { %s235_s25 = sadd.s32 %s2357_s22, %s2356_s23  ;;  %251 = sbr.rel (%p2328_p7) target bundleno = 30 (0x1e), region = 40 }
  0x18   : > { %s2326_s26 = sshll.u32 %s235_s25, 2  ;;  %s2918_s29 = scalar_lea.vmem %s4212_s4, %s2358_s24 }
  0x19   : > { %s2923_s6 = scalar_lea.vmem %s4208_s0, %s2326_s26  ;;  %261 = vst.msk [vmem:[%s2918_s29] sm:$0xff] (!%p2328_p7), %vm260_vm0, %v2329_v0  ;;  %262 = vst.msk [vmem:[%s2918_s29 + $0x8] sm:$0xff] (!%p2328_p7), %vm260_vm0, %v2329_v0 }
  0x1a   : > { %264 = vst.msk [vmem:[%s2918_s29 + $0x10] sm:$0x3] (!%p2328_p7), %vm263_vm1, %v2329_v0 }
  0x1e PF: > { %v2933_v1 = vld [vmem:[%s2923_s6 + $0xc] ss:$36 sps:$4 sm:$0xff]   ;;  %v2353_v3 = vld [vmem:[%s2923_s6] sm:$0xff]   ;;  %v4215_v4 = vmov 1   ;;  %v791_v10 = vld [vmem:[%s2923_s6 + $0x14] sm:$0xff]   ;;  %v4219_v27 = vmov 2  }
  0x1f   : > { %v524_v2 = vld [vmem:[%s2923_s6 + $0x10] sm:$0x3]  ;;  %2450 = vset.pattern.permute.xlu0 %v4215_v4  ;;  %2403 = vset.pattern.permute.xlu1 %v4215_v4  ;;  %v529_v5 = vunpack.c.l.bf16 %v2933_v1  ;;  %v2354_v7 = vunpack.c.l.bf16 %v2353_v3  ;;  %v2355_v8 = vunpack.c.h.bf16 %v2353_v3  ;;  %v790_v9 = vld [vmem:[%s2923_s6 + $0x10] sm:$0xc]  ;;  %v267_v11 = vld [vmem:[%s2923_s6 + $0x8] sm:$0x1]  ;;  %v797_v13 = vunpack.c.l.bf16 %v791_v10 }
  0x20   : > { %v530_v6 = vunpack.c.l.bf16 %v524_v2  ;;  %v796_v12 = vunpack.c.l.bf16 %v790_v9  ;;  %v273_v14 = vunpack.c.l.bf16 %v267_v11  ;;  %v368_v15 = vld [vmem:[%s2923_s6 + $0x8] sm:$0x3]  ;;  %v445_v25 = vld [vmem:[%s2923_s6] sm:$0xe]  ;;  %v792_v28 = vld [vmem:[%s2923_s6 + $0x18] sm:$0x7]  ;;  %v908_v35 = vunpack.c.h.bf16 %v791_v10 }
  0x21   : > { %v1363_v16 = vld [vmem:[%s2923_s6 + $0x24] sm:$0xff]   ;;  %v2947_v18 = vpack.i.bf16 %v2355_v8, %v2354_v7  ;;  %v372_v19 = vunpack.c.l.bf16 %v368_v15  ;;  %v449_v29 = vunpack.c.l.bf16 %v445_v25  ;;  %v1059_v31 = vld [vmem:[%s2923_s6 + $0x1c] sm:$0xff]   ;;  %v1172_v32 = vld [vmem:[%s2923_s6 + $0x18] sm:$0x8]  ;;  %v798_v34 = vunpack.c.l.bf16 %v792_v28  ;;  %s268_s9 = smul.u32 84, %s2834_s15 }
  0x22   : > { %v2945_v17 = vpack.i.bf16 %v530_v6, %v529_v5  ;;  %v2951_v20 = vpack.i.bf16 %v797_v13, %v796_v12  ;;  %v1369_v22 = vunpack.c.l.bf16 %v1363_v16  ;;  %v1370_v23 = vunpack.c.h.bf16 %v1363_v16  ;;  %v522_v26 = vld [vmem:[%s2923_s6 + $0x8] sm:$0xe]  ;;  %v1173_v33 = vld [vmem:[%s2923_s6 + $0x1c] sm:$0xff]   ;;  %v1175_v36 = vld [vmem:[%s2923_s6 + $0x24] sm:$0x1] }
  0x23   : > { %2405 = vperm.xlu1 %2403, %v2947_v18   ;;  %v2953_v21 = vpack.i.bf16 %v372_v19, %v273_v14  ;;  %v528_v30 = vunpack.c.l.bf16 %v522_v26  ;;  %v1065_v37 = vunpack.c.l.bf16 %v1059_v31  ;;  %v1066_v38 = vunpack.c.h.bf16 %v1059_v31  ;;  %v1365_v47 = vld [vmem:[%s2923_s6 + $0x2c] sm:$0x1]  ;;  %v1620_v55 = vld [vmem:[%s2923_s6 + $0x34] sm:$0x3]  ;;  %v1542_v58 = vld [vmem:[%s2923_s6 + $0x24] sm:$0xe]  ;;  %s3083_s12 = scalar_lea.vmem %s4209_s1, %s268_s9 }
  0x24   : > { %2452 = vperm.xlu0 %2450, %v2945_v17   ;;  %v2957_v24 = vpack.i.bf16 %v1370_v23, %v1369_v22  ;;  %v4217_v39 = vmov 3   ;;  %v1179_v41 = vunpack.c.l.bf16 %v1172_v32  ;;  %v1180_v42 = vunpack.c.l.bf16 %v1173_v33  ;;  %v1466_v48 = vld [vmem:[%s2923_s6 + $0x2c] sm:$0x3]  ;;  %v636_v0 = vld [vmem:[%s2923_s6 + $0x10] sm:$0x7] }
  0x25   : > { %v2600_v40 = vpack.i.bf16 %v528_v30, %v449_v29  ;;  %v1181_v43 = vunpack.c.h.bf16 %v1173_v33  ;;  %v1182_v44 = vunpack.c.l.bf16 %v1175_v36  ;;  %v2973_v45 = vpack.i.bf16 %v1066_v38, %v1065_v37  ;;  %v1618_v59 = vld [vmem:[%s2923_s6 + $0x2c] sm:$0xe]  ;;  %v981_v5 = vld [vmem:[%s2923_s6 + $0x10] sm:$0x8]  ;;  %v1058_v6 = vld [vmem:[%s2923_s6 + $0x18] sm:$0x8] }
  0x26   : > { %v2975_v46 = vpack.i.bf16 %v1180_v42, %v1179_v41  ;;  %v2981_v50 = vpack.i.bf16 %v908_v35, %v798_v34  ;;  %v4213_v51 = vmov 0   ;;  %v1371_v52 = vunpack.c.l.bf16 %v1365_v47  ;;  %v1884_v11 = vld [vmem:[%s2923_s6 + $0x34] sm:$0xc]  ;;  %v1885_v12 = vld [vmem:[%s2923_s6 + $0x38] sm:$0xf] }
  0x27   : > { %2410 = vperm.xlu1 %2403, %v2953_v21   ;;  %v2979_v49 = vpack.i.bf16 %v1182_v44, %v1181_v43  ;;  %v1470_v53 = vunpack.c.l.bf16 %v1466_v48  ;;  %v1625_v56 = vunpack.c.h.bf16 %v2933_v1  ;;  %v1626_v57 = vunpack.c.l.bf16 %v1620_v55  ;;  %v713_v1 = vld [vmem:[%s2923_s6 + $0x8] sm:$0xc]  ;;  %v1732_v16 = vld [vmem:[%s2923_s6 + $0x34] sm:$0x7]  ;;  %v1998_v23 = vld [vmem:[%s2923_s6 + $0x3c] sm:$0xf] }
  0x28   : > { %2492 = vperm.xlu0 %2450, %v2951_v20   ;;  %v1546_v61 = vunpack.c.l.bf16 %v1542_v58  ;;  %v1624_v62 = vunpack.c.l.bf16 %v1618_v59  ;;  %v640_v2 = vunpack.c.l.bf16 %v636_v0  ;;  %v717_v3 = vunpack.c.l.bf16 %v713_v1  ;;  %v2074_v28 = vld [vmem:[%s2923_s6 + $0x34] sm:$0x8]  ;;  %v2330_v41 = vld [vmem:[%s3083_s12 + $0x4] sm:$0xf]  ;;  %v2331_v42 = vld [vmem:[%s3083_s12 + $0x8] sm:$0xf] }
  0x29   : > { %v2985_v54 = vpack.i.bf16 %v1470_v53, %v1371_v52  ;;  %v2997_v60 = vpack.i.bf16 %v1626_v57, %v1625_v56  ;;  %v985_v8 = vunpack.c.l.bf16 %v981_v5  ;;  %v1064_v9 = vunpack.c.l.bf16 %v1058_v6  ;;  %v2334_v43 = vld [vmem:[%s3083_s12 + $0x14] sm:$0xf]  ;;  %v2335_v44 = vld [vmem:[%s3083_s12 + $0x18] sm:$0xf]  ;;  %v2337_v52 = vld [vmem:[%s3083_s12 + $0x20] sm:$0xf] }
  0x2a   : > { %v3000_v63 = vpack.i.bf16 %v1624_v62, %v1546_v61  ;;  %v2469_v7 = vpack.i.bf16 %v717_v3, %v640_v2  ;;  %v1890_v13 = vunpack.c.l.bf16 %v1884_v11  ;;  %v1891_v14 = vunpack.c.l.bf16 %v1885_v12 }
  0x2b   : > { %2414 = vset.pattern.permute.xlu1 %v4219_v27  ;;  %v2693_v10 = vpack.i.bf16 %v1064_v9, %v985_v8  ;;  %v3058_v29 = vunpack.c.l.bf16 %v2074_v28  ;;  %v289_v32 = vlaneseq  ;;  %vm510_vm2 = vcmask 1045504  }
  0x2c   : > { %2590 = vperm.xlu0 %2450, %v2957_v24   ;;  %2416 = vperm.xlu1 %2414, %v2953_v21   ;;  %v3022_v15 = vpack.i.bf16 %v1891_v14, %v1890_v13  ;;  %vm701_vm3 = vcmask 1044480   ;;  %vm433_vm4 = vcmask 1046528   ;;  %vm778_vm5 = vcmask 1043456  }
  0x2d   : > { %4287 = vst [vmem:[#allocation5_spill] sm:$0xff] %v3058_v29  ;;  %v290_v35 = vshrl.u32 %v289_v32, 7  ;;  %vm969_vm6 = vcmask 1042432   ;;  %vm1046_vm7 = vcmask 1041408   ;;  %vm1303_vm8 = vcmask 1040384  }
  0x2e   : > { %4284 = vst [vmem:[#allocation2_spill] sm:$0xff] %v3022_v15  ;;  %vm2159_vm9 = vcmask 58368   ;;  %vm2156_vm10 = vcmask 64512  }
  0x2f   : > { %v3088_v37 = vsub.s32 1, %v290_v35  ;;  %v3122_v58 = vsub.s32 3, %v290_v35  ;;  %v3135_v1 = vsub.s32 0, %v290_v35 }
  0x30   : > { %2594 = vset.pattern.permute.xlu0 %v4219_v27  ;;  %2420 = vset.pattern.permute.xlu1 %v4217_v39 }
  0x31   : > { %2596 = vperm.xlu0 %2594, %v2947_v18   ;;  %2422 = vperm.xlu1 %2420, %v2947_v18   ;;  %4289 = vst [vmem:[#allocation7_spill] sm:$0xff] %v3088_v37  ;;  %v3105_v48 = vrot.slane %v2330_v41, %v3088_v37  ;;  %v3114_v55 = vrot.slane %v2331_v42, %v3088_v37  ;;  %4291 = vst [vmem:[#allocation9_spill] sm:$0xff] %v3122_v58 }
  0x32   : > { %v3127_v61 = vrot.slane %v2334_v43, %v3088_v37  ;;  %v3130_v62 = vrot.slane %v2335_v44, %v3088_v37  ;;  %4294 = vst [vmem:[#allocation12_spill] sm:$0xff] %v3135_v1  ;;  %v3138_v2 = vrot.slane %v2337_v52, %v3088_v37  ;;  %v3166_v13 = vrot.slane %v2330_v41, %v3122_v58 }
  0x33   : > { %v3169_v14 = vrot.slane %v2331_v42, %v3122_v58  ;;  %v3198_v32 = vrot.slane %v2334_v43, %v3135_v1 }
  0x34   : > { %4292 = vst [vmem:[#allocation10_spill] sm:$0xff] %v3130_v62  ;;  %4295 = vst [vmem:[#allocation13_spill] sm:$0xff] %v3138_v2 }
  0x35   : > { %2601 = vperm.xlu0 %2594, %v2600_v40   ;;  %2426 = vset.pattern.permute.xlu1 %v4213_v51  ;;  %4298 = vst [vmem:[#allocation16_spill] sm:$0xff] %v3169_v14 }
  0x36   : > { %2428 = vperm.xlu1 %2426, %v2600_v40  }
  0x39   : > { %2606 = vperm.xlu0 %2594, %v2981_v50  }
  0x3a   : > { %2432 = vset.pattern.permute.xlu1 %v4215_v4 }
  0x3b   : > { %2434 = vperm.xlu1 %2432, %v2600_v40  }
  0x3d   : > { %2611 = vperm.xlu0 %2594, %v2973_v45  }
  0x3f   : > { %2438 = vset.pattern.permute.xlu1 %v4217_v39 }
  0x40   : > { %2440 = vperm.xlu1 %2438, %v2600_v40   ;;  %v270_v40 = vld [vmem:[%s3083_s12] sm:$0xf] }
  0x41   : > { %2616 = vperm.xlu0 %2594, %v2975_v46   ;;  %v3102_v47 = vrot.slane %v270_v40, %v3088_v37  ;;  %v3163_v12 = vrot.slane %v270_v40, %v3122_v58 }
  0x44   : > { %2444 = vset.pattern.permute.xlu1 %v4213_v51 }
  0x45   : > { %2633 = vperm.xlu0 %2594, %v2985_v54   ;;  %2446 = vperm.xlu1 %2444, %v2945_v17  }
  0x49   : > { %2673 = vperm.xlu0 %2594, %v2997_v60   ;;  %2456 = vset.pattern.permute.xlu1 %v4219_v27 }
  0x4a   : > { %2458 = vperm.xlu1 %2456, %v2945_v17  }
  0x4d   : > { %2677 = vset.pattern.permute.xlu0 %v4213_v51 }
  0x4e   : > { %2679 = vperm.xlu0 %2677, %v2947_v18   ;;  %2462 = vset.pattern.permute.xlu1 %v4217_v39  ;;  %v1736_v18 = vunpack.c.l.bf16 %v1732_v16 }
  0x4f   : > { %2464 = vperm.xlu1 %2462, %v2945_v17   ;;  %v1808_v17 = vld [vmem:[%s2923_s6 + $0x2c] sm:$0xc] }
  0x50   : > { %v1812_v19 = vunpack.c.l.bf16 %v1808_v17  ;;  %v3176_v17 = vrot.slane %v2331_v42, %v3135_v1 }
  0x52   : > { %2684 = vperm.xlu0 %2677, %v2953_v21   ;;  %v3030_v22 = vpack.i.bf16 %v1812_v19, %v1736_v18 }
  0x53   : > { %2468 = vset.pattern.permute.xlu1 %v4215_v4 }
  0x54   : > { %2470 = vperm.xlu1 %2468, %v2469_v7   ;;  %4285 = vst [vmem:[#allocation3_spill] sm:$0xff] %v3030_v22 }
  0x56   : > { %2689 = vperm.xlu0 %2677, %v2469_v7  }
  0x58   : > { %2474 = vset.pattern.permute.xlu1 %v4219_v27 }
  0x59   : > { %2476 = vperm.xlu1 %2474, %v2469_v7  }
  0x5a   : > { %2694 = vperm.xlu0 %2677, %v2693_v10  }
  0x5d   : > { %2480 = vset.pattern.permute.xlu1 %v4213_v51 }
  0x5e   : > { %2699 = vperm.xlu0 %2677, %v2979_v49   ;;  %2482 = vperm.xlu1 %2480, %v2951_v20  }
  0x62   : > { %2704 = vperm.xlu0 %2677, %v3000_v63   ;;  %2487 = vperm.xlu1 %2480, %v2981_v50  }
  0x66   : > { %2733 = vperm.xlu0 %2677, %v3022_v15   ;;  %2496 = vset.pattern.permute.xlu1 %v4215_v4 }
  0x67   : > { %2498 = vperm.xlu1 %2496, %v2981_v50  }
  0x6a   : > { %2737 = vset.pattern.permute.xlu0 %v4217_v39 }
  0x6b   : > { %2739 = vperm.xlu0 %2737, %v2953_v21   ;;  %2502 = vset.pattern.permute.xlu1 %v4219_v27  ;;  %v1886_v21 = vld [vmem:[%s2923_s6 + $0x3c] sm:$0x7] }
  0x6c   : > { %2504 = vperm.xlu1 %2502, %v2951_v20   ;;  %v1892_v25 = vunpack.c.l.bf16 %v1886_v21 }
  0x6f   : > { %2744 = vperm.xlu0 %2737, %v2469_v7  }
  0x70   : > { %2508 = vset.pattern.permute.xlu1 %v4217_v39 }
  0x71   : > { %2510 = vperm.xlu1 %2508, %v2951_v20   ;;  %v2002_v20 = vunpack.c.l.bf16 %v1998_v23  ;;  %v3185_v23 = vld [vmem:[%s3083_s12 + $0x24] sm:$0xf] }
  0x72   : > { %4300 = vst [vmem:[#allocation18_spill] sm:$0xff] %v3185_v23 }
  0x73   : > { %2749 = vperm.xlu0 %2737, %v2693_v10   ;;  %v3047_v26 = vpack.i.bf16 %v2002_v20, %v1892_v25 }
  0x75   : > { %2515 = vperm.xlu1 %2508, %v2981_v50   ;;  %4286 = vst [vmem:[#allocation4_spill] sm:$0xff] %v3047_v26  ;;  %v2333_v50 = vld [vmem:[%s3083_s12 + $0x10] sm:$0xf] }
  0x76   : > { %v3120_v57 = vrot.slane %v2333_v50, %v3088_v37  ;;  %v3182_v19 = vrot.slane %v2333_v50, %v3135_v1  ;;  %v3195_v28 = vrot.slane %v2333_v50, %v3122_v58 }
  0x77   : > { %2754 = vperm.xlu0 %2737, %v2979_v49  }
  0x79   : > { %2519 = vset.pattern.permute.xlu1 %v4215_v4 }
  0x7a   : > { %2521 = vperm.xlu1 %2519, %v2693_v10  }
  0x7b   : > { %2759 = vperm.xlu0 %2737, %v3000_v63  }
  0x7e   : > { %2525 = vset.pattern.permute.xlu1 %v4219_v27 }
  0x7f   : > { %2787 = vperm.xlu0 %2737, %v3022_v15   ;;  %2527 = vperm.xlu1 %2525, %v2693_v10  }
  0x83   : > { %2791 = vset.pattern.permute.xlu0 %v4215_v4  ;;  %2531 = vset.pattern.permute.xlu1 %v4213_v51 }
  0x84   : > { %2793 = vperm.xlu0 %2791, %v3030_v22   ;;  %2533 = vperm.xlu1 %2531, %v2973_v45  }
  0x88   : > { %2798 = vperm.xlu0 %2791, %v3047_v26   ;;  %2537 = vset.pattern.permute.xlu1 %v4215_v4  ;;  %v3236_v26 = vrot.slane %v2337_v52, %v3122_v58 }
  0x89   : > { %2539 = vperm.xlu1 %2537, %v2973_v45  }
  0x8a   : > { %4310 = vst [vmem:[#allocation27_spill] sm:$0xff] %v3236_v26 }
  0x8c   : > { %2095 = vperm.xlu0 %2791, %v3058_v29   ;;  %v3216_v29 = vrot.slane %v2337_v52, %v3135_v1 }
  0x8d   : > { %2543 = vset.pattern.permute.xlu1 %v4217_v39 }
  0x8e   : > { %2545 = vperm.xlu1 %2543, %v2973_v45   ;;  %v2336_v45 = vld [vmem:[%s3083_s12 + $0x1c] sm:$0xf]  ;;  %4304 = vst [vmem:[#allocation21_spill] sm:$0xff] %v3216_v29 }
  0x8f   : > { %v3133_v0 = vrot.slane %v2336_v45, %v3088_v37  ;;  %v3233_v15 = vrot.slane %v2336_v45, %v3122_v58 }
  0x90   : > { %2811 = vset.pattern.permute.xlu0 %v4217_v39 }
  0x91   : > { %4293 = vst [vmem:[#allocation11_spill] sm:$0xff] %v3133_v0  ;;  %4309 = vst [vmem:[#allocation26_spill] sm:$0xff] %v3233_v15 }
  0x92   : > { %2549 = vset.pattern.permute.xlu1 %v4213_v51 }
  0x93   : > { %2551 = vperm.xlu1 %2549, %v2975_v46  }
  0x97   : > { %2555 = vset.pattern.permute.xlu1 %v4215_v4 }
  0x98   : > { %2557 = vperm.xlu1 %2555, %v2975_v46  }
  0x9c   : > { %2562 = vperm.xlu1 %2555, %v2979_v49  }
  0xa0   : > { %2566 = vset.pattern.permute.xlu1 %v4219_v27 }
  0xa1   : > { %2568 = vperm.xlu1 %2566, %v2979_v49   ;;  %v2332_v49 = vld [vmem:[%s3083_s12 + $0xc] sm:$0xf] }
  0xa2   : > { %v3069_v30 = vpop.permute.xlu1 %2405  ;;  %v3117_v56 = vrot.slane %v2332_v49, %v3088_v37  ;;  %v3179_v18 = vrot.slane %v2332_v49, %v3135_v1  ;;  %v3188_v25 = vrot.slane %v2332_v49, %v3122_v58 }
  0xa3   : > { %v3071_v31 = vpop.permute.xlu0 %2452 }
  0xa5   : > { %2572 = vset.pattern.permute.xlu1 %v4217_v39  ;;  %v3212_v39 = vrot.slane %v2334_v43, %v3122_v58 }
  0xa6   : > { %2574 = vperm.xlu1 %2572, %v2975_v46   ;;  %v3076_v33 = vpop.permute.xlu1 %2410  ;;  %v3099_v46 = vsub.s32 2, %v290_v35 }
  0xa7   : > { %v3078_v34 = vpop.permute.xlu0 %2492 }
  0xa8   : > { %4290 = vst [vmem:[#allocation8_spill] sm:$0xff] %v3099_v46  ;;  %v3141_v3 = vrot.slane %v270_v40, %v3099_v46  ;;  %v3144_v5 = vrot.slane %v2330_v41, %v3099_v46  ;;  %v3147_v6 = vrot.slane %v2331_v42, %v3099_v46  ;;  %v3151_v7 = vrot.slane %v2332_v49, %v3099_v46 }
  0xa9   : > { %v3154_v8 = vrot.slane %v2333_v50, %v3099_v46  ;;  %v3157_v10 = vrot.slane %v2335_v44, %v3099_v46  ;;  %v3160_v11 = vrot.slane %v2336_v45, %v3099_v46  ;;  %v3173_v16 = vrot.slane %v2337_v52, %v3099_v46 }
  0xaa   : > { %2578 = vset.pattern.permute.xlu1 %v4213_v51  ;;  %v3192_v20 = vrot.slane %v3185_v23, %v3099_v46  ;;  %v3201_v35 = vrot.slane %v2334_v43, %v3099_v46  ;;  %v3209_v49 = vrot.slane %v2330_v41, %v3135_v1  ;;  %v3220_v46 = vrot.slane %v3185_v23, %v3135_v1 }
  0xab   : > { %v3086_v36 = vpop.permute.xlu0 %2590  ;;  %2580 = vperm.xlu1 %2578, %v2957_v24   ;;  %v3091_v38 = vpop.permute.xlu1 %2416  ;;  %4296 = vst [vmem:[#allocation14_spill] sm:$0xff] %v3157_v10  ;;  %4297 = vst [vmem:[#allocation15_spill] sm:$0xff] %v3160_v11  ;;  %v3227_v41 = vrot.slane %v2336_v45, %v3135_v1  ;;  %v3230_v43 = vrot.slane %v2335_v44, %v3122_v58 }
  0xac   : > { %4288 = vst [vmem:[#allocation6_spill] sm:$0xff] %v3086_v36  ;;  %4299 = vst [vmem:[#allocation17_spill] sm:$0xff] %v3173_v16  ;;  %v4303_v36 = vmov 2  }
  0xad   : > { %4301 = vst [vmem:[#allocation19_spill] sm:$0xff] %v3192_v20  ;;  %4305 = vst [vmem:[#allocation22_spill] sm:$0xff] %v3220_v46 }
  0xae   : > { %4307 = vst [vmem:[#allocation24_spill] sm:$0xff] %v3227_v41  ;;  %4308 = vst [vmem:[#allocation25_spill] sm:$0xff] %v3230_v43  ;;  %v4312_v41 = vmov 3  }
  0xaf   : > { %2585 = vperm.xlu1 %2578, %v2985_v54  }
  0xb0   : > { %v3111_v53 = vpop.permute.xlu0 %2596  ;;  %v3124_v59 = vpop.permute.xlu1 %2422 }
  0xb3   : > { %2620 = vset.pattern.permute.xlu1 %v4215_v4  ;;  %v3206_v4 = vrot.slane %v270_v40, %v3135_v1  ;;  %v3224_v40 = vrot.slane %v2335_v44, %v3135_v1 }
  0xb4   : > { %v2602_v9 = vpop.permute.xlu0 %2601  ;;  %2622 = vperm.xlu1 %2620, %v2985_v54  }
  0xb5   : > { %v2429_v21 = vpop.permute.xlu1 %2428  ;;  %v2604_v42 = vunpack.i.h.bf16 %v2602_v9  ;;  %v2603_v50 = vunpack.i.l.bf16 %v2602_v9  ;;  %4306 = vst [vmem:[#allocation23_spill] sm:$0xff] %v3224_v40 }
  0xb6   : > { %v2431_v27 = vunpack.i.h.bf16 %v2429_v21  ;;  %v2430_v20 = vunpack.i.l.bf16 %v2429_v21  ;;  %v2408_v21 = vunpack.i.h.bf16 %v3069_v30 }
  0xb7   : > { %v594_v46 = vmul.f32 %v2604_v42, %v3151_v7  ;;  %v678_v1 = vmul.f32 %v2604_v42, %v3154_v8  ;;  %v487_v44 = vmul.f32 %v2603_v50, %v3147_v6  ;;  %v2455_v42 = vunpack.i.h.bf16 %v3071_v31 }
  0xb8   : > { %v3203_v51 = vpop.permute.xlu0 %2606  ;;  %2626 = vset.pattern.permute.xlu1 %v4303_v36  ;;  %v550_v43 = vmul.f32 %v2431_v27, %v3179_v18  ;;  %v650_v45 = vmul.f32 %v2431_v27, %v3182_v19  ;;  %v459_v15 = vmul.f32 %v2430_v20, %v3176_v17  ;;  %v2454_v50 = vunpack.i.l.bf16 %v3071_v31 }
  0xb9   : > { %4302 = vst [vmem:[#allocation20_spill] sm:$0xff] %v3203_v51  ;;  %2628 = vperm.xlu1 %2626, %v2957_v24   ;;  %v3257_v27 = vrot.slane %v3185_v23, %v3088_v37  ;;  %v3260_v20 = vmul.f32 %v2408_v21, %v3102_v47  ;;  %v3268_v31 = vmul.f32 %v2408_v21, %v3114_v55  ;;  %v2413_v37 = vunpack.i.h.bf16 %v3076_v33 }
  0xba   : > { %v2435_v9 = vpop.permute.xlu1 %2434 }
  0xbb   : > { %v2437_v10 = vunpack.i.h.bf16 %v2435_v9  ;;  %v2436_v29 = vunpack.i.l.bf16 %v2435_v9  ;;  %v2407_v9 = vunpack.i.l.bf16 %v3069_v30  ;;  %4313 = vst [vmem:[#allocation29_spill] sm:$0xff] %v3257_v27  ;;  %v3265_v30 = vmul.f32 %v2408_v21, %v3105_v48 }
  0xbc   : > { %v3240_v40 = vpop.permute.xlu0 %2611 }
  0xbd   : > { %4311 = vst [vmem:[#allocation28_spill] sm:$0xff] %v3240_v40  ;;  %v572_v52 = vmul.f32 %v2437_v10, %v3117_v56  ;;  %v664_v58 = vmul.f32 %v2437_v10, %v3120_v57  ;;  %v473_v26 = vmul.f32 %v2436_v29, %v3114_v55  ;;  %2637 = vset.pattern.permute.xlu1 %v4312_v41 }
  0xbe   : > { %2639 = vperm.xlu1 %2637, %v2957_v24   ;;  %v3277_v21 = vmul.f32 %v2407_v9, %v3102_v47 }
  0xbf   : > { %v476_v10 = vadd.f32 %v473_v26, %v459_v15  ;;  %v575_v40 = vadd.f32 %v572_v52, %v550_v43  ;;  %v667_v29 = vadd.f32 %v664_v58, %v650_v45  ;;  %v2441_v16 = vpop.permute.xlu1 %2440  ;;  %v2412_v15 = vunpack.i.l.bf16 %v3076_v33 }
  0xc0   : > { %v3262_v11 = vpop.permute.xlu0 %2616  ;;  %v2443_v24 = vunpack.i.h.bf16 %v2441_v16  ;;  %v2442_v22 = vunpack.i.l.bf16 %v2441_v16  ;;  %v3280_v16 = vmul.f32 %v2407_v9, %v3105_v48  ;;  %v2494_v33 = vunpack.i.l.bf16 %v3078_v34 }
  0xc1   : > { %4314 = vst [vmem:[#allocation30_spill] sm:$0xff] %v3262_v11  ;;  %v490_v23 = vadd.f32 %v487_v44, %v476_v10  ;;  %v597_v27 = vadd.f32 %v594_v46, %v575_v40  ;;  %v681_v51 = vadd.f32 %v678_v1, %v667_v29  ;;  %v573_v44 = vmul.f32 %v2454_v50, %v3117_v56 }
  0xc2   : > { %v616_v26 = vmul.f32 %v2443_v24, %v3188_v25  ;;  %v692_v58 = vmul.f32 %v2443_v24, %v3195_v28  ;;  %v501_v43 = vmul.f32 %v2442_v22, %v3169_v14  ;;  %2644 = vperm.xlu1 %2637, %v2985_v54   ;;  %v2495_v46 = vunpack.i.h.bf16 %v3078_v34 }
  0xc3   : > { %v574_v52 = vmul.f32 %v2455_v42, %v3117_v56  ;;  %v665_v9 = vmul.f32 %v2454_v50, %v3120_v57  ;;  %v742_v24 = vmul.f32 %v2454_v50, %v3127_v61  ;;  %v3297_v11 = vmul.f32 %v2413_v37, %v3105_v48 }
  0xc4   : > { %v3284_v1 = vpop.permute.xlu0 %2633  ;;  %v3287_v40 = vadd.f32 %v501_v43, %v490_v23  ;;  %v3289_v45 = vadd.f32 %v616_v26, %v597_v27  ;;  %v3291_v22 = vadd.f32 %v692_v58, %v681_v51  ;;  %v2447_v54 = vpop.permute.xlu1 %2446  ;;  %v3300_v34 = vmul.f32 %v2413_v37, %v3114_v55 }
  0xc5   : > { %4315 = vst [vmem:[#allocation31_spill] sm:$0xff] %v3284_v1  ;;  %v2449_v10 = vunpack.i.h.bf16 %v2447_v54  ;;  %v2448_v29 = vunpack.i.l.bf16 %v2447_v54  ;;  %4316 = vst [vmem:[#allocation32_spill] sm:$0xff] %v3297_v11  ;;  %v3303_v23 = vmul.f32 %v2412_v15, %v3102_v47  ;;  %v4319_v51 = vmov 1  }
  0xc6   : > { %4317 = vst [vmem:[#allocation33_spill] sm:$0xff] %v3300_v34  ;;  %2648 = vset.pattern.permute.xlu1 %v4319_v51  ;;  %v3307_v27 = vmul.f32 %v2495_v46, %v3130_v62  ;;  %v3316_v37 = vmul.f32 %v2494_v33, %v3130_v62  ;;  %v3319_v47 = vunpack.i.h.bf16 %v3111_v53  ;;  %v3324_v26 = vmul.f32 %v2494_v33, %v3133_v0 }
  0xc7   : > { %4318 = vst [vmem:[#allocation34_spill] sm:$0xff] %v3303_v23  ;;  %v552_v42 = vmul.f32 %v2449_v10, %v3179_v18  ;;  %v551_v50 = vmul.f32 %v2448_v29, %v3179_v18  ;;  %2650 = vperm.xlu1 %2648, %v3000_v63   ;;  %v651_v55 = vmul.f32 %v2448_v29, %v3182_v19  ;;  %v2598_v56 = vunpack.i.l.bf16 %v3111_v53 }
  0xc8   : > { %4320 = vst [vmem:[#allocation35_spill] sm:$0xff] %v3307_v27  ;;  %v3313_v48 = vpop.permute.xlu0 %2673  ;;  %4322 = vst [vmem:[#allocation37_spill] sm:$0xff] %v3316_v37  ;;  %v728_v15 = vmul.f32 %v2448_v29, %v3198_v32  ;;  %v3327_v58 = vmul.f32 %v2495_v46, %v3133_v0  ;;  %v3330_v10 = vmul.f32 %v2495_v46, %v3138_v2  ;;  %v4326_v62 = vunpack.i.h.bf16 %v3091_v38 }
  0xc9   : > { %4321 = vst [vmem:[#allocation36_spill] sm:$0xff] %v3313_v48  ;;  %4323 = vst [vmem:[#allocation38_spill] sm:$0xff] %v3324_v26  ;;  %v577_v18 = vadd.f32 %v574_v52, %v552_v42  ;;  %v576_v43 = vadd.f32 %v573_v44, %v551_v50  ;;  %v2459_v54 = vpop.permute.xlu1 %2458  ;;  %v668_v48 = vadd.f32 %v665_v9, %v651_v55  ;;  %v3345_v53 = vunpack.i.h.bf16 %v3124_v59 }
  0xca   : > { %4324 = vst [vmem:[#allocation39_spill] sm:$0xff] %v3327_v58  ;;  %4325 = vst [vmem:[#allocation40_spill] sm:$0xff] %v3330_v10  ;;  %v745_v1 = vadd.f32 %v742_v24, %v728_v15  ;;  %v3336_v29 = vmul.f32 %v4326_v62, %v3144_v5  ;;  %v2461_v34 = vunpack.i.h.bf16 %v2459_v54  ;;  %v2460_v0 = vunpack.i.l.bf16 %v2459_v54 }
  0xcb   : > { %2654 = vset.pattern.permute.xlu1 %v4303_v36  ;;  %v411_v44 = vmul.f32 %v3319_v47, %v3144_v5  ;;  %v488_v46 = vmul.f32 %v3319_v47, %v3147_v6  ;;  %v2424_v52 = vunpack.i.l.bf16 %v3124_v59  ;;  %v337_v55 = vmul.f32 %v2598_v56, %v3141_v3 }
  0xcc   : > { %4327 = vst [vmem:[#allocation41_spill] sm:$0xff] %v3336_v29  ;;  %2656 = vperm.xlu1 %2654, %v3000_v63   ;;  %v596_v62 = vmul.f32 %v2461_v34, %v3151_v7  ;;  %v595_v24 = vmul.f32 %v2460_v0, %v3151_v7  ;;  %v679_v42 = vmul.f32 %v2460_v0, %v3154_v8  ;;  %v625_v58 = vrot.slane %v3289_v45, 2 }
  0xcd   : > { %v2680_v9 = vpop.permute.xlu0 %2679  ;;  %v756_v50 = vmul.f32 %v2460_v0, %v3201_v35  ;;  %v410_v15 = vmul.f32 %v2598_v56, %v3144_v5  ;;  %v425_v7 = vmul.f32 %v3345_v53, %v3166_v13 }
  0xce   : > { %v3355_v54 = vunpack.i.h.bf16 %v2680_v9  ;;  %v2681_v33 = vunpack.i.l.bf16 %v2680_v9  ;;  %v2465_v59 = vpop.permute.xlu1 %2464  ;;  %v598_v29 = vadd.f32 %v595_v24, %v576_v43  ;;  %v599_v63 = vadd.f32 %v596_v62, %v577_v18 }
  0xcf   : > { %v682_v2 = vadd.f32 %v679_v42, %v668_v48  ;;  %v759_v34 = vadd.f32 %v756_v50, %v745_v1  ;;  %v4328_v9 = vmov 0   ;;  %v502_v48 = vmul.f32 %v3345_v53, %v3169_v14 }
  0xd0   : > { %v383_v0 = vmul.f32 %v3355_v54, %v3209_v49  ;;  %v460_v5 = vmul.f32 %v3355_v54, %v3176_v17  ;;  %v293_v56 = vmul.f32 %v2681_v33, %v3206_v4  ;;  %2660 = vset.pattern.permute.xlu1 %v4328_v9  ;;  %v382_v1 = vmul.f32 %v2681_v33, %v3209_v49 }
  0xd1   : > { %v3364_v11 = vpop.permute.xlu0 %2684  ;;  %v2467_v18 = vunpack.i.h.bf16 %v2465_v59  ;;  %v2466_v43 = vunpack.i.l.bf16 %v2465_v59  ;;  %2662 = vperm.xlu1 %2660, %v2997_v60   ;;  %v359_v62 = vmul.f32 %v2424_v52, %v3163_v12  ;;  %v424_v59 = vmul.f32 %v2424_v52, %v3166_v13 }
  0xd2   : > { %v318_v24 = vadd.f32 %v3277_v21, %v293_v56  ;;  %v400_v42 = vadd.f32 %v3265_v30, %v383_v0  ;;  %v477_v50 = vadd.f32 %v3268_v31, %v460_v5  ;;  %v399_v26 = vadd.f32 %v3280_v16, %v382_v1 }
  0xd3   : > { %v618_v37 = vmul.f32 %v2467_v18, %v3188_v25  ;;  %v617_v14 = vmul.f32 %v2466_v43, %v3188_v25  ;;  %v693_v33 = vmul.f32 %v2466_v43, %v3195_v28  ;;  %v2471_v10 = vpop.permute.xlu1 %2470  ;;  %v702_v25 = vrot.slane %v3291_v22, 3 }
  0xd4   : > { %v414_v27 = vadd.f32 %v411_v44, %v400_v42  ;;  %v491_v23 = vadd.f32 %v488_v46, %v477_v50  ;;  %v413_v56 = vadd.f32 %v410_v15, %v399_v26  ;;  %v340_v16 = vadd.f32 %v337_v55, %v318_v24 }
  0xd5   : > { %v2690_v21 = vpop.permute.xlu0 %2689  ;;  %v620_v30 = vadd.f32 %v617_v14, %v598_v29  ;;  %v3381_v0 = vadd.f32 %v618_v37, %v599_v63  ;;  %v3383_v31 = vadd.f32 %v693_v33, %v682_v2  ;;  %2666 = vset.pattern.permute.xlu1 %v4319_v51  ;;  %v511_v2 = vrot.slane %v3287_v40, 2 }
  0xd6   : > { %v3387_v5 = vadd.f32 %v425_v7, %v414_v27  ;;  %v3389_v1 = vadd.f32 %v502_v48, %v491_v23  ;;  %2668 = vperm.xlu1 %2666, %v2997_v60   ;;  %v427_v45 = vadd.f32 %v424_v59, %v413_v56  ;;  %v770_v22 = vmul.f32 %v2466_v43, %v3212_v39 }
  0xd7   : > { %v626_v44 = vrot.slane %v620_v30, 2  ;;  %v4262_v26 = vrot.slane %v3381_v0, 2  ;;  %v4261_v14 = vrot.slane %v3383_v31, 3  ;;  %v4329_v15 = vunpack.i.h.bf16 %v3091_v38 }
  0xd8   : > { %v4264_v37 = vrot.slane %v3387_v5, 1  ;;  %v4263_v29 = vrot.slane %v3389_v1, 2  ;;  %v2477_v27 = vpop.permute.xlu1 %2476  ;;  %v434_v23 = vrot.slane %v427_v45, 1  ;;  %v362_v7 = vadd.f32 %v359_v62, %v340_v16 }
  0xd9   : > { %v3398_v46 = vpop.permute.xlu0 %2694  ;;  %v627_v52 = vsel %vm510_vm2, %v625_v58, %v626_v44  ;;  %v3404_v55 = vsel %vm510_vm2, %v626_v44, %v4262_v26  ;;  %v3409_v40 = vsel %vm701_vm3, %v702_v25, %v4261_v14  ;;  %v3414_v63 = vmul.f32 %v4329_v15, %v3147_v6  ;;  %v4348_v26 = vld [vmem:[#allocation28_spill] sm:$0xff] }
  0xda   : > { %v513_v58 = vsel %vm510_vm2, %v511_v2, %v4263_v29  ;;  %v3419_v48 = vadd.f32 %v770_v22, %v759_v34  ;;  %2708 = vset.pattern.permute.xlu1 %v4312_v41  ;;  %v294_v18 = vmul.f32 %v3355_v54, %v3206_v4  ;;  %v436_v43 = vsel %vm433_vm4, %v434_v23, %v4264_v37  ;;  %v4349_v37 = vld [vmem:[#allocation32_spill] sm:$0xff] }
  0xdb   : > { %v2473_v24 = vunpack.i.h.bf16 %v2471_v10  ;;  %v2472_v42 = vunpack.i.l.bf16 %v2471_v10  ;;  %2710 = vperm.xlu1 %2708, %v2997_v60   ;;  %v4330_v6 = vunpack.i.l.bf16 %v3091_v38  ;;  %v338_v34 = vmul.f32 %v3319_v47, %v3141_v3 }
  0xdc   : > { %v360_v50 = vmul.f32 %v3345_v53, %v3163_v12  ;;  %v442_v54 = vadd.f32 %v436_v43, %v362_v7  ;;  %v2686_v59 = vunpack.i.l.bf16 %v3364_v11  ;;  %v2692_v56 = vunpack.i.h.bf16 %v2690_v21 }
  0xdd   : > { %v3431_v62 = vmul.f32 %v4330_v6, %v3141_v3  ;;  %v3437_v33 = vpop.permute.xlu0 %2699  ;;  %v741_v10 = vmul.f32 %v2473_v24, %v3127_v61  ;;  %v666_v60 = vmul.f32 %v2472_v42, %v3120_v57  ;;  %v2483_v30 = vpop.permute.xlu1 %2482  ;;  %v743_v25 = vmul.f32 %v2472_v42, %v3127_v61  ;;  %v4332_v3 = vld [vmem:[#allocation20_spill] sm:$0xff]  ;;  %v4333_v61 = vld [vmem:[#allocation3_spill] sm:$0xff] }
  0xde   : > { %4331 = vst [vmem:[#allocation42_spill] sm:$0xff] %v3437_v33  ;;  %v519_v38 = vadd.f32 %v513_v58, %v442_v54  ;;  %v2691_v16 = vunpack.i.l.bf16 %v2690_v21  ;;  %v2479_v45 = vunpack.i.h.bf16 %v2477_v27  ;;  %v2609_v47 = vunpack.i.h.bf16 %v4332_v3  ;;  %v4335_v24 = vld [vmem:[#allocation15_spill] sm:$0xff] }
  0xdf   : > { %v319_v53 = vadd.f32 %v3260_v20, %v294_v18  ;;  %v727_v44 = vmul.f32 %v2692_v56, %v3198_v32  ;;  %v2478_v2 = vunpack.i.l.bf16 %v2477_v27  ;;  %2714 = vset.pattern.permute.xlu1 %v4328_v9  ;;  %v2687_v7 = vunpack.i.h.bf16 %v3364_v11  ;;  %v4336_v11 = vld [vmem:[#allocation17_spill] sm:$0xff] }
  0xe0   : > { %v3447_v22 = vadd.f32 %v627_v52, %v519_v38  ;;  %v652_v57 = vmul.f32 %v2691_v16, %v3182_v19  ;;  %v729_v23 = vmul.f32 %v2691_v16, %v3198_v32  ;;  %v755_v15 = vmul.f32 %v2479_v45, %v3201_v35  ;;  %2716 = vperm.xlu1 %2714, %v4333_v61   ;;  %v4339_v45 = vld [vmem:[#allocation24_spill] sm:$0xff] }
  0xe1   : > { %v3453_v21 = vpop.permute.xlu0 %2704  ;;  %v744_v20 = vadd.f32 %v741_v10, %v727_v44  ;;  %v680_v58 = vmul.f32 %v2478_v2, %v3154_v8  ;;  %v757_v27 = vmul.f32 %v2478_v2, %v3201_v35  ;;  %v2488_v18 = vpop.permute.xlu1 %2487  ;;  %v2608_v52 = vunpack.i.l.bf16 %v4332_v3  ;;  %v4340_v3 = vld [vmem:[#allocation34_spill] sm:$0xff] }
  0xe2   : > { %4334 = vst [vmem:[#allocation20_spill] sm:$0xff] %v3453_v21  ;;  %v295_v19 = vmul.f32 %v2686_v59, %v3206_v4  ;;  %v669_v43 = vadd.f32 %v666_v60, %v652_v57  ;;  %v746_v32 = vadd.f32 %v743_v25, %v729_v23  ;;  %v3461_v42 = vmul.f32 %v2609_v47, %v4335_v24  ;;  %v4338_v25 = vld [vmem:[#allocation23_spill] sm:$0xff] }
  0xe3   : > { %v3463_v6 = vadd.f32 %v755_v15, %v744_v20  ;;  %v2485_v54 = vunpack.i.h.bf16 %v2483_v30  ;;  %v2484_v56 = vunpack.i.l.bf16 %v2483_v30  ;;  %v3466_v10 = vmul.f32 %v2609_v47, %v4336_v11  ;;  %v4341_v47 = vld [vmem:[#allocation21_spill] sm:$0xff] }
  0xe4   : > { %v341_v8 = vadd.f32 %v338_v34, %v319_v53  ;;  %v3468_v38 = vadd.f32 %v680_v58, %v669_v43  ;;  %v3470_v35 = vadd.f32 %v757_v27, %v746_v32  ;;  %2720 = vset.pattern.permute.xlu1 %v4303_v36  ;;  %v384_v59 = vmul.f32 %v2687_v7, %v3209_v49  ;;  %v4344_v58 = vld [vmem:[#allocation40_spill] sm:$0xff]  ;;  %v4345_v43 = vld [vmem:[#allocation37_spill] sm:$0xff]  ;;  %v4346_v32 = vld [vmem:[#allocation38_spill] sm:$0xff] }
  0xe5   : > { %v3473_v4 = vpop.permute.xlu0 %2733  ;;  %v461_v60 = vmul.f32 %v2687_v7, %v3176_v17  ;;  %v819_v16 = vmul.f32 %v2485_v54, %v4338_v25  ;;  %v919_v30 = vmul.f32 %v2485_v54, %v4339_v45  ;;  %2722 = vperm.xlu1 %2720, %v4333_v61   ;;  %v320_v34 = vadd.f32 %v4340_v3, %v295_v19  ;;  %v4342_v17 = vld [vmem:[#allocation35_spill] sm:$0xff] }
  0xe6   : > { %4337 = vst [vmem:[#allocation3_spill] sm:$0xff] %v3473_v4  ;;  %v996_v53 = vmul.f32 %v2485_v54, %v4341_v47  ;;  %v818_v44 = vmul.f32 %v2484_v56, %v4338_v25  ;;  %v918_v2 = vmul.f32 %v2484_v56, %v4339_v45  ;;  %v2499_v57 = vpop.permute.xlu1 %2498  ;;  %v2697_v23 = vunpack.i.h.bf16 %v3398_v46  ;;  %v4343_v7 = vld [vmem:[#allocation39_spill] sm:$0xff]  ;;  %v4347_v56 = vld [vmem:[#allocation14_spill] sm:$0xff] }
  0xe7   : > { %v2696_v49 = vunpack.i.l.bf16 %v3398_v46  ;;  %v844_v15 = vadd.f32 %v4342_v17, %v819_v16  ;;  %v936_v20 = vadd.f32 %v4343_v7, %v919_v30  ;;  %v2490_v3 = vunpack.i.h.bf16 %v2488_v18 }
  0xe8   : > { %v3489_v27 = vadd.f32 %v4344_v58, %v996_v53  ;;  %v3492_v19 = vadd.f32 %v4345_v43, %v818_v44  ;;  %v3495_v54 = vadd.f32 %v4346_v32, %v918_v2  ;;  %v3498_v14 = vmul.f32 %v2608_v52, %v4347_v56  ;;  %v4350_v53 = vld [vmem:[#allocation33_spill] sm:$0xff] }
  0xe9   : > { %v363_v46 = vadd.f32 %v360_v50, %v341_v8  ;;  %v401_v16 = vadd.f32 %v4349_v37, %v384_v59  ;;  %2726 = vset.pattern.permute.xlu1 %v4312_v41  ;;  %v478_v44 = vadd.f32 %v4350_v53, %v461_v60  ;;  %v2489_v7 = vunpack.i.l.bf16 %v2488_v18  ;;  %v4351_v50 = vld [vmem:[#allocation22_spill] sm:$0xff]  ;;  %v4352_v53 = vld [vmem:[#allocation11_spill] sm:$0xff] }
  0xea   : > { %v2740_v17 = vpop.permute.xlu0 %2739  ;;  %v2501_v58 = vunpack.i.h.bf16 %v2499_v57  ;;  %2728 = vperm.xlu1 %2726, %v4333_v61   ;;  %v2500_v2 = vunpack.i.l.bf16 %v2499_v57  ;;  %v342_v32 = vadd.f32 %v3431_v62, %v320_v34  ;;  %v3508_v8 = vmul.f32 %v2697_v23, %v4351_v50  ;;  %v4353_v57 = vld [vmem:[#allocation13_spill] sm:$0xff]  ;;  %v4355_v34 = vld [vmem:[#allocation16_spill] sm:$0xff] }
  0xeb   : > { %v2742_v43 = vunpack.i.h.bf16 %v2740_v17  ;;  %v2741_v52 = vunpack.i.l.bf16 %v2740_v17  ;;  %v2505_v29 = vpop.permute.xlu1 %2504  ;;  %v3511_v37 = vmul.f32 %v2696_v49, %v4341_v47  ;;  %v920_v59 = vmul.f32 %v2490_v3, %v4339_v45  ;;  %v4354_v17 = vld [vmem:[#allocation10_spill] sm:$0xff]  ;;  %v4356_v49 = vld [vmem:[#allocation41_spill] sm:$0xff] }
  0xec   : > { %v997_v60 = vmul.f32 %v2490_v3, %v4341_v47  ;;  %v820_v18 = vmul.f32 %v2489_v7, %v4338_v25  ;;  %v934_v61 = vmul.f32 %v2501_v58, %v4352_v53  ;;  %v1011_v30 = vmul.f32 %v2501_v58, %v4353_v57  ;;  %v4357_v7 = vld [vmem:[#allocation4_spill] sm:$0xff] }
  0xed   : > { %v842_v4 = vmul.f32 %v2500_v2, %v4354_v17  ;;  %v426_v62 = vmul.f32 %v2742_v43, %v3166_v13  ;;  %v503_v23 = vmul.f32 %v2742_v43, %v4355_v34  ;;  %v361_v21 = vmul.f32 %v2741_v52, %v3163_v12 }
  0xee   : > { %v415_v33 = vadd.f32 %v4356_v49, %v401_v16  ;;  %v2745_v50 = vpop.permute.xlu0 %2744  ;;  %2763 = vset.pattern.permute.xlu1 %v4328_v9  ;;  %v3526_v25 = vadd.f32 %v934_v61, %v920_v59  ;;  %v3528_v47 = vadd.f32 %v1011_v30, %v997_v60  ;;  %v492_v3 = vadd.f32 %v3414_v63, %v478_v44  ;;  %v4359_v61 = vld [vmem:[#allocation2_spill] sm:$0xff] }
  0xef   : > { %v3524_v45 = vadd.f32 %v842_v4, %v820_v18  ;;  %2765 = vperm.xlu1 %2763, %v4357_v7   ;;  %v364_v13 = vadd.f32 %v361_v21, %v342_v32  ;;  %v2507_v2 = vunpack.i.h.bf16 %v2505_v29  ;;  %v2506_v43 = vunpack.i.l.bf16 %v2505_v29 }
  0xf0   : > { %v429_v58 = vadd.f32 %v426_v62, %v415_v33  ;;  %v2511_v12 = vpop.permute.xlu1 %2510  ;;  %v506_v16 = vadd.f32 %v503_v23, %v492_v3  ;;  %v2747_v52 = vunpack.i.h.bf16 %v2745_v50  ;;  %v2746_v53 = vunpack.i.l.bf16 %v2745_v50 }
  0xf1   : > { %v710_v4 = vadd.f32 %v3409_v40, %v3447_v22  ;;  %v863_v30 = vmul.f32 %v2507_v2, %v4347_v56  ;;  %v947_v60 = vmul.f32 %v2507_v2, %v4335_v24  ;;  %v1024_v63 = vmul.f32 %v2507_v2, %v4336_v11 }
  0xf2   : > { %v437_v59 = vrot.slane %v429_v58, 1  ;;  %v514_v44 = vrot.slane %v506_v16, 2  ;;  %v862_v33 = vmul.f32 %v2506_v43, %v4347_v56  ;;  %v946_v29 = vmul.f32 %v2506_v43, %v4335_v24  ;;  %v4363_v16 = vld [vmem:[#allocation26_spill] sm:$0xff] }
  0xf3   : > { %v769_v21 = vmul.f32 %v2747_v52, %v3212_v39  ;;  %2769 = vset.pattern.permute.xlu1 %v4319_v51  ;;  %v4358_v32 = vrot.slane %v3387_v5, 1  ;;  %v866_v50 = vadd.f32 %v863_v30, %v844_v15  ;;  %v950_v18 = vadd.f32 %v947_v60, %v936_v20 }
  0xf4   : > { %v444_v22 = vadd.f32 %v437_v59, %v364_v13  ;;  %2771 = vperm.xlu1 %2769, %v4359_v61   ;;  %v3545_v17 = vpop.permute.xlu1 %2515  ;;  %v4360_v56 = vrot.slane %v3389_v1, 2  ;;  %v865_v34 = vadd.f32 %v862_v33, %v3492_v19  ;;  %v949_v51 = vadd.f32 %v946_v29, %v3495_v54 }
  0xf5   : > { %v438_v40 = vsel %vm433_vm4, %v4358_v32, %v437_v59  ;;  %v1027_v5 = vadd.f32 %v1024_v63, %v3489_v27  ;;  %v694_v49 = vmul.f32 %v2746_v53, %v3195_v28  ;;  %v771_v15 = vmul.f32 %v2746_v53, %v3212_v39  ;;  %v4362_v27 = vld [vmem:[#allocation25_spill] sm:$0xff]  ;;  %v4364_v53 = vld [vmem:[#allocation27_spill] sm:$0xff] }
  0xf6   : > { %v443_v62 = vadd.f32 %v438_v40, %v363_v46  ;;  %v515_v24 = vsel %vm510_vm2, %v4360_v56, %v514_v44  ;;  %v521_v23 = vadd.f32 %v514_v44, %v444_v22  ;;  %v772_v3 = vadd.f32 %v769_v21, %v3463_v6 }
  0xf7   : > { %v2513_v46 = vunpack.i.h.bf16 %v2511_v12  ;;  %v2512_v13 = vunpack.i.l.bf16 %v2511_v12  ;;  %v4361_v1 = vrot.slane %v3381_v0, 2  ;;  %v697_v19 = vadd.f32 %v694_v49, %v3468_v38 }
  0xf8   : > { %v520_v20 = vadd.f32 %v515_v24, %v443_v62  ;;  %v774_v54 = vadd.f32 %v771_v15, %v3470_v35  ;;  %v2518_v2 = vunpack.i.h.bf16 %v3545_v17  ;;  %2775 = vset.pattern.permute.xlu1 %v4303_v36  ;;  %v779_v39 = vrot.slane %v772_v3, 4 }
  0xf9   : > { %v635_v58 = vadd.f32 %v4361_v1, %v521_v23  ;;  %v885_v43 = vmul.f32 %v2513_v46, %v4362_v27  ;;  %v961_v6 = vmul.f32 %v2513_v46, %v4363_v16  ;;  %2777 = vperm.xlu1 %2775, %v4359_v61   ;;  %v2522_v12 = vpop.permute.xlu1 %2521  ;;  %v705_v0 = vrot.slane %v697_v19, 3 }
  0xfa   : > { %v634_v28 = vadd.f32 %v3404_v55, %v520_v20  ;;  %v782_v52 = vrot.slane %v774_v54, 4  ;;  %v1038_v38 = vmul.f32 %v2513_v46, %v4364_v53  ;;  %v884_v35 = vmul.f32 %v2512_v13, %v4362_v27 }
  0xfb   : > { %v4365_v59 = vrot.slane %v3419_v48, 4  ;;  %v888_v60 = vadd.f32 %v885_v43, %v866_v50  ;;  %v960_v55 = vmul.f32 %v2512_v13, %v4363_v16  ;;  %v964_v63 = vadd.f32 %v961_v6, %v950_v18 }
  0xfc   : > { %v4366_v44 = vrot.slane %v3383_v31, 3  ;;  %v712_v29 = vadd.f32 %v705_v0, %v635_v58  ;;  %v887_v61 = vadd.f32 %v884_v35, %v865_v34  ;;  %v3579_v18 = vadd.f32 %v1038_v38, %v1027_v5 }
  0xfd   : > { %v781_v30 = vsel %vm778_vm5, %v779_v39, %v4365_v59  ;;  %v4367_v21 = vmov %v4365_v59  ;;  %v894_v62 = vrot.slane %v888_v60, 4  ;;  %v963_v56 = vadd.f32 %v960_v55, %v949_v51  ;;  %2782 = vperm.xlu1 %2775, %v4357_v7   ;;  %v4370_v55 = vld [vmem:[#allocation5_spill] sm:$0xff] }
  0xfe   : > { %v706_v33 = vsel %vm701_vm3, %v4366_v44, %v705_v0  ;;  %v783_v32 = vsel %vm778_vm5, %v4367_v21, %v782_v52  ;;  %v787_v40 = vadd.f32 %v781_v30, %v710_v4  ;;  %v789_v50 = vadd.f32 %v782_v52, %v712_v29  ;;  %v2528_v23 = vpop.permute.xlu1 %2527  ;;  %v4372_v29 = vld [vmem:[#allocation18_spill] sm:$0xff] }
  0xff   : > { %v711_v22 = vadd.f32 %v706_v33, %v634_v28  ;;  %v971_v24 = vrot.slane %v964_v63, 5  ;;  %v962_v31 = vmul.f32 %v2518_v2, %v4363_v16  ;;  %v893_v15 = vrot.slane %v887_v61, 4  ;;  %v4371_v33 = vld [vmem:[#allocation9_spill] sm:$0xff] }
 0x100   : > { %v970_v48 = vrot.slane %v963_v56, 5  ;;  %v1039_v20 = vmul.f32 %v2518_v2, %v4364_v53  ;;  %v1048_v4 = vrot.slane %v3579_v18, 6  ;;  %v2517_v34 = vunpack.i.l.bf16 %v3545_v17 }
 0x101   : > { %v788_v49 = vadd.f32 %v783_v32, %v711_v22  ;;  %v867_v51 = vadd.f32 %v3498_v14, %v3524_v45  ;;  %v951_v3 = vadd.f32 %v3461_v42, %v3526_v25  ;;  %v895_v5 = vsel %vm778_vm5, %v893_v15, %v894_v62  ;;  %2802 = vset.pattern.permute.xlu1 %v4312_v41  ;;  %v4368_v45 = vld [vmem:[#allocation29_spill] sm:$0xff] }
 0x102   : > { %v972_v46 = vsel %vm969_vm6, %v970_v48, %v971_v24  ;;  %v1028_v13 = vadd.f32 %v3466_v10, %v3528_v47  ;;  %v2524_v1 = vunpack.i.h.bf16 %v2522_v12  ;;  %v901_v58 = vadd.f32 %v895_v5, %v787_v40  ;;  %2804 = vperm.xlu1 %2802, %v4357_v7   ;;  %v2750_v47 = vpop.permute.xlu0 %2749  ;;  %v4374_v48 = vld [vmem:[#allocation22_spill] sm:$0xff] }
 0x103   : > { %v886_v19 = vmul.f32 %v2517_v34, %v4362_v27  ;;  %v965_v17 = vadd.f32 %v962_v31, %v951_v3  ;;  %v2523_v54 = vunpack.i.l.bf16 %v2522_v12  ;;  %v2530_v25 = vunpack.i.h.bf16 %v2528_v23  ;;  %v2534_v28 = vpop.permute.xlu1 %2533  ;;  %v4369_v27 = vld [vmem:[#allocation19_spill] sm:$0xff] }
 0x104   : > { %v1042_v14 = vadd.f32 %v1039_v20, %v1028_v13  ;;  %v1108_v42 = vmul.f32 %v2524_v1, %v4368_v45  ;;  %v2529_v2 = vunpack.i.l.bf16 %v2528_v23  ;;  %v978_v39 = vadd.f32 %v972_v46, %v901_v58 }
 0x105   : > { %v889_v43 = vadd.f32 %v886_v19, %v867_v51  ;;  %v973_v16 = vrot.slane %v965_v17, 5  ;;  %v1009_v10 = vmul.f32 %v2523_v54, %v4353_v57  ;;  %v1130_v52 = vmul.f32 %v2530_v25, %v4369_v27  ;;  %v3629_v25 = vld [vmem:[%s3083_s12 + $0x2c] sm:$0xf] }
 0x106   : > { %v1050_v6 = vrot.slane %v1042_v14, 6  ;;  %v1111_v0 = vadd.f32 %v1108_v42, %v3508_v8  ;;  %v1023_v12 = vmul.f32 %v2529_v2, %v4336_v11  ;;  %v2613_v7 = vunpack.i.l.bf16 %v4348_v26  ;;  %2808 = vset.pattern.permute.xlu1 %v4328_v9  ;;  %v2339_v42 = vld [vmem:[%s3083_s12 + $0x28] sm:$0xf] }
 0x107   : > { %v896_v38 = vrot.slane %v889_v43, 4  ;;  %v974_v35 = vsel %vm969_vm6, %v971_v24, %v973_v16  ;;  %v1012_v59 = vadd.f32 %v1009_v10, %v3511_v37  ;;  %v2751_v60 = vunpack.i.l.bf16 %v2750_v47  ;;  %2081 = vperm.xlu1 %2808, %v4370_v55  }
 0x108   : > { %v1051_v57 = vsel %vm1046_vm7, %v1048_v4, %v1050_v6  ;;  %v1133_v30 = vadd.f32 %v1130_v52, %v1111_v0  ;;  %v2536_v8 = vunpack.i.h.bf16 %v2534_v28  ;;  %v1151_v21 = vrot.slane %v4372_v29, %v4371_v33  ;;  %v2540_v32 = vpop.permute.xlu1 %2539  ;;  %v4377_v0 = vld [vmem:[#allocation30_spill] sm:$0xff] }
 0x109   : > { %v897_v11 = vsel %vm778_vm5, %v894_v62, %v896_v38  ;;  %v903_v63 = vadd.f32 %v896_v38, %v789_v50  ;;  %v1026_v44 = vadd.f32 %v1023_v12, %v1012_v59  ;;  %v2752_v40 = vunpack.i.h.bf16 %v2750_v47  ;;  %v4375_v47 = vld [vmem:[#allocation8_spill] sm:$0xff]  ;;  %v4379_v59 = vld [vmem:[#allocation7_spill] sm:$0xff] }
 0x10a   : > { %v902_v37 = vadd.f32 %v897_v11, %v788_v49  ;;  %v1037_v9 = vmul.f32 %v2751_v60, %v4364_v53  ;;  %v2535_v22 = vunpack.i.l.bf16 %v2534_v28  ;;  %v4373_v61 = vunpack.i.h.bf16 %v4348_v26 }
 0x10b   : > { %v980_v24 = vadd.f32 %v973_v16, %v903_v63  ;;  %v2542_v31 = vunpack.i.h.bf16 %v2540_v32  ;;  %v2541_v23 = vunpack.i.l.bf16 %v2540_v32  ;;  %v1131_v62 = vmul.f32 %v2613_v7, %v4369_v27  ;;  %2809 = vset.pattern.permute.xlu1 %v4303_v36 }
 0x10c   : > { %v1132_v56 = vmul.f32 %v4373_v61, %v4369_v27  ;;  %v979_v50 = vadd.f32 %v974_v35, %v902_v37  ;;  %v1040_v15 = vadd.f32 %v1037_v9, %v1026_v44  ;;  %v1088_v20 = vmul.f32 %v2536_v8, %v4374_v48  ;;  %2109 = vperm.xlu1 %2809, %v4370_v55  }
 0x10d   : > { %v1057_v49 = vadd.f32 %v1050_v6, %v980_v24  ;;  %v1087_v34 = vmul.f32 %v2535_v22, %v4374_v48  ;;  %v1110_v53 = vmul.f32 %v2542_v31, %v4368_v45  ;;  %v1109_v51 = vmul.f32 %v2541_v23, %v4368_v45  ;;  %v2546_v46 = vpop.permute.xlu1 %2545  ;;  %v3667_v48 = vpop.permute.xlu0 %2754 }
 0x10e   : > { %v1056_v26 = vadd.f32 %v1051_v57, %v979_v50  ;;  %v1152_v3 = vmul.f32 %v2752_v40, %v1151_v21  ;;  %v1047_v5 = vrot.slane %v1040_v15, 6  ;;  %v2548_v58 = vunpack.i.h.bf16 %v2546_v46 }
 0x10f   : > { %v1112_v13 = vadd.f32 %v1109_v51, %v1087_v34  ;;  %v1113_v1 = vadd.f32 %v1110_v53, %v1088_v20  ;;  %v2547_v19 = vunpack.i.l.bf16 %v2546_v46  ;;  %v3633_v18 = vrot.slane %v2339_v42, %v4375_v47 }
 0x110   : > { %v1049_v36 = vsel %vm1046_vm7, %v1047_v5, %v1048_v4  ;;  %v1154_v54 = vmul.f32 %v2548_v58, %v1151_v21  ;;  %2810 = vset.pattern.permute.xlu1 %v4312_v41  ;;  %v1155_v2 = vadd.f32 %v1152_v3, %v1133_v30  ;;  %v4376_v4 = vld [vmem:[#allocation12_spill] sm:$0xff]  ;;  %v2618_v27 = vunpack.i.l.bf16 %v4377_v0 }
 0x111   : > { %v1055_v17 = vadd.f32 %v1049_v36, %v978_v39  ;;  %v1134_v14 = vadd.f32 %v1131_v62, %v1112_v13  ;;  %v1135_v45 = vadd.f32 %v1132_v56, %v1113_v1  ;;  %v1153_v28 = vmul.f32 %v2547_v19, %v1151_v21  ;;  %2123 = vperm.xlu1 %2810, %v4370_v55   ;;  %v4381_v56 = vld [vmem:[#allocation42_spill] sm:$0xff]  ;;  %v2341_v1 = vld [vmem:[%s3083_s12 + $0x30] sm:$0xf] }
 0x112   : > { %v2552_v16 = vpop.permute.xlu1 %2551  ;;  %v3636_v39 = vrot.slane %v2339_v42, %v4376_v4  ;;  %v3640_v6 = vrot.slane %v3629_v25, %v4376_v4  ;;  %v1161_v52 = vrot.slane %v1155_v2, 6  ;;  %v3646_v57 = vrot.slane %v2339_v42, %v4379_v59  ;;  %v2342_v2 = vld [vmem:[%s3083_s12 + $0x34] sm:$0xf] }
 0x113   : > { %v1157_v43 = vadd.f32 %v1154_v54, %v1135_v45  ;;  %v1156_v10 = vadd.f32 %v1153_v28, %v1134_v14  ;;  %v2554_v7 = vunpack.i.h.bf16 %v2552_v16  ;;  %v2553_v35 = vunpack.i.l.bf16 %v2552_v16 }
 0x114   : > { %v3650_v30 = vrot.slane %v3629_v25, %v4379_v59  ;;  %v1263_v21 = vmul.f32 %v2618_v27, %v3633_v18  ;;  %v2701_v24 = vunpack.i.l.bf16 %v4381_v56  ;;  %v2619_v53 = vunpack.i.h.bf16 %v4377_v0 }
 0x115   : > { %v1164_v41 = vrot.slane %v1157_v43, 6  ;;  %v1162_v12 = vrot.slane %v1156_v10, 6  ;;  %v1208_v32 = vmul.f32 %v2554_v7, %v3636_v39  ;;  %v1324_v37 = vmul.f32 %v2554_v7, %v3640_v6 }
 0x116   : > { %4380 = vst [vmem:[#allocation17_spill] sm:$0xff] %v3650_v30  ;;  %v1207_v40 = vmul.f32 %v2553_v35, %v3636_v39  ;;  %v2756_v3 = vunpack.i.l.bf16 %v3667_v48  ;;  %v1264_v58 = vmul.f32 %v2619_v53, %v3633_v18  ;;  %v3689_v36 = vrot.slane %v3629_v25, %v4375_v47 }
 0x117   : > { %v3643_v38 = vadd.f32 %v1164_v41, %v1057_v49  ;;  %v1163_v60 = vsel %vm1046_vm7, %v1161_v52, %v1162_v12  ;;  %v1165_v8 = vsel %vm1046_vm7, %v1162_v12, %v1164_v41  ;;  %v2558_v55 = vpop.permute.xlu1 %2557  ;;  %v1209_v49 = vmul.f32 %v2701_v24, %v3636_v39  ;;  %v4385_v41 = vld [vmem:[#allocation6_spill] sm:$0xff] }
 0x118   : > { %v3654_v11 = vadd.f32 %v1165_v8, %v1056_v26  ;;  %v2560_v63 = vunpack.i.h.bf16 %v2558_v55  ;;  %v2559_v44 = vunpack.i.l.bf16 %v2558_v55  ;;  %v1169_v29 = vadd.f32 %v1163_v60, %v1055_v17  ;;  %4382 = vst [vmem:[#allocation23_spill] sm:$0xff] %v3689_v36 }
 0x119   : > { %4378 = vst [vmem:[#allocation15_spill] sm:$0xff] %v3643_v38  ;;  %v3677_v26 = vrot.slane %v2339_v42, %v4371_v33  ;;  %v3692_v42 = vrot.slane %v2341_v1, %v4379_v59  ;;  %v2592_v0 = vunpack.i.l.bf16 %v4385_v41  ;;  %v1344_v27 = vmul.f32 %v2619_v53, %v3689_v36 }
 0x11a   : > { %v1236_v9 = vmul.f32 %v2560_v63, %v3646_v57  ;;  %v1334_v22 = vmul.f32 %v2560_v63, %v3650_v30  ;;  %v1235_v61 = vmul.f32 %v2559_v44, %v3646_v57  ;;  %v3703_v52 = vrot.slane %v3629_v25, %v4371_v33 }
 0x11b   : > { %v3664_v31 = vpop.permute.xlu1 %2562  ;;  %v1293_v19 = vmul.f32 %v2756_v3, %v3677_v26  ;;  %4383 = vst [vmem:[#allocation24_spill] sm:$0xff] %v3692_v42  ;;  %v3706_v12 = vrot.slane %v2341_v1, %v4376_v4  ;;  %v1493_v7 = vrot.slane %v2342_v2, %v4379_v59  ;;  %v1479_v8 = vrot.slane %v2342_v2, %v4376_v4 }
 0x11c   : > { %v1239_v23 = vadd.f32 %v1235_v61, %v1207_v40  ;;  %v1240_v62 = vadd.f32 %v1236_v9, %v1208_v32  ;;  %v1337_v50 = vadd.f32 %v1334_v22, %v1324_v37  ;;  %v2564_v15 = vunpack.i.l.bf16 %v3664_v31 }
 0x11d   : > { %4386 = vst [vmem:[#allocation21_spill] sm:$0xff] %v3706_v12  ;;  %v1413_v25 = vmul.f32 %v2592_v0, %v3692_v42  ;;  %v1494_v22 = vmul.f32 %v2592_v0, %v1493_v7 }
 0x11e   : > { %v1267_v20 = vadd.f32 %v1263_v21, %v1239_v23  ;;  %v1237_v34 = vmul.f32 %v2564_v15, %v3646_v57  ;;  %v1268_v16 = vadd.f32 %v1264_v58, %v1240_v62  ;;  %v1347_v40 = vadd.f32 %v1344_v27, %v1337_v50 }
 0x120   : > { %v3674_v51 = vpop.permute.xlu1 %2568  ;;  %v1241_v46 = vadd.f32 %v1237_v34, %v1209_v49 }
 0x121   : > { %v2570_v5 = vunpack.i.l.bf16 %v3674_v51 }
 0x123   : > { %v1265_v13 = vmul.f32 %v2570_v5, %v3633_v18 }
 0x125   : > { %v1269_v17 = vadd.f32 %v1265_v13, %v1241_v46  ;;  %v2575_v54 = vpop.permute.xlu1 %2574  ;;  %v2343_v46 = vld [vmem:[%s3083_s12 + $0x38] sm:$0xf] }
 0x126   : > { %v2577_v14 = vunpack.i.h.bf16 %v2575_v54  ;;  %v2576_v45 = vunpack.i.l.bf16 %v2575_v54 }
 0x127   : > { %v3695_v28 = vadd.f32 %v1293_v19, %v1269_v17  ;;  %v2593_v19 = vunpack.i.h.bf16 %v4385_v41  ;;  %v3728_v17 = vrot.slane %v2343_v46, %v4379_v59  ;;  %v1345_v41 = vmul.f32 %v2570_v5, %v3689_v36 }
 0x128   : > { %v1292_v43 = vmul.f32 %v2577_v14, %v3677_v26  ;;  %v1291_v10 = vmul.f32 %v2576_v45, %v3677_v26  ;;  %v1354_v63 = vmul.f32 %v2577_v14, %v3703_v52  ;;  %v3737_v14 = vrot.slane %v2341_v1, %v4375_v47 }
 0x129   : > { %4384 = vst [vmem:[#allocation34_spill] sm:$0xff] %v3695_v28  ;;  %v4268_v21 = vrot.slane %v3695_v28, 7  ;;  %v1414_v0 = vmul.f32 %v2593_v19, %v3692_v42  ;;  %v1495_v27 = vmul.f32 %v2593_v19, %v1493_v7 }
 0x12a   : > { %v1295_v35 = vadd.f32 %v1291_v10, %v1267_v20  ;;  %v1296_v60 = vadd.f32 %v1292_v43, %v1268_v16  ;;  %v2581_v55 = vpop.permute.xlu1 %2580  ;;  %v1357_v53 = vadd.f32 %v1354_v63, %v1347_v40  ;;  %v1507_v43 = vrot.slane %v2342_v2, %v4375_v47 }
 0x12b   : > { %v2582_v44 = vunpack.i.l.bf16 %v2581_v55  ;;  %v2583_v45 = vunpack.i.h.bf16 %v2581_v55  ;;  %v3741_v16 = vrot.slane %v2343_v46, %v4375_v47  ;;  %v3744_v10 = vrot.slane %v2343_v46, %v4376_v4 }
 0x12c   : > { %v1304_v32 = vrot.slane %v1295_v35, 7  ;;  %v1305_v37 = vrot.slane %v1296_v60, 7  ;;  %v4388_v35 = vld [vmem:[#allocation31_spill] sm:$0xff] }
 0x12d   : > { %v1391_v9 = vmul.f32 %v2582_v44, %v3706_v12  ;;  %v1480_v62 = vmul.f32 %v2582_v44, %v1479_v8  ;;  %v2636_v60 = vunpack.i.h.bf16 %v4388_v35  ;;  %v3752_v44 = vrot.slane %v2341_v1, %v4371_v33 }
 0x12e   : > { %v1306_v61 = vsel %vm1303_vm8, %v1304_v32, %v1305_v37  ;;  %v1308_v23 = vsel %vm1303_vm8, %v1305_v37, %v4268_v21  ;;  %v3718_v20 = vpop.permute.xlu1 %2585  ;;  %v1521_v32 = vrot.slane %v2342_v2, %v4371_v33  ;;  %v1392_v37 = vmul.f32 %v2583_v45, %v3706_v12 }
 0x12f   : > { %4387 = vst [vmem:[#allocation35_spill] sm:$0xff] %v3718_v20  ;;  %v1314_v49 = vadd.f32 %v1306_v61, %v1169_v29  ;;  %v3721_v34 = vadd.f32 %v1308_v23, %v3654_v11  ;;  %v1416_v13 = vadd.f32 %v1413_v25, %v1391_v9  ;;  %v1497_v50 = vadd.f32 %v1494_v22, %v1480_v62 }
 0x130   : > { %v1325_v29 = vmul.f32 %v2701_v24, %v3640_v6  ;;  %v1335_v11 = vmul.f32 %v2564_v15, %v3650_v30  ;;  %v1571_v24 = vmul.f32 %v2593_v19, %v3728_v17  ;;  %v2588_v5 = vunpack.i.h.bf16 %v3718_v20 }
 0x131   : > { %v3724_v58 = vadd.f32 %v1357_v53, %v1314_v49  ;;  %v1355_v22 = vmul.f32 %v2756_v3, %v3703_v52  ;;  %v1481_v61 = vmul.f32 %v2583_v45, %v1479_v8  ;;  %v3761_v23 = vrot.slane %v2343_v46, %v4371_v33 }
 0x132   : > { %v1338_v55 = vadd.f32 %v1335_v11, %v1325_v29  ;;  %v1510_v53 = vmul.f32 %v2636_v60, %v1507_v43  ;;  %v1586_v19 = vmul.f32 %v2636_v60, %v3741_v16  ;;  %v1557_v29 = vmul.f32 %v2583_v45, %v3744_v10 }
 0x133   : > { %v3730_v54 = vpop.permute.xlu1 %2622  ;;  %v1558_v3 = vmul.f32 %v2588_v5, %v3744_v10 }
 0x134   : > { %v2625_v15 = vunpack.i.h.bf16 %v3730_v54  ;;  %v1348_v9 = vadd.f32 %v1345_v41, %v1338_v55  ;;  %v1417_v41 = vadd.f32 %v1414_v0, %v1392_v37  ;;  %v1482_v55 = vmul.f32 %v2588_v5, %v1479_v8 }
 0x135   : > { %v1574_v0 = vadd.f32 %v1571_v24, %v1557_v29 }
 0x136   : > { %v1496_v62 = vmul.f32 %v2625_v15, %v1493_v7  ;;  %v1572_v1 = vmul.f32 %v2625_v15, %v3728_v17  ;;  %v1358_v21 = vadd.f32 %v1355_v22, %v1348_v9  ;;  %v1498_v7 = vadd.f32 %v1495_v27, %v1481_v61 }
 0x138   : > { %v2629_v63 = vpop.permute.xlu1 %2628  ;;  %v1499_v28 = vadd.f32 %v1496_v62, %v1482_v55  ;;  %v1575_v12 = vadd.f32 %v1572_v1, %v1558_v3  ;;  %v1361_v27 = vadd.f32 %v1358_v21, %v3721_v34  ;;  %v2702_v55 = vunpack.i.h.bf16 %v4381_v56 }
 0x139   : > { %v2631_v25 = vunpack.i.h.bf16 %v2629_v63  ;;  %v2630_v40 = vunpack.i.l.bf16 %v2629_v63  ;;  %v4277_v56 = vunpack.i.h.bf16 %v3674_v51 }
 0x13a   : > { %v1513_v1 = vadd.f32 %v1510_v53, %v1499_v28  ;;  %v3792_v53 = vpop.permute.xlu0 %2759 }
 0x13b   : > { %v1436_v2 = vmul.f32 %v2631_v25, %v3737_v14  ;;  %v1435_v49 = vmul.f32 %v2630_v40, %v3737_v14  ;;  %v1509_v11 = vmul.f32 %v2631_v25, %v1507_v43  ;;  %v1508_v63 = vmul.f32 %v2630_v40, %v1507_v43 }
 0x13c   : > { %v1585_v8 = vmul.f32 %v2631_v25, %v3741_v16  ;;  %v1589_v25 = vadd.f32 %v1586_v19, %v1575_v12 }
 0x13d   : > { %v2640_v46 = vpop.permute.xlu1 %2639  ;;  %v1438_v36 = vadd.f32 %v1435_v49, %v1416_v13  ;;  %v1439_v42 = vadd.f32 %v1436_v2, %v1417_v41  ;;  %v1512_v30 = vadd.f32 %v1509_v11, %v1498_v7  ;;  %v1511_v37 = vadd.f32 %v1508_v63, %v1497_v50  ;;  %v2344_v41 = vld [vmem:[%s3083_s12 + $0x3c] sm:$0xf] }
 0x13e   : > { %v2642_v38 = vunpack.i.h.bf16 %v2640_v46  ;;  %v2641_v15 = vunpack.i.l.bf16 %v2640_v46  ;;  %v1588_v50 = vadd.f32 %v1585_v8, %v1574_v0  ;;  %v2565_v63 = vunpack.i.h.bf16 %v3664_v31 }
 0x13f   : > { %v3811_v8 = vrot.slane %v2344_v41, %v4375_v47 }
 0x140   : > { %v1458_v60 = vmul.f32 %v2642_v38, %v3752_v44  ;;  %v1523_v20 = vmul.f32 %v2642_v38, %v1521_v32  ;;  %v1457_v45 = vmul.f32 %v2641_v15, %v3752_v44  ;;  %v1522_v43 = vmul.f32 %v2641_v15, %v1521_v32 }
 0x141   : > { %v3772_v5 = vpop.permute.xlu1 %2644  ;;  %v1599_v13 = vmul.f32 %v2642_v38, %v3761_v23 }
 0x142   : > { %v1460_v40 = vadd.f32 %v1457_v45, %v1438_v36  ;;  %v1461_v9 = vadd.f32 %v1458_v60, %v1439_v42  ;;  %v1526_v22 = vadd.f32 %v1523_v20, %v1512_v30  ;;  %v1525_v61 = vadd.f32 %v1522_v43, %v1511_v37  ;;  %v4389_v36 = vld [vmem:[#allocation20_spill] sm:$0xff]  ;;  %v2345_v37 = vld [vmem:[%s3083_s12 + $0x40] sm:$0xf]  ;;  %v3815_v43 = vld [vmem:[%s3083_s12 + $0x44] sm:$0xf] }
 0x143   : > { %v2647_v62 = vunpack.i.h.bf16 %v3772_v5  ;;  %v2706_v42 = vunpack.i.l.bf16 %v4389_v36  ;;  %v3783_v20 = vadd.f32 %v1599_v13, %v1588_v50  ;;  %v2761_v45 = vunpack.i.l.bf16 %v3792_v53  ;;  %v3824_v13 = vld [vmem:[%s3083_s12 + $0x48] sm:$0xf] }
 0x144   : > { %v1463_v2 = vadd.f32 %v1460_v40, %v3724_v58  ;;  %v1464_v24 = vadd.f32 %v1461_v9, %v1361_v27  ;;  %v1532_v49 = vrot.slane %v1526_v22, 1  ;;  %v1531_v29 = vrot.slane %v1525_v61, 1  ;;  %v4390_v40 = vld [vmem:[#allocation36_spill] sm:$0xff] }
 0x145   : > { %v1524_v11 = vmul.f32 %v2647_v62, %v1521_v32  ;;  %v1600_v21 = vmul.f32 %v2647_v62, %v3761_v23  ;;  %v1556_v3 = vmul.f32 %v2706_v42, %v3744_v10  ;;  %v1608_v46 = vrot.slane %v3783_v20, 2 }
 0x146   : > { %v3780_v30 = vpop.permute.xlu1 %2650  ;;  %v1533_v38 = vsel %vm433_vm4, %v1531_v29, %v1532_v49  ;;  %v2635_v10 = vunpack.i.l.bf16 %v4388_v35  ;;  %v2676_v9 = vunpack.i.h.bf16 %v4390_v40  ;;  %v1210_v22 = vmul.f32 %v2702_v55, %v3636_v39 }
 0x147   : > { %v3785_v28 = vadd.f32 %v1524_v11, %v1513_v1  ;;  %v3787_v34 = vadd.f32 %v1600_v21, %v1589_v25  ;;  %v3789_v58 = vadd.f32 %v1533_v38, %v1463_v2  ;;  %v2652_v12 = vunpack.i.l.bf16 %v3780_v30  ;;  %v3833_v1 = vld [vmem:[%s3083_s12 + $0x4c] sm:$0xf] }
 0x148   : > { %v1238_v35 = vmul.f32 %v2565_v63, %v3646_v57  ;;  %v2675_v62 = vunpack.i.l.bf16 %v4390_v40  ;;  %v3838_v25 = vrot.slane %v2345_v37, %v4375_v47  ;;  %v3842_v39 = vrot.slane %v3815_v43, %v4375_v47 }
 0x149   : > { %v4276_v32 = vrot.slane %v3785_v28, 1  ;;  %v4275_v19 = vrot.slane %v3787_v34, 2  ;;  %v1570_v15 = vmul.f32 %v2652_v12, %v3728_v17  ;;  %v1266_v57 = vmul.f32 %v4277_v56, %v3633_v18 }
 0x14a   : > { %v2757_v50 = vunpack.i.h.bf16 %v3667_v48  ;;  %v3851_v11 = vrot.slane %v2344_v41, %v4376_v4  ;;  %v2707_v42 = vunpack.i.h.bf16 %v4389_v36  ;;  %v3863_v18 = vrot.slane %v3833_v1, %v4376_v4  ;;  %v4393_v48 = vld [vmem:[#allocation3_spill] sm:$0xff] }
 0x14b   : > { %v1535_v7 = vsel %vm433_vm4, %v1532_v49, %v4276_v32  ;;  %v3805_v60 = vpop.permute.xlu1 %2656  ;;  %v1611_v17 = vsel %vm510_vm2, %v1608_v46, %v4275_v19  ;;  %v1573_v2 = vadd.f32 %v1570_v15, %v1556_v3  ;;  %v1598_v49 = vmul.f32 %v2761_v45, %v3761_v23  ;;  %v2788_v45 = vpop.permute.xlu0 %2787 }
 0x14c   : > { %v1540_v0 = vadd.f32 %v1535_v7, %v1464_v24  ;;  %v2658_v27 = vunpack.i.l.bf16 %v3805_v60  ;;  %v3858_v23 = vrot.slane %v3824_v13, %v4376_v4  ;;  %4392 = vst [vmem:[#allocation40_spill] sm:$0xff] %v3863_v18  ;;  %v3866_v38 = vunpack.i.h.bf16 %v4393_v48 }
 0x14d   : > { %v1242_v20 = vadd.f32 %v1238_v35, %v1210_v22  ;;  %v3869_v12 = vmul.f32 %v2635_v10, %v3737_v14  ;;  %v3872_v3 = vmul.f32 %v2676_v9, %v3811_v8  ;;  %v3875_v7 = vmul.f32 %v2675_v62, %v3811_v8 }
 0x14e   : > { %v3829_v61 = vadd.f32 %v1611_v17, %v1540_v0  ;;  %v1584_v24 = vmul.f32 %v2658_v27, %v3741_v16  ;;  %v3854_v16 = vrot.slane %v2345_v37, %v4376_v4  ;;  %4391 = vst [vmem:[#allocation39_spill] sm:$0xff] %v3858_v23  ;;  %v3878_v36 = vmul.f32 %v2675_v62, %v3838_v25 }
 0x14f   : > { %v3881_v0 = vmul.f32 %v2675_v62, %v3842_v39  ;;  %v1270_v17 = vadd.f32 %v1266_v57, %v1242_v20  ;;  %v1294_v27 = vmul.f32 %v2757_v50, %v3677_v26  ;;  %v2735_v14 = vunpack.i.l.bf16 %v4393_v48 }
 0x150   : > { %v3848_v29 = vpop.permute.xlu1 %2662  ;;  %v1587_v21 = vadd.f32 %v1584_v24, %v1573_v2  ;;  %v3886_v10 = vrot.slane %v2344_v41, %v4379_v59  ;;  %v3889_v40 = vrot.slane %v2345_v37, %v4379_v59  ;;  %v1326_v35 = vmul.f32 %v2702_v55, %v3640_v6 }
 0x151   : > { %v3895_v2 = vmul.f32 %v2707_v42, %v3851_v11  ;;  %v3898_v62 = vmul.f32 %v2707_v42, %v3854_v16  ;;  %v3902_v26 = vmul.f32 %v3866_v38, %v3858_v23  ;;  %v3906_v24 = vmul.f32 %v3866_v38, %v3863_v18 }
 0x152   : > { %v1601_v15 = vadd.f32 %v1598_v49, %v1587_v21  ;;  %v2624_v49 = vunpack.i.l.bf16 %v3730_v54  ;;  %v3910_v57 = vrot.slane %v2344_v41, %v4371_v33  ;;  %v1298_v55 = vadd.f32 %v1294_v27, %v1270_v17  ;;  %v4399_v41 = vld [vmem:[#allocation35_spill] sm:$0xff] }
 0x153   : > { %4394 = vst [vmem:[#allocation37_spill] sm:$0xff] %v3902_v26  ;;  %4395 = vst [vmem:[#allocation38_spill] sm:$0xff] %v3906_v24  ;;  %v3914_v21 = vrot.slane %v2345_v37, %v4371_v33  ;;  %v2762_v42 = vunpack.i.h.bf16 %v3792_v53  ;;  %v3921_v20 = vmul.f32 %v2735_v14, %v3858_v23  ;;  %v1356_v54 = vmul.f32 %v2757_v50, %v3703_v52  ;;  %v4403_v50 = vld [vmem:[#allocation24_spill] sm:$0xff]  ;;  %v4411_v26 = vld [vmem:[#allocation34_spill] sm:$0xff] }
 0x154   : > { %v1607_v9 = vrot.slane %v1601_v15, 2  ;;  %v3924_v15 = vmul.f32 %v2735_v14, %v3863_v18  ;;  %v2587_v19 = vunpack.i.l.bf16 %v4399_v41  ;;  %v3932_v37 = vrot.slane %v3824_v13, %v4371_v33  ;;  %v4402_v14 = vld [vmem:[#allocation17_spill] sm:$0xff] }
 0x155   : > { %v3891_v22 = vpop.permute.xlu1 %2668  ;;  %4397 = vst [vmem:[#allocation28_spill] sm:$0xff] %v3921_v20  ;;  %v3938_v53 = vunpack.i.h.bf16 %v2788_v45  ;;  %v2789_v27 = vunpack.i.l.bf16 %v2788_v45  ;;  %v1336_v52 = vmul.f32 %v2565_v63, %v4402_v14  ;;  %v3950_v41 = vrot.slane %v3815_v43, %v4379_v59  ;;  %v4404_v63 = vld [vmem:[#allocation23_spill] sm:$0xff] }
 0x156   : > { %v1609_v6 = vsel %vm510_vm2, %v1607_v9, %v1608_v46  ;;  %4398 = vst [vmem:[#allocation32_spill] sm:$0xff] %v3924_v15  ;;  %v2794_v46 = vpop.permute.xlu0 %2793  ;;  %4400 = vst [vmem:[#allocation33_spill] sm:$0xff] %v3932_v37  ;;  %v1415_v9 = vmul.f32 %v2624_v49, %v4403_v50  ;;  %v1309_v32 = vrot.slane %v1298_v55, 7  ;;  %v3953_v56 = vmul.f32 %v2762_v42, %v3910_v57  ;;  %v4406_v50 = vld [vmem:[#allocation21_spill] sm:$0xff] }
 0x157   : > { %v3918_v48 = vadd.f32 %v1609_v6, %v3789_v58  ;;  %v3936_v58 = vrot.slane %v3833_v1, %v4371_v33  ;;  %v3946_v6 = vrot.slane %v3815_v43, %v4376_v4  ;;  %v3956_v45 = vmul.f32 %v2762_v42, %v3914_v21 }
 0x158   : > { %v3960_v31 = vrot.slane %v3815_v43, %v4371_v33  ;;  %v4405_v49 = vunpack.i.h.bf16 %v3674_v51  ;;  %v2646_v15 = vunpack.i.l.bf16 %v3772_v5  ;;  %v2796_v20 = vunpack.i.h.bf16 %v2794_v46 }
 0x159   : > { %4396 = vst [vmem:[#allocation14_spill] sm:$0xff] %v3918_v48  ;;  %4401 = vst [vmem:[#allocation11_spill] sm:$0xff] %v3936_v58  ;;  %v1393_v48 = vmul.f32 %v2587_v19, %v4406_v50  ;;  %v3969_v24 = vmul.f32 %v3938_v53, %v3932_v37  ;;  %v3973_v42 = vmul.f32 %v3938_v53, %v3936_v58  ;;  %v2670_v5 = vunpack.i.l.bf16 %v3891_v22 }
 0x15a   : > { %v3928_v17 = vpop.permute.xlu1 %2710  ;;  %v1346_v14 = vmul.f32 %v4405_v49, %v4404_v63  ;;  %v2799_v55 = vpop.permute.xlu0 %2798  ;;  %v3976_v43 = vmul.f32 %v2789_v27, %v3932_v37  ;;  %v3979_v51 = vmul.f32 %v2789_v27, %v3936_v58  ;;  %v1339_v19 = vadd.f32 %v1336_v52, %v1326_v35  ;;  %v2349_v52 = vld [vmem:[%s3083_s12 + $0x50] sm:$0xf] }
 0x15b   : > { %4407 = vst [vmem:[#allocation13_spill] sm:$0xff] %v3969_v24  ;;  %4408 = vst [vmem:[#allocation10_spill] sm:$0xff] %v3973_v42  ;;  %v1418_v63 = vadd.f32 %v1415_v9, %v1393_v48  ;;  %v2795_v49 = vunpack.i.l.bf16 %v2794_v46  ;;  %v4412_v24 = vrot.slane %v4411_v26, 7  ;;  %v2671_v42 = vunpack.i.h.bf16 %v3891_v22  ;;  %v4414_v9 = vld [vmem:[#allocation15_spill] sm:$0xff] }
 0x15c   : > { %4409 = vst [vmem:[#allocation16_spill] sm:$0xff] %v3976_v43  ;;  %4410 = vst [vmem:[#allocation41_spill] sm:$0xff] %v3979_v51  ;;  %v3990_v37 = vrot.slane %v3833_v1, %v4379_v59  ;;  %v2801_v43 = vunpack.i.h.bf16 %v2799_v55  ;;  %v1349_v27 = vadd.f32 %v1346_v14, %v1339_v19  ;;  %v1459_v35 = vmul.f32 %v2646_v15, %v3752_v44 }
 0x15d   : > { %v1310_v23 = vsel %vm1303_vm8, %v4412_v24, %v1309_v32  ;;  %v2664_v48 = vunpack.i.l.bf16 %v3848_v29  ;;  %v3995_v46 = vmul.f32 %v2796_v20, %v3950_v41  ;;  %v2665_v26 = vunpack.i.h.bf16 %v3848_v29 }
 0x15e   : > { %4413 = vst [vmem:[#allocation4_spill] sm:$0xff] %v3990_v37  ;;  %v4001_v32 = vrot.slane %v3824_v13, %v4379_v59  ;;  %v4004_v22 = vrot.slane %v2349_v52, %v4379_v59  ;;  %v2800_v24 = vunpack.i.l.bf16 %v2799_v55  ;;  %v1316_v14 = vadd.f32 %v1310_v23, %v4414_v9 }
 0x15f   : > { %v3982_v50 = vpop.permute.xlu1 %2716  ;;  %v1440_v44 = vadd.f32 %v3869_v12, %v1418_v63  ;;  %v1669_v15 = vmul.f32 %v2670_v5, %v3886_v10  ;;  %v1762_v20 = vmul.f32 %v2795_v49, %v3889_v40  ;;  %v1670_v19 = vmul.f32 %v2671_v42, %v3886_v10 }
 0x160   : > { %v4012_v29 = vmul.f32 %v2795_v49, %v3950_v41  ;;  %v4017_v58 = vmul.f32 %v2801_v43, %v3990_v37  ;;  %v4020_v59 = vrot.slane %v2349_v52, %v4376_v4  ;;  %v1359_v23 = vadd.f32 %v1356_v54, %v1349_v27 }
 0x161   : > { %v1462_v55 = vadd.f32 %v1459_v35, %v1440_v44  ;;  %v2653_v12 = vunpack.i.h.bf16 %v3780_v30  ;;  %v1647_v63 = vmul.f32 %v2664_v48, %v3851_v11  ;;  %v2659_v9 = vunpack.i.h.bf16 %v3805_v60 }
 0x162   : > { %4415 = vst [vmem:[#allocation2_spill] sm:$0xff] %v4017_v58  ;;  %v1648_v42 = vmul.f32 %v2665_v26, %v3851_v11  ;;  %v4027_v49 = vmul.f32 %v2801_v43, %v4004_v22  ;;  %v4030_v18 = vmul.f32 %v2800_v24, %v4001_v32  ;;  %v1362_v58 = vadd.f32 %v1359_v23, %v1316_v14 }
 0x163   : > { %v1672_v37 = vadd.f32 %v1669_v15, %v1647_v63  ;;  %v2712_v4 = vunpack.i.l.bf16 %v3928_v17  ;;  %v4035_v54 = vrot.slane %v3824_v13, %v4375_v47  ;;  %v2713_v27 = vunpack.i.h.bf16 %v3928_v17 }
 0x164   : > { %v4014_v51 = vpop.permute.xlu1 %2722  ;;  %v1673_v30 = vadd.f32 %v1670_v19, %v1648_v42  ;;  %v2718_v60 = vunpack.i.l.bf16 %v3982_v50  ;;  %v4041_v11 = vrot.slane %v3833_v1, %v4375_v47  ;;  %v1465_v43 = vadd.f32 %v1462_v55, %v1362_v58 }
 0x165   : > { %v1668_v35 = vmul.f32 %v2653_v12, %v3886_v10  ;;  %v1761_v26 = vmul.f32 %v2670_v5, %v3889_v40  ;;  %v4047_v14 = vmul.f32 %v3866_v38, %v4020_v59  ;;  %v1760_v13 = vmul.f32 %v2653_v12, %v3889_v40 }
 0x166   : > { %v1690_v17 = vmul.f32 %v2659_v9, %v3811_v8  ;;  %v1837_v44 = vmul.f32 %v2670_v5, %v3950_v41  ;;  %v2724_v15 = vunpack.i.l.bf16 %v4014_v51  ;;  %v1747_v1 = vmul.f32 %v2664_v48, %v3854_v16 }
 0x167   : > { %v1823_v58 = vmul.f32 %v2664_v48, %v3946_v6  ;;  %v1694_v10 = vadd.f32 %v3875_v7, %v1672_v37  ;;  %v1713_v19 = vmul.f32 %v2712_v4, %v3910_v57  ;;  %v1714_v23 = vmul.f32 %v2713_v27, %v3910_v57 }
 0x168   : > { %v1695_v38 = vadd.f32 %v3872_v3, %v1673_v30  ;;  %v1748_v40 = vmul.f32 %v2718_v60, %v3854_v16  ;;  %v1671_v8 = vadd.f32 %v1668_v35, %v3895_v2  ;;  %v1774_v41 = vmul.f32 %v2659_v9, %v3838_v25 }
 0x169   : > { %v2729_v24 = vpop.permute.xlu1 %2728  ;;  %v1764_v5 = vadd.f32 %v1761_v26, %v1747_v1  ;;  %v4063_v12 = vrot.slane %v2349_v52, %v4375_v47  ;;  %v4416_v48 = vrot.slane %v3785_v28, 1  ;;  %v1840_v37 = vadd.f32 %v1837_v44, %v1823_v58 }
 0x16a   : > { %v2730_v55 = vunpack.i.l.bf16 %v2729_v24  ;;  %v1776_v63 = vmul.f32 %v2724_v15, %v3838_v25  ;;  %v4071_v3 = vrot.slane %v2349_v52, %v4371_v33  ;;  %v1763_v16 = vadd.f32 %v1760_v13, %v3898_v62  ;;  %v2096_v13 = vpop.permute.xlu0 %2095 }
 0x16b   : > { %v1541_v7 = vadd.f32 %v4416_v48, %v1465_v43  ;;  %v1693_v2 = vadd.f32 %v1690_v17, %v1671_v8  ;;  %v4074_v42 = vadd.f32 %v1713_v19, %v1694_v10  ;;  %v2719_v9 = vunpack.i.h.bf16 %v3982_v50 }
 0x16c   : > { %v1717_v47 = vadd.f32 %v1714_v23, %v1695_v38  ;;  %v1765_v30 = vadd.f32 %v1762_v20, %v1748_v40  ;;  %v1824_v28 = vmul.f32 %v2718_v60, %v3946_v6  ;;  %v1790_v27 = vmul.f32 %v2730_v55, %v3914_v21 }
 0x16d   : > { %v1777_v43 = vadd.f32 %v1774_v41, %v1763_v16  ;;  %v1778_v25 = vadd.f32 %v3878_v36, %v1764_v5  ;;  %v1789_v35 = vmul.f32 %v2712_v4, %v3914_v21  ;;  %v2725_v33 = vunpack.i.h.bf16 %v4014_v51 }
 0x16e   : > { %v4068_v57 = vpop.permute.xlu1 %2765  ;;  %v1854_v62 = vadd.f32 %v3881_v0, %v1840_v37  ;;  %v1865_v52 = vmul.f32 %v2712_v4, %v3960_v31  ;;  %v1779_v26 = vadd.f32 %v1776_v63, %v1765_v30  ;;  %v1852_v50 = vmul.f32 %v2724_v15, %v3842_v39 }
 0x16f   : > { %v1722_v20 = vrot.slane %v4074_v42, 2  ;;  %v1822_v60 = vmul.f32 %v2719_v9, %v3946_v6  ;;  %v2731_v17 = vunpack.i.h.bf16 %v2729_v24  ;;  %v4089_v36 = vmul.f32 %v3938_v53, %v4071_v3  ;;  %v4418_v9 = vld [vmem:[#allocation40_spill] sm:$0xff] }
 0x170   : > { %v1724_v21 = vrot.slane %v1717_v47, 2  ;;  %v1841_v51 = vadd.f32 %v4012_v29, %v1824_v28  ;;  %v1793_v0 = vadd.f32 %v1790_v27, %v1779_v26  ;;  %v1866_v4 = vmul.f32 %v2730_v55, %v3960_v31  ;;  %v4419_v27 = vld [vmem:[#allocation4_spill] sm:$0xff] }
 0x171   : > { %v4417_v1 = vrot.slane %v3787_v34, 2  ;;  %v4096_v58 = vadd.f32 %v3953_v56, %v1693_v2  ;;  %v1850_v6 = vmul.f32 %v2725_v33, %v3842_v39  ;;  %v4100_v24 = vmul.f32 %v4004_v22, %v2096_v13 }
 0x172   : > { %v4103_v53 = vadd.f32 %v3956_v45, %v1777_v43  ;;  %v4105_v10 = vadd.f32 %v1789_v35, %v1778_v25  ;;  %v4107_v29 = vadd.f32 %v1865_v52, %v1854_v62  ;;  %v1855_v19 = vadd.f32 %v1852_v50, %v1841_v51  ;;  %v4421_v51 = vld [vmem:[#allocation2_spill] sm:$0xff] }
 0x173   : > { %v2772_v44 = vpop.permute.xlu1 %2771  ;;  %v1617_v15 = vadd.f32 %v4417_v1, %v1541_v7  ;;  %v1839_v23 = vadd.f32 %v3995_v46, %v1822_v60  ;;  %v1864_v34 = vmul.f32 %v2731_v17, %v3960_v31  ;;  %v2768_v56 = vunpack.i.h.bf16 %v4068_v57  ;;  %v4423_v1 = vld [vmem:[#allocation38_spill] sm:$0xff] }
 0x174   : > { %v2774_v38 = vunpack.i.h.bf16 %v2772_v44  ;;  %v1725_v39 = vsel %vm510_vm2, %v1722_v20, %v1724_v21  ;;  %v1800_v40 = vrot.slane %v1793_v0, 3  ;;  %v4115_v55 = vadd.f32 %v1866_v4, %v1855_v19 }
 0x175   : > { %v2773_v45 = vunpack.i.l.bf16 %v2772_v44  ;;  %v1721_v41 = vrot.slane %v4096_v58, 2  ;;  %v1853_v5 = vadd.f32 %v1850_v6, %v1839_v23  ;;  %v2767_v48 = vunpack.i.l.bf16 %v4068_v57  ;;  %v4424_v58 = vld [vmem:[#allocation28_spill] sm:$0xff] }
 0x176   : > { %v1731_v7 = vadd.f32 %v1724_v21, %v1617_v15  ;;  %v1798_v31 = vrot.slane %v4105_v10, 3  ;;  %v1874_v37 = vrot.slane %v4107_v29, 4  ;;  %v1730_v16 = vadd.f32 %v1725_v39, %v3829_v61  ;;  %v4420_v61 = vld [vmem:[#allocation39_spill] sm:$0xff] }
 0x177   : > { %v4122_v2 = vadd.f32 %v1864_v34, %v1853_v5  ;;  %v2014_v47 = vmul.f32 %v2768_v56, %v4418_v9  ;;  %v1935_v30 = vmul.f32 %v2774_v38, %v4001_v32  ;;  %v1876_v57 = vrot.slane %v4115_v55, 4 }
 0x178   : > { %v2778_v8 = vpop.permute.xlu1 %2777  ;;  %v1801_v28 = vsel %vm701_vm3, %v1798_v31, %v1800_v40  ;;  %v2027_v43 = vmul.f32 %v2774_v38, %v4419_v27  ;;  %v1934_v25 = vmul.f32 %v2773_v45, %v4001_v32  ;;  %v2090_v33 = vmul.f32 %v2768_v56, %v4020_v59  ;;  %v4422_v32 = vld [vmem:[#allocation37_spill] sm:$0xff] }
 0x179   : > { %v2780_v46 = vunpack.i.h.bf16 %v2778_v8  ;;  %v2779_v63 = vunpack.i.l.bf16 %v2778_v8  ;;  %v1914_v62 = vmul.f32 %v2767_v48, %v4420_v61  ;;  %v2103_v52 = vmul.f32 %v2774_v38, %v4004_v22  ;;  %v4428_v61 = vld [vmem:[#allocation32_spill] sm:$0xff] }
 0x17a   : > { %v1806_v44 = vadd.f32 %v1801_v28, %v1730_v16  ;;  %v1807_v21 = vadd.f32 %v1800_v40, %v1731_v7  ;;  %v2031_v0 = vadd.f32 %v4421_v51, %v2014_v47  ;;  %v1938_v4 = vadd.f32 %v1935_v30, %v4422_v32 }
 0x17b   : > { %v1957_v26 = vmul.f32 %v2780_v46, %v4035_v54  ;;  %v2041_v50 = vmul.f32 %v2780_v46, %v4041_v11  ;;  %v1956_v13 = vmul.f32 %v2779_v63, %v4035_v54  ;;  %v2030_v15 = vadd.f32 %v2027_v43, %v4423_v1 }
 0x17c   : > { %v2783_v35 = vpop.permute.xlu1 %2782  ;;  %v1937_v6 = vadd.f32 %v1934_v25, %v4424_v58  ;;  %v2117_v19 = vmul.f32 %v2780_v46, %v4063_v12  ;;  %v2026_v23 = vmul.f32 %v2773_v45, %v4419_v27  ;;  %v2106_v40 = vadd.f32 %v2103_v52, %v4047_v14  ;;  %v4425_v45 = vld [vmem:[#allocation11_spill] sm:$0xff]  ;;  %v4427_v25 = vld [vmem:[#allocation33_spill] sm:$0xff] }
 0x17d   : > { %v2785_v60 = vunpack.i.h.bf16 %v2783_v35  ;;  %v2784_v17 = vunpack.i.l.bf16 %v2783_v35  ;;  %v1960_v34 = vadd.f32 %v1957_v26, %v1938_v4  ;;  %v2044_v8 = vadd.f32 %v2041_v50, %v2030_v15 }
 0x17e   : > { %v1959_v55 = vadd.f32 %v1956_v13, %v1937_v6  ;;  %v2107_v48 = vadd.f32 %v4027_v49, %v2090_v33  ;;  %v1939_v7 = vadd.f32 %v4030_v18, %v1914_v62  ;;  %v2040_v16 = vmul.f32 %v2779_v63, %v4041_v11  ;;  %v4429_v49 = vld [vmem:[#allocation16_spill] sm:$0xff]  ;;  %v4430_v18 = vld [vmem:[#allocation10_spill] sm:$0xff] }
 0x17f   : > { %v2042_v22 = vmul.f32 %v2785_v60, %v4041_v11  ;;  %v2118_v56 = vmul.f32 %v2785_v60, %v4063_v12  ;;  %v1958_v38 = vmul.f32 %v2784_v17, %v4035_v54  ;;  %v2120_v28 = vadd.f32 %v2117_v19, %v2106_v40  ;;  %v4426_v54 = vld [vmem:[#allocation13_spill] sm:$0xff] }
 0x180   : > { %v1982_v27 = vadd.f32 %v4426_v54, %v1960_v34  ;;  %v2029_v52 = vadd.f32 %v2026_v23, %v4428_v61  ;;  %v1981_v33 = vadd.f32 %v4429_v49, %v1959_v55  ;;  %v2058_v62 = vadd.f32 %v4430_v18, %v2044_v8  ;;  %v2152_v8 = vld [vmem:[%s2918_s29 + $0x10] sm:$0x3] }
 0x181   : > { %v2805_v39 = vpop.permute.xlu1 %2804  ;;  %v2045_v9 = vadd.f32 %v2042_v22, %v2031_v0  ;;  %v1961_v43 = vadd.f32 %v1958_v38, %v1939_v7  ;;  %v2121_v14 = vadd.f32 %v2118_v56, %v2107_v48  ;;  %v1797_v26 = vrot.slane %v4103_v53, 3  ;;  %v4431_v53 = vld [vmem:[#allocation14_spill] sm:$0xff] }
 0x182   : > { %v2807_v5 = vunpack.i.h.bf16 %v2805_v39  ;;  %v2806_v46 = vunpack.i.l.bf16 %v2805_v39  ;;  %v1723_v50 = vsel %vm510_vm2, %v1721_v41, %v1722_v20  ;;  %v1873_v17 = vrot.slane %v4122_v2, 4 }
 0x183   : > { %v1877_v51 = vsel %vm778_vm5, %v1874_v37, %v1876_v57  ;;  %v1883_v0 = vadd.f32 %v1876_v57, %v1807_v21  ;;  %v2043_v32 = vadd.f32 %v2040_v16, %v2029_v52  ;;  %v1988_v4 = vrot.slane %v1982_v27, 4 }
 0x184   : > { %v2056_v47 = vmul.f32 %v2807_v5, %v4425_v45  ;;  %v2132_v30 = vmul.f32 %v2807_v5, %v4071_v3  ;;  %v1980_v35 = vmul.f32 %v2806_v46, %v4427_v25  ;;  %v2134_v58 = vadd.f32 %v4089_v36, %v2120_v28 }
 0x185   : > { %v1729_v6 = vadd.f32 %v1723_v50, %v4431_v53  ;;  %v1882_v42 = vadd.f32 %v1877_v51, %v1806_v44  ;;  %v1987_v22 = vrot.slane %v1981_v33, 4  ;;  %v2064_v20 = vrot.slane %v2058_v62, 5  ;;  %v4432_v44 = vld [vmem:[#allocation41_spill] sm:$0xff] }
 0x186   : > { %v2059_v11 = vadd.f32 %v2056_v47, %v2045_v9  ;;  %v2082_v63 = vpop.permute.xlu1 %2081  ;;  %v1983_v13 = vadd.f32 %v1980_v35, %v1961_v43  ;;  %v2135_v60 = vadd.f32 %v2132_v30, %v2121_v14  ;;  %v1799_v21 = vsel %vm701_vm3, %v1797_v26, %v1798_v31  ;;  %v2150_v14 = vld [vmem:[%s2918_s29] sm:$0xff] }
 0x187   : > { %v2088_v23 = vmul.f32 %v4020_v59, %v2082_v63  ;;  %v1875_v36 = vsel %vm778_vm5, %v1873_v17, %v1874_v37  ;;  %v2057_v34 = vadd.f32 %v4432_v44, %v2043_v32  ;;  %v2140_v55 = vrot.slane %v2134_v58, 6  ;;  %v2151_v37 = vld [vmem:[%s2918_s29 + $0x8] sm:$0xff] }
 0x188   : > { %v1990_v1 = vrot.slane %v1983_v13, 4  ;;  %v2066_v15 = vrot.slane %v2059_v11, 5  ;;  %v2142_v19 = vrot.slane %v2135_v60, 6  ;;  %v1805_v59 = vadd.f32 %v1799_v21, %v1729_v6 }
 0x189   : > { %v1989_v10 = vsel %vm778_vm5, %v1987_v22, %v1988_v4  ;;  %v2105_v29 = vadd.f32 %v4100_v24, %v2088_v23  ;;  %v2063_v46 = vrot.slane %v2057_v34, 5 }
 0x18a   : > { %v1991_v41 = vsel %vm778_vm5, %v1988_v4, %v1990_v1  ;;  %v1997_v2 = vadd.f32 %v1990_v1, %v1883_v0  ;;  %v2067_v38 = vsel %vm969_vm6, %v2064_v20, %v2066_v15  ;;  %v2143_v48 = vsel %vm1046_vm7, %v2140_v55, %v2142_v19 }
 0x18b   : > { %v2110_v57 = vpop.permute.xlu1 %2109  ;;  %v1996_v56 = vadd.f32 %v1991_v41, %v1882_v42  ;;  %v1881_v7 = vadd.f32 %v1875_v36, %v1805_v59  ;;  %v2065_v54 = vsel %vm969_vm6, %v2063_v46, %v2064_v20 }
 0x18c   : > { %v2073_v39 = vadd.f32 %v2066_v15, %v1997_v2  ;;  %v2116_v40 = vmul.f32 %v4063_v12, %v2110_v57 }
 0x18d   : > { %v2072_v5 = vadd.f32 %v2067_v38, %v1996_v56  ;;  %v1995_v30 = vadd.f32 %v1989_v10, %v1881_v7 }
 0x18e   : > { %v2149_v31 = vadd.f32 %v2142_v19, %v2073_v39  ;;  %v2119_v45 = vadd.f32 %v2116_v40, %v2105_v29 }
 0x18f   : > { %v2148_v12 = vadd.f32 %v2143_v48, %v2072_v5  ;;  %v2071_v43 = vadd.f32 %v2065_v54, %v1995_v30 }
 0x190   : > { %v2124_v16 = vpop.permute.xlu1 %2123  ;;  %v2155_v9 = vadd.f32 %v2152_v8, %v2149_v31 }
 0x191   : > { %v2130_v47 = vmul.f32 %v4071_v3, %v2124_v16  ;;  %v2154_v28 = vadd.f32 %v2151_v37, %v2148_v12 }
 0x192   : > { %2160 = vst.msk [vmem:[%s2918_s29 + $0x10] sm:$0x3] %vm2159_vm9, %v2155_v9 }
 0x193   : > { %v2133_v24 = vadd.f32 %v2130_v47, %v2119_v45  ;;  %2158 = vst.msk [vmem:[%s2918_s29 + $0x8] sm:$0xff] %vm2156_vm10, %v2154_v28 }
 0x195   : > { %v2139_v27 = vrot.slane %v2133_v24, 6 }
 0x197   : > { %v2141_v25 = vsel %vm1046_vm7, %v2139_v27, %v2140_v55 }
 0x198   : > { %v2147_v35 = vadd.f32 %v2141_v25, %v2071_v43 }
 0x19a   : > { %v2153_v61 = vadd.f32 %v2150_v14, %v2147_v35 }
 0x19c   : > { %2157 = vst.msk [vmem:[%s2918_s29] sm:$0xff] %vm2156_vm10, %v2153_v61 }
 0x19d PF: > { %s14_s19 = sadd.s32 1, %s2850_s19   ;;  %s4433_s15 = smov %s2842_s17 }
 0x19e   : > { %p11_p8 = scmp.ge.s32.totalorder %s14_s19, 16   ;;  %s4434_s16 = smov %s2846_s18 }
 0x19f   : > { %s4435_s17 = smov %s4438_s2  ;;  %s4436_s18 = smov %s4442_s20 }
 0x1a0   :  { %13 = sbr.rel (!%p11_p8) target bundleno = 3 (0x3), region = 91 }

</bundles_post_ra>
